<compile_context>
chip_gen: v7x
topology: tpu7x:2x2x1
jax: 0.10.0
libtpu: 0.0.40
codegen_flags: <defaults>
</compile_context>

<pallas_src>
import functools

import jax
import jax.numpy as jnp
import numpy as np
from jax.experimental import pallas as pl
from jax.experimental.pallas import tpu as pltpu


def _split_heads(m2d, Bb, T, H, hs):
    """(Bb*T, C) -> (H*Bb, T, hs), group index g = h*Bb + b."""
    es = getattr(pltpu, "einshape", None)
    if es is not None:
        hm = es("mhd->hmd", m2d.reshape(Bb * T, H, hs))      # (H, Bb*T, hs), one relayout
        return hm.reshape(H * Bb, T, hs)
    # Fallback: lane slices + leading-axis concat (only ops known to lower everywhere).
    m3 = m2d.reshape(Bb, T, H * hs)
    return jnp.concatenate([m3[:, :, i * hs:(i + 1) * hs] for i in range(H)], axis=0)


def _merge_heads(o, Bb, T, H, hs):
    """(H*Bb, T, hs) with g = h*Bb + b  ->  (Bb*T, C) with column c = h*hs + d."""
    es = getattr(pltpu, "einshape", None)
    if es is not None:
        hm = o.reshape(H, Bb * T, hs)
        return es("hmd->mhd", hm).reshape(Bb * T, H * hs)
    return jnp.concatenate(
        [o[i * Bb:(i + 1) * Bb].reshape(Bb * T, hs) for i in range(H)], axis=-1)


def block_kernel(x_ref, wqkv_ref, wo_ref, bo_ref,
                 w1_ref, b1_ref, w2_ref, b2_ref,
                 g1_ref, be1_ref, g2_ref, be2_ref,
                 out_ref, *, num_heads, head_size):
    Bb, T, C = x_ref.shape
    H, hs = num_heads, head_size
    eps = 1e-5                      # PyTorch LayerNorm default
    neg_big = -1e30                 # same softmax result as -inf, NaN-safe

    x = x_ref[...].astype(jnp.float32)                       # (Bb, T, C) f32

    def layernorm(v, g, b):
        mu = jnp.mean(v, axis=-1, keepdims=True)
        var = jnp.mean((v - mu) ** 2, axis=-1, keepdims=True)
        return (v - mu) * jax.lax.rsqrt(var + eps) * g + b

    g1, be1 = g1_ref[...], be1_ref[...]                      # (1, C) f32
    g2, be2 = g2_ref[...], be2_ref[...]

    # ---------------- attention branch: x + merge(MHSA(ln1(x))) ----------------
    h = layernorm(x, g1, be1)
    h_flat = h.reshape(Bb * T, C).astype(jnp.bfloat16)

    # Fused QKV projection (scale 1/sqrt(C) is pre-folded into the Wq columns).
    qkv = jnp.dot(h_flat, wqkv_ref[...], preferred_element_type=jnp.float32)  # (Bb*T, 3C)
    qkv = qkv.astype(jnp.bfloat16)                            # single cast before slicing

    q = _split_heads(qkv[:, :C], Bb, T, H, hs)                # (H*Bb, T, hs) bf16
    k = _split_heads(qkv[:, C:2 * C], Bb, T, H, hs)
    v = _split_heads(qkv[:, 2 * C:], Bb, T, H, hs)

    row = jax.lax.broadcasted_iota(jnp.int32, (T, T), 0)
    col = jax.lax.broadcasted_iota(jnp.int32, (T, T), 1)
    causal = (row >= col)[None, :, :]                         # (1, T, T)

    # Batched over all (head, batch) groups: one score einsum, one softmax, one PV einsum.
    att = jnp.einsum('gqd,gkd->gqk', q, k,
                     preferred_element_type=jnp.float32)      # (H*Bb, T, T) f32
    att = jnp.where(causal, att, neg_big)
    m = jnp.max(att, axis=-1, keepdims=True)
    e = jnp.exp(att - m)
    denom = jnp.sum(e, axis=-1, keepdims=True)
    p = (e * pl.reciprocal(denom, approx=True)).astype(jnp.bfloat16)   # EUP reciprocal
    oh = jnp.einsum('gqk,gkd->gqd', p, v,
                    preferred_element_type=jnp.float32).astype(jnp.bfloat16)  # (H*Bb, T, hs)

    # Merge heads back onto lanes, then ONE K=C output projection matmul.
    o = _merge_heads(oh, Bb, T, H, hs)                        # (Bb*T, C) bf16
    sa = jnp.dot(o, wo_ref[...], preferred_element_type=jnp.float32) + bo_ref[...]
    x1 = x + sa.reshape(Bb, T, C)

    # ---------------- FFN branch: x1 + W2 @ relu(W1 @ ln2(x1)) ----------------
    h2 = layernorm(x1, g2, be2)
    h2_flat = h2.reshape(Bb * T, C).astype(jnp.bfloat16)
    f = jnp.dot(h2_flat, w1_ref[...], preferred_element_type=jnp.float32) + b1_ref[...]
    f = jnp.maximum(f, 0.0).astype(jnp.bfloat16)              # cast right after relu
    y = jnp.dot(f, w2_ref[...], preferred_element_type=jnp.float32) + b2_ref[...]
    x2 = x1 + y.reshape(Bb, T, C)

    out_ref[...] = x2.astype(out_ref.dtype)


def _tensorcores_per_chip():
    """v7x has 2 TensorCores per chip; v5e / v6e have 1."""
    try:
        kind = jax.devices()[0].device_kind.lower()
    except Exception:
        return 1
    if "v7" in kind or "tpu7" in kind:
        return 2
    return 1


def transformer_block(x, kparams, num_heads, *, batch_block=None):
    """kparams = (wqkv, wo, bo, w1, b1, w2, b2, g1, be1, g2, be2); matmul weights bf16."""
    B, T, C = x.shape
    head_size = C // num_heads

    # Generation-aware batch tile: 1-TC chips (v5e/v6e) get a single grid step (bb=B,
    # no per-step overhead, 2x MXU row fill); v7x keeps >= 2 parallel steps (bb=B/2)
    # so both TensorCores are used.
    if batch_block is None:
        ncores = _tensorcores_per_chip()
        bb = B // ncores if (ncores <= B and B % ncores == 0) else B
    else:
        bb = batch_block
    if bb < 1 or B % bb != 0:
        bb = 1

    kernel = functools.partial(block_kernel, num_heads=num_heads, head_size=head_size)

    def rep_spec(shape):
        n = len(shape)
        return pl.BlockSpec(shape, lambda i, _n=n: (0,) * _n)

    (wqkv, wo, bo, w1, b1, w2, b2, g1, be1, g2, be2) = kparams
    in_specs = [
        pl.BlockSpec((bb, T, C), lambda i: (i, 0, 0)),        # x tile: bb batch elems / step
        rep_spec(wqkv.shape),                                 # fused QKV weight (C, 3C)
        rep_spec(wo.shape), rep_spec(bo.shape),               # merge W^T, bias
        rep_spec(w1.shape), rep_spec(b1.shape),               # ffn W1^T, b1
        rep_spec(w2.shape), rep_spec(b2.shape),               # ffn W2^T, b2
        rep_spec(g1.shape), rep_spec(be1.shape),              # ln1 gamma, beta
        rep_spec(g2.shape), rep_spec(be2.shape),              # ln2 gamma, beta
    ]
    out_spec = pl.BlockSpec((bb, T, C), lambda i: (i, 0, 0))

    return pl.pallas_call(
        kernel,
        out_shape=jax.ShapeDtypeStruct((B, T, C), x.dtype),
        grid=(B // bb,),
        in_specs=in_specs,
        out_specs=out_spec,
        compiler_params=pltpu.CompilerParams(dimension_semantics=("parallel",)),
    )(x, *kparams)


def reference_block(x, params, num_heads):
    """Pure-JAX f32 reference matching the PyTorch forward (dropout = identity)."""
    (wq, wk, wv, wo, bo, w1, b1, w2, b2, g1, be1, g2, be2) = params
    B, T, C = x.shape
    hs = C // num_heads
    eps = 1e-5

    def ln(v, g, b):
        mu = jnp.mean(v, axis=-1, keepdims=True)
        var = jnp.mean((v - mu) ** 2, axis=-1, keepdims=True)
        return (v - mu) / jnp.sqrt(var + eps) * g + b

    h = ln(x, g1, be1)
    q = h @ wq
    k = h @ wk
    v = h @ wv
    causal = jnp.tril(jnp.ones((T, T), dtype=bool))
    outs = []
    for hd in range(num_heads):
        s = hd * hs
        att = q[..., s:s + hs] @ jnp.swapaxes(k[..., s:s + hs], -1, -2) * (C ** -0.5)
        att = jnp.where(causal, att, -jnp.inf)
        p = jax.nn.softmax(att, axis=-1)
        outs.append(p @ v[..., s:s + hs])
    sa = jnp.concatenate(outs, axis=-1) @ wo + bo
    x1 = x + sa
    h2 = ln(x1, g2, be2)
    f = jnp.maximum(h2 @ w1 + b1, 0.0) @ w2 + b2
    return x1 + f


if __name__ == "__main__":
    # Small shapes, lane-aligned embedding (C = 128 fills the 128-wide lane axis).
    B, T, C = 4, 16, 128          # batch, block_size (seq), n_embed
    num_heads = 4                 # head_size = 32

    key = jax.random.PRNGKey(0)
    keys = jax.random.split(key, 12)
    std = 0.02
    wq = jax.random.normal(keys[0], (C, C), jnp.float32) * std
    wk = jax.random.normal(keys[1], (C, C), jnp.float32) * std
    wv = jax.random.normal(keys[2], (C, C), jnp.float32) * std
    wo = jax.random.normal(keys[3], (C, C), jnp.float32) * std    # merge Linear W^T
    bo = jax.random.normal(keys[4], (1, C), jnp.float32) * std
    w1 = jax.random.normal(keys[5], (C, 4 * C), jnp.float32) * std
    b1 = jax.random.normal(keys[6], (1, 4 * C), jnp.float32) * std
    w2 = jax.random.normal(keys[7], (4 * C, C), jnp.float32) * std
    b2 = jax.random.normal(keys[8], (1, C), jnp.float32) * std
    g1 = jnp.ones((1, C), jnp.float32) + 0.1 * jax.random.normal(keys[9], (1, C), jnp.float32)
    be1 = 0.1 * jax.random.normal(keys[10], (1, C), jnp.float32)
    g2 = jnp.ones((1, C), jnp.float32)
    be2 = jnp.zeros((1, C), jnp.float32)

    ref_params = (wq, wk, wv, wo, bo, w1, b1, w2, b2, g1, be1, g2, be2)

    # Kernel-side params: fused QKV weight with the 1/sqrt(C) attention scale folded
    # into the Wq columns; matmul weights in bf16 (f32 accumulation in-kernel);
    # biases / layernorm params kept in f32.
    scale = C ** (-0.5)
    wqkv = jnp.concatenate([wq * scale, wk, wv], axis=1)
    kparams = (wqkv.astype(jnp.bfloat16),
               wo.astype(jnp.bfloat16), bo,
               w1.astype(jnp.bfloat16), b1,
               w2.astype(jnp.bfloat16), b2,
               g1, be1, g2, be2)

    x = jax.random.normal(keys[11], (B, T, C), jnp.float32)

    out = transformer_block(x, kparams, num_heads)   # batch tile auto-picked per TPU generation
    out = jax.block_until_ready(out)

    ref = reference_block(x, ref_params, num_heads)
    # Tolerance accounts for bf16 MXU inputs + approximate reciprocal (f32 reference).
    np.testing.assert_allclose(np.asarray(out), np.asarray(ref), rtol=1e-2, atol=1e-2)

    print("KERNEL_OK")
</pallas_src>

<mosaic_0001>
module attributes {stable_mosaic.version = 11 : i64} {
  func.func @block_kernel(%arg0: i32, %arg1: memref<4x16x128xf32, #tpu.memory_space<vmem>>, %arg2: memref<128x384xbf16, #tpu.memory_space<vmem>>, %arg3: memref<128x128xbf16, #tpu.memory_space<vmem>>, %arg4: memref<1x128xf32, #tpu.memory_space<vmem>>, %arg5: memref<128x512xbf16, #tpu.memory_space<vmem>>, %arg6: memref<1x512xf32, #tpu.memory_space<vmem>>, %arg7: memref<512x128xbf16, #tpu.memory_space<vmem>>, %arg8: memref<1x128xf32, #tpu.memory_space<vmem>>, %arg9: memref<1x128xf32, #tpu.memory_space<vmem>>, %arg10: memref<1x128xf32, #tpu.memory_space<vmem>>, %arg11: memref<1x128xf32, #tpu.memory_space<vmem>>, %arg12: memref<1x128xf32, #tpu.memory_space<vmem>>, %arg13: memref<4x16x128xf32, #tpu.memory_space<vmem>>) attributes {dimension_semantics = [#tpu.dimension_semantics<parallel>], iteration_bounds = array<i64: 1>, scalar_prefetch = 0 : i64, scratch_operands = 0 : i64, tpu.core_type = #tpu.core_type<tc>, window_params = [{transform_indices = @transform_0, window_bounds = array<i64: 4, 16, 128>}, {pipeline_mode = #tpu.pipeline_mode<synchronous>, transform_indices = @transform_1, window_bounds = array<i64: 128, 384>}, {pipeline_mode = #tpu.pipeline_mode<synchronous>, transform_indices = @transform_2, window_bounds = array<i64: 128, 128>}, {pipeline_mode = #tpu.pipeline_mode<synchronous>, transform_indices = @transform_3, window_bounds = array<i64: 1, 128>}, {pipeline_mode = #tpu.pipeline_mode<synchronous>, transform_indices = @transform_4, window_bounds = array<i64: 128, 512>}, {pipeline_mode = #tpu.pipeline_mode<synchronous>, transform_indices = @transform_5, window_bounds = array<i64: 1, 512>}, {pipeline_mode = #tpu.pipeline_mode<synchronous>, transform_indices = @transform_6, window_bounds = array<i64: 512, 128>}, {pipeline_mode = #tpu.pipeline_mode<synchronous>, transform_indices = @transform_7, window_bounds = array<i64: 1, 128>}, {pipeline_mode = #tpu.pipeline_mode<synchronous>, transform_indices = @transform_8, window_bounds = array<i64: 1, 128>}, {pipeline_mode = #tpu.pipeline_mode<synchronous>, transform_indices = @transform_9, window_bounds = array<i64: 1, 128>}, {pipeline_mode = #tpu.pipeline_mode<synchronous>, transform_indices = @transform_10, window_bounds = array<i64: 1, 128>}, {pipeline_mode = #tpu.pipeline_mode<synchronous>, transform_indices = @transform_11, window_bounds = array<i64: 1, 128>}, {transform_indices = @transform_12, window_bounds = array<i64: 4, 16, 128>}]} {
    %c0 = arith.constant 0 : index
    %c0_0 = arith.constant 0 : index
    %c0_1 = arith.constant 0 : index
    %0 = vector.load %arg1[%c0, %c0_0, %c0_1] : memref<4x16x128xf32, #tpu.memory_space<vmem>>, vector<4x16x128xf32>
    %c0_2 = arith.constant 0 : index
    %c0_3 = arith.constant 0 : index
    %1 = vector.load %arg9[%c0_2, %c0_3] : memref<1x128xf32, #tpu.memory_space<vmem>>, vector<1x128xf32>
    %c0_4 = arith.constant 0 : index
    %c0_5 = arith.constant 0 : index
    %2 = vector.load %arg10[%c0_4, %c0_5] : memref<1x128xf32, #tpu.memory_space<vmem>>, vector<1x128xf32>
    %c0_6 = arith.constant 0 : index
    %c0_7 = arith.constant 0 : index
    %3 = vector.load %arg11[%c0_6, %c0_7] : memref<1x128xf32, #tpu.memory_space<vmem>>, vector<1x128xf32>
    %c0_8 = arith.constant 0 : index
    %c0_9 = arith.constant 0 : index
    %4 = vector.load %arg12[%c0_8, %c0_9] : memref<1x128xf32, #tpu.memory_space<vmem>>, vector<1x128xf32>
    %cst = arith.constant dense<0.000000e+00> : vector<4x16xf32>
    %5 = vector.multi_reduction <add>, %0, %cst [2] : vector<4x16x128xf32> to vector<4x16xf32>
    %6 = vector.shape_cast %5 : vector<4x16xf32> to vector<4x16x1xf32>
    %cst_10 = arith.constant 1.280000e+02 : f32
    %7 = vector.broadcast %cst_10 : f32 to vector<4x16x1xf32>
    %8 = arith.divf %6, %7 : vector<4x16x1xf32>
    %9 = vector.broadcast %8 : vector<4x16x1xf32> to vector<4x16x128xf32>
    %10 = arith.subf %0, %9 : vector<4x16x128xf32>
    %11 = arith.mulf %10, %10 : vector<4x16x128xf32>
    %cst_11 = arith.constant dense<0.000000e+00> : vector<4x16xf32>
    %12 = vector.multi_reduction <add>, %11, %cst_11 [2] : vector<4x16x128xf32> to vector<4x16xf32>
    %13 = vector.shape_cast %12 : vector<4x16xf32> to vector<4x16x1xf32>
    %cst_12 = arith.constant 1.280000e+02 : f32
    %14 = vector.broadcast %cst_12 : f32 to vector<4x16x1xf32>
    %15 = arith.divf %13, %14 : vector<4x16x1xf32>
    %16 = vector.broadcast %8 : vector<4x16x1xf32> to vector<4x16x128xf32>
    %17 = arith.subf %0, %16 : vector<4x16x128xf32>
    %cst_13 = arith.constant 9.99999974E-6 : f32
    %18 = vector.broadcast %cst_13 : f32 to vector<4x16x1xf32>
    %19 = arith.addf %15, %18 : vector<4x16x1xf32>
    %20 = math.rsqrt %19 : vector<4x16x1xf32>
    %21 = vector.broadcast %20 : vector<4x16x1xf32> to vector<4x16x128xf32>
    %22 = arith.mulf %17, %21 : vector<4x16x128xf32>
    %23 = vector.shape_cast %1 : vector<1x128xf32> to vector<1x1x128xf32>
    %24 = vector.broadcast %23 : vector<1x1x128xf32> to vector<4x16x128xf32>
    %25 = arith.mulf %22, %24 : vector<4x16x128xf32>
    %26 = vector.shape_cast %2 : vector<1x128xf32> to vector<1x1x128xf32>
    %27 = vector.broadcast %26 : vector<1x1x128xf32> to vector<4x16x128xf32>
    %28 = arith.addf %25, %27 : vector<4x16x128xf32>
    %29 = vector.shape_cast %28 : vector<4x16x128xf32> to vector<64x128xf32>
    %30 = arith.truncf %29 : vector<64x128xf32> to vector<64x128xbf16>
    %c0_14 = arith.constant 0 : index
    %c0_15 = arith.constant 0 : index
    %31 = vector.load %arg2[%c0_14, %c0_15] : memref<128x384xbf16, #tpu.memory_space<vmem>>, vector<128x384xbf16>
    %cst_16 = arith.constant dense<0.000000e+00> : vector<64x384xf32>
    %32 = tpu.matmul %30, %31, %cst_16 {dimension_numbers = #tpu.dot_dimension_numbers<[1], [0], [0], [1], [0, 0, 1, 1], [], []>} : vector<64x128xbf16>, vector<128x384xbf16>, vector<64x384xf32> -> vector<64x384xf32>
    %33 = arith.truncf %32 : vector<64x384xf32> to vector<64x384xbf16>
    %34 = vector.extract_strided_slice %33 {offsets = [0, 0], sizes = [64, 128], strides = [1, 1]} : vector<64x384xbf16> to vector<64x128xbf16>
    %35 = vector.shape_cast %34 : vector<64x128xbf16> to vector<64x4x32xbf16>
    %36 = tpu.transpose %35, [1, 0, 2] : vector<64x4x32xbf16> -> vector<4x64x32xbf16>
    %37 = vector.shape_cast %36 : vector<4x64x32xbf16> to vector<16x16x32xbf16>
    %38 = vector.extract_strided_slice %33 {offsets = [0, 128], sizes = [64, 128], strides = [1, 1]} : vector<64x384xbf16> to vector<64x128xbf16>
    %39 = vector.shape_cast %38 : vector<64x128xbf16> to vector<64x4x32xbf16>
    %40 = tpu.transpose %39, [1, 0, 2] : vector<64x4x32xbf16> -> vector<4x64x32xbf16>
    %41 = vector.shape_cast %40 : vector<4x64x32xbf16> to vector<16x16x32xbf16>
    %42 = vector.extract_strided_slice %33 {offsets = [0, 256], sizes = [64, 128], strides = [1, 1]} : vector<64x384xbf16> to vector<64x128xbf16>
    %43 = vector.shape_cast %42 : vector<64x128xbf16> to vector<64x4x32xbf16>
    %44 = tpu.transpose %43, [1, 0, 2] : vector<64x4x32xbf16> -> vector<4x64x32xbf16>
    %45 = vector.shape_cast %44 : vector<4x64x32xbf16> to vector<16x16x32xbf16>
    %46 = tpu.iota {dimensions = array<i32: 0>} : vector<16x16xi32>
    %47 = tpu.iota {dimensions = array<i32: 1>} : vector<16x16xi32>
    %48 = arith.cmpi sge, %46, %47 : vector<16x16xi32>
    %49 = vector.shape_cast %48 : vector<16x16xi1> to vector<1x16x16xi1>
    "tpu.trace_start"() <{level = 10 : i32, message = "gqd,gkd->gqk"}> : () -> ()
    %cst_17 = arith.constant dense<0.000000e+00> : vector<16x16x16xf32>
    %50 = tpu.matmul %37, %41, %cst_17 {dimension_numbers = #tpu.dot_dimension_numbers<[2], [2], [1], [1], [0, 0, 0, 1, 1, 1], [0], [0]>} : vector<16x16x32xbf16>, vector<16x16x32xbf16>, vector<16x16x16xf32> -> vector<16x16x16xf32>
    %cst_18 = arith.constant -1.000000e+30 : f32
    "tpu.trace_stop"() : () -> ()
    %51 = vector.shape_cast %49 : vector<1x16x16xi1> to vector<1x16x16xi1>
    %52 = vector.broadcast %51 : vector<1x16x16xi1> to vector<16x16x16xi1>
    %53 = vector.broadcast %cst_18 : f32 to vector<16x16x16xf32>
    %54 = arith.select %52, %50, %53 : vector<16x16x16xi1>, vector<16x16x16xf32>
    %cst_19 = arith.constant dense<0xFF800000> : vector<16x16xf32>
    %55 = vector.multi_reduction <maximumf>, %54, %cst_19 [2] : vector<16x16x16xf32> to vector<16x16xf32>
    %56 = vector.shape_cast %55 : vector<16x16xf32> to vector<16x16x1xf32>
    %57 = vector.broadcast %56 : vector<16x16x1xf32> to vector<16x16x16xf32>
    %58 = arith.subf %54, %57 : vector<16x16x16xf32>
    %59 = math.exp %58 : vector<16x16x16xf32>
    %cst_20 = arith.constant dense<0.000000e+00> : vector<16x16xf32>
    %60 = vector.multi_reduction <add>, %59, %cst_20 [2] : vector<16x16x16xf32> to vector<16x16xf32>
    %61 = vector.shape_cast %60 : vector<16x16xf32> to vector<16x16x1xf32>
    %62 = tpu.reciprocal %61 {approx = true} : vector<16x16x1xf32> -> vector<16x16x1xf32>
    %63 = vector.broadcast %62 : vector<16x16x1xf32> to vector<16x16x16xf32>
    %64 = arith.mulf %59, %63 : vector<16x16x16xf32>
    %65 = arith.truncf %64 : vector<16x16x16xf32> to vector<16x16x16xbf16>
    "tpu.trace_start"() <{level = 10 : i32, message = "gqk,gkd->gqd"}> : () -> ()
    %cst_21 = arith.constant dense<0.000000e+00> : vector<16x16x32xf32>
    %66 = tpu.matmul %65, %45, %cst_21 {dimension_numbers = #tpu.dot_dimension_numbers<[2], [1], [1], [2], [0, 0, 0, 1, 1, 2], [0], [0]>} : vector<16x16x16xbf16>, vector<16x16x32xbf16>, vector<16x16x32xf32> -> vector<16x16x32xf32>
    "tpu.trace_stop"() : () -> ()
    %67 = arith.truncf %66 : vector<16x16x32xf32> to vector<16x16x32xbf16>
    %68 = vector.shape_cast %67 : vector<16x16x32xbf16> to vector<4x64x32xbf16>
    %69 = tpu.transpose %68, [1, 0, 2] : vector<4x64x32xbf16> -> vector<64x4x32xbf16>
    %70 = vector.shape_cast %69 : vector<64x4x32xbf16> to vector<64x128xbf16>
    %c0_22 = arith.constant 0 : index
    %c0_23 = arith.constant 0 : index
    %71 = vector.load %arg3[%c0_22, %c0_23] : memref<128x128xbf16, #tpu.memory_space<vmem>>, vector<128x128xbf16>
    %cst_24 = arith.constant dense<0.000000e+00> : vector<64x128xf32>
    %72 = tpu.matmul %70, %71, %cst_24 {dimension_numbers = #tpu.dot_dimension_numbers<[1], [0], [0], [1], [0, 0, 1, 1], [], []>} : vector<64x128xbf16>, vector<128x128xbf16>, vector<64x128xf32> -> vector<64x128xf32>
    %c0_25 = arith.constant 0 : index
    %c0_26 = arith.constant 0 : index
    %73 = vector.load %arg4[%c0_25, %c0_26] : memref<1x128xf32, #tpu.memory_space<vmem>>, vector<1x128xf32>
    %74 = vector.broadcast %73 : vector<1x128xf32> to vector<64x128xf32>
    %75 = arith.addf %72, %74 : vector<64x128xf32>
    %76 = vector.shape_cast %75 : vector<64x128xf32> to vector<4x16x128xf32>
    %77 = arith.addf %0, %76 : vector<4x16x128xf32>
    %cst_27 = arith.constant dense<0.000000e+00> : vector<4x16xf32>
    %78 = vector.multi_reduction <add>, %77, %cst_27 [2] : vector<4x16x128xf32> to vector<4x16xf32>
    %79 = vector.shape_cast %78 : vector<4x16xf32> to vector<4x16x1xf32>
    %cst_28 = arith.constant 1.280000e+02 : f32
    %80 = vector.broadcast %cst_28 : f32 to vector<4x16x1xf32>
    %81 = arith.divf %79, %80 : vector<4x16x1xf32>
    %82 = vector.broadcast %81 : vector<4x16x1xf32> to vector<4x16x128xf32>
    %83 = arith.subf %77, %82 : vector<4x16x128xf32>
    %84 = arith.mulf %83, %83 : vector<4x16x128xf32>
    %cst_29 = arith.constant dense<0.000000e+00> : vector<4x16xf32>
    %85 = vector.multi_reduction <add>, %84, %cst_29 [2] : vector<4x16x128xf32> to vector<4x16xf32>
    %86 = vector.shape_cast %85 : vector<4x16xf32> to vector<4x16x1xf32>
    %cst_30 = arith.constant 1.280000e+02 : f32
    %87 = vector.broadcast %cst_30 : f32 to vector<4x16x1xf32>
    %88 = arith.divf %86, %87 : vector<4x16x1xf32>
    %89 = vector.broadcast %81 : vector<4x16x1xf32> to vector<4x16x128xf32>
    %90 = arith.subf %77, %89 : vector<4x16x128xf32>
    %cst_31 = arith.constant 9.99999974E-6 : f32
    %91 = vector.broadcast %cst_31 : f32 to vector<4x16x1xf32>
    %92 = arith.addf %88, %91 : vector<4x16x1xf32>
    %93 = math.rsqrt %92 : vector<4x16x1xf32>
    %94 = vector.broadcast %93 : vector<4x16x1xf32> to vector<4x16x128xf32>
    %95 = arith.mulf %90, %94 : vector<4x16x128xf32>
    %96 = vector.shape_cast %3 : vector<1x128xf32> to vector<1x1x128xf32>
    %97 = vector.broadcast %96 : vector<1x1x128xf32> to vector<4x16x128xf32>
    %98 = arith.mulf %95, %97 : vector<4x16x128xf32>
    %99 = vector.shape_cast %4 : vector<1x128xf32> to vector<1x1x128xf32>
    %100 = vector.broadcast %99 : vector<1x1x128xf32> to vector<4x16x128xf32>
    %101 = arith.addf %98, %100 : vector<4x16x128xf32>
    %102 = vector.shape_cast %101 : vector<4x16x128xf32> to vector<64x128xf32>
    %103 = arith.truncf %102 : vector<64x128xf32> to vector<64x128xbf16>
    %c0_32 = arith.constant 0 : index
    %c0_33 = arith.constant 0 : index
    %104 = vector.load %arg5[%c0_32, %c0_33] : memref<128x512xbf16, #tpu.memory_space<vmem>>, vector<128x512xbf16>
    %cst_34 = arith.constant dense<0.000000e+00> : vector<64x512xf32>
    %105 = tpu.matmul %103, %104, %cst_34 {dimension_numbers = #tpu.dot_dimension_numbers<[1], [0], [0], [1], [0, 0, 1, 1], [], []>} : vector<64x128xbf16>, vector<128x512xbf16>, vector<64x512xf32> -> vector<64x512xf32>
    %c0_35 = arith.constant 0 : index
    %c0_36 = arith.constant 0 : index
    %106 = vector.load %arg6[%c0_35, %c0_36] : memref<1x512xf32, #tpu.memory_space<vmem>>, vector<1x512xf32>
    %107 = vector.broadcast %106 : vector<1x512xf32> to vector<64x512xf32>
    %108 = arith.addf %105, %107 : vector<64x512xf32>
    %cst_37 = arith.constant 0.000000e+00 : f32
    %109 = vector.broadcast %cst_37 : f32 to vector<64x512xf32>
    %110 = arith.maximumf %108, %109 : vector<64x512xf32>
    %111 = arith.truncf %110 : vector<64x512xf32> to vector<64x512xbf16>
    %c0_38 = arith.constant 0 : index
    %c0_39 = arith.constant 0 : index
    %112 = vector.load %arg7[%c0_38, %c0_39] : memref<512x128xbf16, #tpu.memory_space<vmem>>, vector<512x128xbf16>
    %cst_40 = arith.constant dense<0.000000e+00> : vector<64x128xf32>
    %113 = tpu.matmul %111, %112, %cst_40 {dimension_numbers = #tpu.dot_dimension_numbers<[1], [0], [0], [1], [0, 0, 1, 1], [], []>} : vector<64x512xbf16>, vector<512x128xbf16>, vector<64x128xf32> -> vector<64x128xf32>
    %c0_41 = arith.constant 0 : index
    %c0_42 = arith.constant 0 : index
    %114 = vector.load %arg8[%c0_41, %c0_42] : memref<1x128xf32, #tpu.memory_space<vmem>>, vector<1x128xf32>
    %115 = vector.broadcast %114 : vector<1x128xf32> to vector<64x128xf32>
    %116 = arith.addf %113, %115 : vector<64x128xf32>
    %117 = vector.shape_cast %116 : vector<64x128xf32> to vector<4x16x128xf32>
    %118 = arith.addf %77, %117 : vector<4x16x128xf32>
    %c0_43 = arith.constant 0 : index
    %c0_44 = arith.constant 0 : index
    %c0_45 = arith.constant 0 : index
    %119 = vector.load %arg13[%c0_43, %c0_44, %c0_45] : memref<4x16x128xf32, #tpu.memory_space<vmem>>, vector<4x16x128xf32>
    tpu.vector_store %arg13[%c0_43, %c0_44, %c0_45], %118 {strides = array<i32>} : memref<4x16x128xf32, #tpu.memory_space<vmem>>, vector<4x16x128xf32>,
    return
  }
  func.func @transform_0(%arg0: i32) -> (i32, i32, i32) {
    %c0_i32 = arith.constant 0 : i32
    %c0_i32_0 = arith.constant 0 : i32
    %c0_i32_1 = arith.constant 0 : i32
    return %arg0, %c0_i32, %c0_i32_0 : i32, i32, i32
  }
  func.func @transform_1(%arg0: i32) -> (i32, i32) {
    %c0_i32 = arith.constant 0 : i32
    %c0_i32_0 = arith.constant 0 : i32
    %c0_i32_1 = arith.constant 0 : i32
    return %c0_i32, %c0_i32_0 : i32, i32
  }
  func.func @transform_2(%arg0: i32) -> (i32, i32) {
    %c0_i32 = arith.constant 0 : i32
    %c0_i32_0 = arith.constant 0 : i32
    %c0_i32_1 = arith.constant 0 : i32
    return %c0_i32, %c0_i32_0 : i32, i32
  }
  func.func @transform_3(%arg0: i32) -> (i32, i32) {
    %c0_i32 = arith.constant 0 : i32
    %c0_i32_0 = arith.constant 0 : i32
    %c0_i32_1 = arith.constant 0 : i32
    return %c0_i32, %c0_i32_0 : i32, i32
  }
  func.func @transform_4(%arg0: i32) -> (i32, i32) {
    %c0_i32 = arith.constant 0 : i32
    %c0_i32_0 = arith.constant 0 : i32
    %c0_i32_1 = arith.constant 0 : i32
    return %c0_i32, %c0_i32_0 : i32, i32
  }
  func.func @transform_5(%arg0: i32) -> (i32, i32) {
    %c0_i32 = arith.constant 0 : i32
    %c0_i32_0 = arith.constant 0 : i32
    %c0_i32_1 = arith.constant 0 : i32
    return %c0_i32, %c0_i32_0 : i32, i32
  }
  func.func @transform_6(%arg0: i32) -> (i32, i32) {
    %c0_i32 = arith.constant 0 : i32
    %c0_i32_0 = arith.constant 0 : i32
    %c0_i32_1 = arith.constant 0 : i32
    return %c0_i32, %c0_i32_0 : i32, i32
  }
  func.func @transform_7(%arg0: i32) -> (i32, i32) {
    %c0_i32 = arith.constant 0 : i32
    %c0_i32_0 = arith.constant 0 : i32
    %c0_i32_1 = arith.constant 0 : i32
    return %c0_i32, %c0_i32_0 : i32, i32
  }
  func.func @transform_8(%arg0: i32) -> (i32, i32) {
    %c0_i32 = arith.constant 0 : i32
    %c0_i32_0 = arith.constant 0 : i32
    %c0_i32_1 = arith.constant 0 : i32
    return %c0_i32, %c0_i32_0 : i32, i32
  }
  func.func @transform_9(%arg0: i32) -> (i32, i32) {
    %c0_i32 = arith.constant 0 : i32
    %c0_i32_0 = arith.constant 0 : i32
    %c0_i32_1 = arith.constant 0 : i32
    return %c0_i32, %c0_i32_0 : i32, i32
  }
  func.func @transform_10(%arg0: i32) -> (i32, i32) {
    %c0_i32 = arith.constant 0 : i32
    %c0_i32_0 = arith.constant 0 : i32
    %c0_i32_1 = arith.constant 0 : i32
    return %c0_i32, %c0_i32_0 : i32, i32
  }
  func.func @transform_11(%arg0: i32) -> (i32, i32) {
    %c0_i32 = arith.constant 0 : i32
    %c0_i32_0 = arith.constant 0 : i32
    %c0_i32_1 = arith.constant 0 : i32
    return %c0_i32, %c0_i32_0 : i32, i32
  }
  func.func @transform_12(%arg0: i32) -> (i32, i32, i32) {
    %c0_i32 = arith.constant 0 : i32
    %c0_i32_0 = arith.constant 0 : i32
    %c0_i32_1 = arith.constant 0 : i32
    return %arg0, %c0_i32, %c0_i32_0 : i32, i32, i32
  }
}

</mosaic_0001>

<bundles_post_ra>
// kernel: tpu_custom_call.1
= control target key start
LH: loop header
LB: loop body
LE: loop exit
PB: predicated region body
PF: predicated region fallthrough
CT: control target
= control target key end

     0   :  { %17 = vsyncpa [#allocation3], 0  ;;  %s11779_s0 = inlined_call_operand.hbm [shape: f32[4,16,128], index: 0, kind: input, shape index: {}]   ;;  %s11780_s1 = inlined_call_operand.hbm [shape: bf16[128,384], index: 1, kind: input, shape index: {}]   ;;  %s11781_s2 = inlined_call_operand.hbm [shape: bf16[128,128], index: 2, kind: input, shape index: {}]   ;;  %s11782_s3 = inlined_call_operand.vmem [shape: f32[1,128], index: 3, kind: input, shape index: {}]   ;;  %s11783_s4 = inlined_call_operand.hbm [shape: bf16[128,512], index: 4, kind: input, shape index: {}]   ;;  %s11784_s5 = inlined_call_operand.vmem [shape: f32[1,512], index: 5, kind: input, shape index: {}]   ;;  %s11785_s6 = inlined_call_operand.hbm [shape: bf16[512,128], index: 6, kind: input, shape index: {}]   ;;  %s11786_s7 = inlined_call_operand.vmem [shape: f32[1,128], index: 7, kind: input, shape index: {}]   ;;  %s11787_s8 = inlined_call_operand.vmem [shape: f32[1,128], index: 8, kind: input, shape index: {}]   ;;  %s11788_s9 = inlined_call_operand.vmem [shape: f32[1,128], index: 9, kind: input, shape index: {}]   ;;  %s11789_s10 = inlined_call_operand.vmem [shape: f32[1,128], index: 10, kind: input, shape index: {}]   ;;  %s11790_s11 = inlined_call_operand.vmem [shape: f32[1,128], index: 11, kind: input, shape index: {}]   ;;  %s11791_s12 = inlined_call_operand.hbm [shape: f32[4,16,128], index: 12, kind: output, shape index: {}]  }
   0x1   :  { %18 = vsyncpa [#allocation6], 0 }
   0x2   :  { %19 = vsyncpa [#allocation9], 0 }
   0x3   :  { %20 = vsyncpa [#allocation4], 0  ;;  %s8934_s21 = smov [#allocation5]   ;;  %s8794_s25 = scalar_lea.hbm %s11780_s1, 3072 }
   0x4   :  { %s38_s22 = sshll.u32 %s8934_s21, 4  ;;  %p8795_p0 = scmp.ne.s32.totalorder %s11780_s1, %s8794_s25  ;;  %s39_s22 = int_to_ptr.vmem [resolvable:$true] %s38_s22 }
   0x5   :  { %p8798_p1 = scmp.lt.u32.totalorder %s8794_s25, %s11780_s1 }
   0x7   :  { %p8800_p2 = pnand %p8798_p1, %p8795_p0 }
   0x9   :  { %8803 = shalt.err (!%p8800_p2)
}
   0xa   :  { %s8804_s30 = scalar_lea.vmem %s39_s22, 3072  ;;  %p8809_p4 = scmp.lt.s32.totalorder %s39_s22, %s39_s22 }
   0xb   :  { %p8805_p3 = scmp.ne.s32.totalorder %s39_s22, %s8804_s30  ;;  %p8810_p5 = scmp.lt.s32.totalorder %s8804_s30, %s8804_s30 }
   0xd   :  { %p8811_p6 = por %p8810_p5, %p8809_p4 }
   0xf   :  { %p8812_p7 = pnand %p8811_p6, %p8805_p3 }
  0x11   :  { %8815 = shalt.err (!%p8812_p7)
}
  0x12   :  { %s8935_s13 = smov 192   ;;  %s8936_s14 = smov 12  }
  0x13   :  { %44 = dma.hbm_to_vmem [thread:$0]  %s11780_s1, 3072, %s39_s22, [#allocation6], %s8935_s13, %s8935_s13, %s8936_s14  }
  0x14   :  { %s8937_s17 = smov [#allocation8]   ;;  %s8816_s21 = scalar_lea.hbm %s11783_s4, 4096 }
  0x15   :  { %s64_s18 = sshll.u32 %s8937_s17, 4  ;;  %p8817_p8 = scmp.ne.s32.totalorder %s11783_s4, %s8816_s21  ;;  %s65_s18 = int_to_ptr.vmem [resolvable:$true] %s64_s18 }
  0x16   :  { %p8820_p9 = scmp.lt.u32.totalorder %s8816_s21, %s11783_s4 }
  0x18   :  { %p8822_p10 = pnand %p8820_p9, %p8817_p8 }
  0x1a   :  { %8825 = shalt.err (!%p8822_p10)
}
  0x1b   :  { %s8826_s27 = scalar_lea.vmem %s65_s18, 4096  ;;  %p8831_p12 = scmp.lt.s32.totalorder %s65_s18, %s65_s18 }
  0x1c   :  { %p8827_p11 = scmp.ne.s32.totalorder %s65_s18, %s8826_s27  ;;  %p8832_p13 = scmp.lt.s32.totalorder %s8826_s27, %s8826_s27 }
  0x1e   :  { %p8833_p0 = por %p8832_p13, %p8831_p12 }
  0x20   :  { %p8834_p1 = pnand %p8833_p0, %p8827_p11 }
  0x22   :  { %8837 = shalt.err (!%p8834_p1)
}
  0x23   :  { %s8938_s1 = smov 256   ;;  %s8939_s22 = smov 16  }
  0x24   :  { %70 = dma.hbm_to_vmem [thread:$0]  %s11783_s4, 4096, %s65_s18, [#allocation9], %s8938_s1, %s8938_s1, %s8939_s22  }
  0x25   :  { %s8940_s30 = smov [#allocation2]   ;;  %s8838_s16 = scalar_lea.hbm %s11779_s0, 1024 }
  0x26   :  { %s26_s13 = sshll.u32 %s8940_s30, 4  ;;  %p8839_p2 = scmp.ne.s32.totalorder %s11779_s0, %s8838_s16  ;;  %s27_s13 = int_to_ptr.vmem [resolvable:$true] %s26_s13 }
  0x27   :  { %p8842_p3 = scmp.lt.u32.totalorder %s8838_s16, %s11779_s0 }
  0x29   :  { %p8844_p4 = pnand %p8842_p3, %p8839_p2 }
  0x2b   :  { %8847 = shalt.err (!%p8844_p4)
}
  0x2c   :  { %s8848_s23 = scalar_lea.vmem %s27_s13, 1024  ;;  %p8853_p6 = scmp.lt.s32.totalorder %s27_s13, %s27_s13 }
  0x2d   :  { %p8849_p5 = scmp.ne.s32.totalorder %s27_s13, %s8848_s23  ;;  %p8854_p7 = scmp.lt.s32.totalorder %s8848_s23, %s8848_s23 }
  0x2f   :  { %p8855_p8 = por %p8854_p7, %p8853_p6 }
  0x31   :  { %p8856_p9 = pnand %p8855_p8, %p8849_p5 }
  0x33   :  { %8859 = shalt.err (!%p8856_p9)
}
  0x34   :  { %s8941_s4 = smov 128   ;;  %s8942_s18 = smov 8  }
  0x35   :  { %32 = dma.hbm_to_vmem [thread:$0]  %s11779_s0, 1024, %s27_s13, [#allocation3], %s8941_s4, %s8941_s4, %s8942_s18  }
  0x36   :  { %s8943_s26 = smov [#allocation7]   ;;  %s8860_s28 = scalar_lea.hbm %s11781_s2, 1024 }
  0x37   :  { %s50_s27 = sshll.u32 %s8943_s26, 4  ;;  %p8861_p10 = scmp.ne.s32.totalorder %s11781_s2, %s8860_s28  ;;  %s51_s27 = int_to_ptr.vmem [resolvable:$true] %s50_s27 }
  0x38   :  { %p8864_p11 = scmp.lt.u32.totalorder %s8860_s28, %s11781_s2 }
  0x3a   :  { %p8866_p12 = pnand %p8864_p11, %p8861_p10 }
  0x3c   :  { %8869 = shalt.err (!%p8866_p12)
}
  0x3d   :  { %s8870_s16 = scalar_lea.vmem %s51_s27, 1024  ;;  %p8875_p0 = scmp.lt.s32.totalorder %s51_s27, %s51_s27 }
  0x3e   :  { %p8871_p13 = scmp.ne.s32.totalorder %s51_s27, %s8870_s16  ;;  %p8876_p1 = scmp.lt.s32.totalorder %s8870_s16, %s8870_s16 }
  0x40   :  { %p8877_p2 = por %p8876_p1, %p8875_p0 }
  0x42   :  { %p8878_p3 = pnand %p8877_p2, %p8871_p13 }
  0x44   :  { %8881 = shalt.err (!%p8878_p3)
}
  0x45   :  { %s8944_s0 = smov 64   ;;  %s8945_s13 = smov 4  }
  0x46   :  { %56 = dma.hbm_to_vmem [thread:$0]  %s11781_s2, 1024, %s51_s27, [#allocation6], %s8944_s0, %s8944_s0, %s8945_s13  }
  0x47   :  { %s8946_s20 = smov [#allocation10]   ;;  %s8882_s25 = scalar_lea.hbm %s11785_s6, 4096 }
  0x48   :  { %s78_s21 = sshll.u32 %s8946_s20, 4  ;;  %p8883_p4 = scmp.ne.s32.totalorder %s11785_s6, %s8882_s25  ;;  %s79_s21 = int_to_ptr.vmem [resolvable:$true] %s78_s21 }
  0x49   :  { %p8886_p5 = scmp.lt.u32.totalorder %s8882_s25, %s11785_s6 }
  0x4b   :  { %p8888_p6 = pnand %p8886_p5, %p8883_p4 }
  0x4d   :  { %8891 = shalt.err (!%p8888_p6)
}
  0x4e   :  { %s8892_s29 = scalar_lea.vmem %s79_s21, 4096  ;;  %p8897_p8 = scmp.lt.s32.totalorder %s79_s21, %s79_s21 }
  0x4f   :  { %p8893_p7 = scmp.ne.s32.totalorder %s79_s21, %s8892_s29  ;;  %p8898_p9 = scmp.lt.s32.totalorder %s8892_s29, %s8892_s29 }
  0x51   :  { %p8899_p10 = por %p8898_p9, %p8897_p8 }
  0x53   :  { %p8900_p11 = pnand %p8899_p10, %p8893_p7 }
  0x55   :  { %8903 = shalt.err (!%p8900_p11)
}
  0x56   :  { %84 = dma.hbm_to_vmem [thread:$0]  %s11785_s6, 4096, %s79_s21, [#allocation9], %s8944_s0, %s8944_s0, %s8945_s13  }
  0x57   :  { %8926 = dma.done.wait [#allocation3], 1024  }
  0x58   :  { %8927 = vsyncadd [#allocation3], 4294966272 }
  0x59   :  { %8928 = dma.done.wait [#allocation6], 4096  }
  0x5a   :  { %8929 = vsyncadd [#allocation6], 4294963200 }
  0x5b   :  { %8930 = dma.done.wait [#allocation9], 8192  }
  0x5c   :  { %8931 = vsyncadd [#allocation9], 4294959104  ;;  %v111_v0 = vld [vmem:[#allocation2] sm:$0xff]  ;;  %v113_v1 = vld [vmem:[#allocation2 + $0x10] sm:$0xff]  ;;  %v11792_v63 = vmov 0   ;;  %vm8951_vm0 = vmmov 0  }
  0x5d   :  { %123 = vadd.xlane.f32.xlu0 %v111_v0  ;;  %127 = vadd.xlane.f32.xlu1 %v113_v1  ;;  %v112_v2 = vld [vmem:[#allocation2 + $0x8] sm:$0xff]  ;;  %v114_v3 = vld [vmem:[#allocation2 + $0x18] sm:$0xff]  ;;  %v115_v4 = vld [vmem:[#allocation2 + $0x20] sm:$0xff]  ;;  %vm3787_vm1 = vcmask 261120   ;;  %vm4576_vm3 = vcmask 130048   ;;  %vm6741_vm5 = vcmask 523264  }
  0x5e   :  { %v116_v5 = vld [vmem:[#allocation2 + $0x28] sm:$0xff]  ;;  %v117_v6 = vld [vmem:[#allocation2 + $0x30] sm:$0xff]  ;;  %v118_v7 = vld [vmem:[#allocation2 + $0x38] sm:$0xff]  ;;  %436 = vmatprep.mubr.bf16.mxu0 %v11792_v63  ;;  %vm6750_vm6 = vcmask 785408  }
  0x5f   :  { %v8506_v8 = vld [vmem:[#allocation5 + $0x4] ss:$12 sps:$4 sm:$0xff]   ;;  %v8508_v9 = vld [vmem:[#allocation5] ss:$12 sps:$4 sm:$0xff]   ;;  %v8509_v10 = vld [vmem:[#allocation5 + $0x1c] ss:$12 sps:$4 sm:$0xff]  }
  0x60   :  { %v8511_v11 = vld [vmem:[#allocation5 + $0x8] ss:$12 sps:$4 sm:$0xff]   ;;  %404 = vmatprep.subr.bf16.mxu0 %v8506_v8  ;;  %v8512_v44 = vld [vmem:[#allocation5 + $0x18] ss:$12 sps:$4 sm:$0xff]   ;;  %v8515_v46 = vld [vmem:[#allocation5 + $0x20] ss:$12 sps:$4 sm:$0xff]  }
  0x61   :  { %125 = vadd.xlane.f32.xlu0 %v112_v2  ;;  %129 = vadd.xlane.f32.xlu1 %v114_v3  ;;  %v8513_v45 = vld [vmem:[#allocation5 + $0x34] ss:$12 sps:$4 sm:$0xff]   ;;  %v8516_v47 = vld [vmem:[#allocation5 + $0x30] ss:$12 sps:$4 sm:$0xff]   ;;  %v8517_v48 = vld [vmem:[#allocation5 + $0x4c] ss:$12 sps:$4 sm:$0xff]  }
  0x62   :  { %405 = vmatpush1.bf16.msra.mxu0 %v8508_v9  ;;  %8229 = vmatprep.subr.bf16.mxu1 %v8511_v11  ;;  %v8519_v49 = vld [vmem:[#allocation5 + $0x38] ss:$12 sps:$4 sm:$0xff]   ;;  %v8520_v50 = vld [vmem:[#allocation5 + $0x48] ss:$12 sps:$4 sm:$0xff]   ;;  %v8523_v52 = vld [vmem:[#allocation5 + $0x50] ss:$12 sps:$4 sm:$0xff]  }
  0x63   :  { %406 = vmatprep.subr.bf16.mxu0 %v8509_v10  ;;  %8230 = vmatpush3.bf16.msra.mxu1 %v8511_v11  ;;  %v8521_v51 = vld [vmem:[#allocation5 + $0x64] ss:$12 sps:$4 sm:$0xff]   ;;  %v8524_v53 = vld [vmem:[#allocation5 + $0x60] ss:$12 sps:$4 sm:$0xff]   ;;  %v8525_v54 = vld [vmem:[#allocation5 + $0x7c] ss:$12 sps:$4 sm:$0xff]  }
  0x64   :  { %8231 = vmatprep.subr.bf16.mxu1 %v8515_v46  ;;  %v8527_v55 = vld [vmem:[#allocation5 + $0x68] ss:$12 sps:$4 sm:$0xff]   ;;  %v8528_v56 = vld [vmem:[#allocation5 + $0x78] ss:$12 sps:$4 sm:$0xff]   ;;  %v8531_v58 = vld [vmem:[#allocation5 + $0x80] ss:$12 sps:$4 sm:$0xff]  }
  0x65   :  { %131 = vadd.xlane.f32.xlu0 %v115_v4  ;;  %133 = vadd.xlane.f32.xlu1 %v116_v5  ;;  %v8529_v57 = vld [vmem:[#allocation5 + $0x94] ss:$12 sps:$4 sm:$0xff]   ;;  %v8532_v59 = vld [vmem:[#allocation5 + $0x90] ss:$12 sps:$4 sm:$0xff]   ;;  %v8533_v60 = vld [vmem:[#allocation5 + $0xac] ss:$12 sps:$4 sm:$0xff]  }
  0x66   :  { %407 = vmatpush1.bf16.msra.mxu0 %v8512_v44  ;;  %v8535_v61 = vld [vmem:[#allocation5 + $0x98] ss:$12 sps:$4 sm:$0xff]   ;;  %v8536_v62 = vld [vmem:[#allocation5 + $0xa8] ss:$12 sps:$4 sm:$0xff]  }
  0x67   :  { %408 = vmatprep.subr.bf16.mxu0 %v8513_v45  ;;  %8232 = vmatpush3.bf16.msra.mxu1 %v8515_v46 }
  0x68   :  { %8233 = vmatprep.subr.bf16.mxu1 %v8519_v49 }
  0x69   :  { %135 = vadd.xlane.f32.xlu0 %v117_v6  ;;  %137 = vadd.xlane.f32.xlu1 %v118_v7 }
  0x6a   :  { %409 = vmatpush1.bf16.msra.mxu0 %v8516_v47 }
  0x6b   :  { %410 = vmatprep.subr.bf16.mxu0 %v8517_v48  ;;  %8234 = vmatpush3.bf16.msra.mxu1 %v8519_v49 }
  0x6c   :  { %8235 = vmatprep.subr.bf16.mxu1 %v8523_v52 }
  0x6e   :  { %411 = vmatpush1.bf16.msra.mxu0 %v8520_v50 }
  0x6f   :  { %412 = vmatprep.subr.bf16.mxu0 %v8521_v51  ;;  %8236 = vmatpush3.bf16.msra.mxu1 %v8523_v52 }
  0x70   :  { %8237 = vmatprep.subr.bf16.mxu1 %v8527_v55 }
  0x72   :  { %413 = vmatpush1.bf16.msra.mxu0 %v8524_v53 }
  0x73   :  { %414 = vmatprep.subr.bf16.mxu0 %v8525_v54  ;;  %8238 = vmatpush3.bf16.msra.mxu1 %v8527_v55 }
  0x74   :  { %8239 = vmatprep.subr.bf16.mxu1 %v8531_v58 }
  0x76   :  { %415 = vmatpush1.bf16.msra.mxu0 %v8528_v56 }
  0x77   :  { %416 = vmatprep.subr.bf16.mxu0 %v8529_v57  ;;  %8240 = vmatpush3.bf16.msra.mxu1 %v8531_v58 }
  0x78   :  { %8241 = vmatprep.subr.bf16.mxu1 %v8535_v61 }
  0x7a   :  { %417 = vmatpush1.bf16.msra.mxu0 %v8532_v59 }
  0x7b   :  { %418 = vmatprep.subr.bf16.mxu0 %v8533_v60  ;;  %8242 = vmatpush3.bf16.msra.mxu1 %v8535_v61 }
  0x7e   :  { %419 = vmatpush1.bf16.msra.mxu0 %v8536_v62 }
  0xea   :  { %v124_v12 = vpop.xlane.xlu0 %123  ;;  %v128_v13 = vpop.xlane.xlu1 %127 }
  0xeb   :  { %v140_v14 = vmul.f32 0.0078125, %v124_v12  ;;  %v142_v15 = vmul.f32 0.0078125, %v128_v13 }
  0xed   :  { %v9087_v16 = vsub.f32 %v111_v0, %v140_v14  ;;  %v9089_v17 = vsub.f32 %v113_v1, %v142_v15  ;;  %v8537_v0 = vld [vmem:[#allocation5 + $0xb0] ss:$12 sps:$4 sm:$0xff]  }
  0xee   :  { %v126_v18 = vpop.xlane.xlu0 %125  ;;  %v130_v19 = vpop.xlane.xlu1 %129  ;;  %8243 = vmatprep.subr.bf16.mxu1 %v8537_v0 }
  0xef   :  { %v141_v20 = vmul.f32 0.0078125, %v126_v18  ;;  %v156_v21 = vmul.f32 %v9087_v16, %v9087_v16  ;;  %v143_v22 = vmul.f32 0.0078125, %v130_v19  ;;  %v158_v23 = vmul.f32 %v9089_v17, %v9089_v17  ;;  %8244 = vmatpush3.bf16.msra.mxu1 %v8537_v0 }
  0xf1   :  { %164 = vadd.xlane.f32.xlu0 %v156_v21  ;;  %v9095_v24 = vsub.f32 %v112_v2, %v141_v20  ;;  %v9097_v25 = vsub.f32 %v114_v3, %v143_v22 }
  0xf2   :  { %v132_v26 = vpop.xlane.xlu0 %131  ;;  %v134_v27 = vpop.xlane.xlu1 %133 }
  0xf3   :  { %v144_v28 = vmul.f32 0.0078125, %v132_v26  ;;  %v157_v29 = vmul.f32 %v9095_v24, %v9095_v24  ;;  %v145_v30 = vmul.f32 0.0078125, %v134_v27  ;;  %v159_v31 = vmul.f32 %v9097_v25, %v9097_v25 }
  0xf5   :  { %168 = vadd.xlane.f32.xlu0 %v158_v23  ;;  %166 = vadd.xlane.f32.xlu1 %v157_v29  ;;  %v9103_v32 = vsub.f32 %v115_v4, %v144_v28  ;;  %v9105_v33 = vsub.f32 %v116_v5, %v145_v30  ;;  %v7863_v30 = vld [vmem:[%s11787_s8] ss:$0 sm:$0xff]  ;;  %s8948_s8 = smov 96  }
  0xf6   :  { %v136_v34 = vpop.xlane.xlu0 %135  ;;  %v138_v35 = vpop.xlane.xlu1 %137 }
  0xf7   :  { %v146_v36 = vmul.f32 0.0078125, %v136_v34  ;;  %v160_v37 = vmul.f32 %v9103_v32, %v9103_v32  ;;  %v147_v38 = vmul.f32 0.0078125, %v138_v35  ;;  %v161_v39 = vmul.f32 %v9105_v33, %v9105_v33 }
  0xf9   :  { %170 = vadd.xlane.f32.xlu1 %v159_v31  ;;  %172 = vadd.xlane.f32.xlu0 %v160_v37  ;;  %v9111_v40 = vsub.f32 %v117_v6, %v146_v36  ;;  %v9113_v41 = vsub.f32 %v118_v7, %v147_v38  ;;  %v7864_v38 = vld [vmem:[%s11788_s9] ss:$0 sm:$0xff]  ;;  %s8949_s9 = smov 32  }
  0xfb   :  { %v162_v42 = vmul.f32 %v9111_v40, %v9111_v40  ;;  %v163_v43 = vmul.f32 %v9113_v41, %v9113_v41 }
  0xfd   :  { %174 = vadd.xlane.f32.xlu1 %v161_v39  ;;  %176 = vadd.xlane.f32.xlu0 %v162_v42 }
 0x101   :  { %178 = vadd.xlane.f32.xlu1 %v163_v43 }
 0x17e   :  { %v165_v1 = vpop.xlane.xlu0 %164 }
 0x17f   :  { %v180_v2 = vmul.f32 0.0078125, %v165_v1 }
 0x181   :  { %v188_v3 = vadd.f32 1e-05, %v180_v2 }
 0x182   :  { %v167_v4 = vpop.xlane.xlu1 %166  ;;  %v169_v5 = vpop.xlane.xlu0 %168 }
 0x183   :  { %8626 = vrsqrt.f32 %v188_v3  ;;  %v181_v6 = vmul.f32 0.0078125, %v167_v4  ;;  %v182_v7 = vmul.f32 0.0078125, %v169_v5 }
 0x185   :  { %v189_v8 = vadd.f32 1e-05, %v181_v6  ;;  %v190_v9 = vadd.f32 1e-05, %v182_v7 }
 0x186   :  { %v171_v10 = vpop.xlane.xlu1 %170  ;;  %v173_v11 = vpop.xlane.xlu0 %172 }
 0x187   :  { %8628 = vrsqrt.f32 %v189_v8  ;;  %v183_v12 = vmul.f32 0.0078125, %v171_v10  ;;  %v184_v13 = vmul.f32 0.0078125, %v173_v11 }
 0x188   :  { %8630 = vrsqrt.f32 %v190_v9 }
 0x189   :  { %v191_v14 = vadd.f32 1e-05, %v183_v12  ;;  %v192_v15 = vadd.f32 1e-05, %v184_v13 }
 0x18a   :  { %v175_v18 = vpop.xlane.xlu1 %174  ;;  %v177_v19 = vpop.xlane.xlu0 %176 }
 0x18b   :  { %8632 = vrsqrt.f32 %v191_v14  ;;  %v185_v20 = vmul.f32 0.0078125, %v175_v18  ;;  %v186_v21 = vmul.f32 0.0078125, %v177_v19 }
 0x18c   :  { %8634 = vrsqrt.f32 %v192_v15 }
 0x18d   :  { %v8627_v22 = vpop.eup %8626  ;;  %v193_v23 = vadd.f32 1e-05, %v185_v20  ;;  %v194_v26 = vadd.f32 1e-05, %v186_v21 }
 0x18e   :  { %v179_v27 = vpop.xlane.xlu1 %178  ;;  %v204_v28 = vmul.f32 %v8627_v22, %v9087_v16 }
 0x18f   :  { %8636 = vrsqrt.f32 %v193_v23  ;;  %v187_v29 = vmul.f32 0.0078125, %v179_v27 }
 0x190   :  { %8638 = vrsqrt.f32 %v194_v26  ;;  %v218_v37 = vmul.f32 %v7863_v30, %v204_v28 }
 0x191   :  { %v8629_v31 = vpop.eup %8628  ;;  %v195_v34 = vadd.f32 1e-05, %v187_v29 }
 0x192   :  { %v8631_v35 = vpop.eup %8630  ;;  %v205_v36 = vmul.f32 %v8629_v31, %v9095_v24  ;;  %v232_v45 = vadd.f32 %v7864_v38, %v218_v37 }
 0x193   :  { %8640 = vrsqrt.f32 %v195_v34  ;;  %v206_v16 = vmul.f32 %v8631_v35, %v9089_v17 }
 0x194   :  { %v219_v39 = vmul.f32 %v7863_v30, %v205_v36 }
 0x195   :  { %v8633_v42 = vpop.eup %8632  ;;  %v220_v43 = vmul.f32 %v7863_v30, %v206_v16 }
 0x196   :  { %v8635_v44 = vpop.eup %8634  ;;  %v233_v46 = vadd.f32 %v7864_v38, %v219_v39  ;;  %v207_v47 = vmul.f32 %v8633_v42, %v9097_v25 }
 0x197   :  { %v208_v48 = vmul.f32 %v8635_v44, %v9103_v32  ;;  %v234_v51 = vadd.f32 %v7864_v38, %v220_v43  ;;  %v11795_v43 = vmov 0.0   ;;  %v8952_v44 = vmov 1983009808  }
 0x198   :  { %v240_v49 = vpack.c.bf16 %v233_v46, %v232_v45  ;;  %v221_v24 = vmul.f32 %v7863_v30, %v207_v47  ;;  %8253 = vmatprep.subr.bf16.mxu1 %v11795_v43  ;;  %8265 = vmatprep.subr.bf16.mxu0 %v11795_v43  ;;  %v654_v45 = vunpack.c.l.s4 %v8952_v44  ;;  %v11794_v46 = vlaneseq }
 0x199   :  { %v8637_v50 = vpop.eup %8636  ;;  %v222_v54 = vmul.f32 %v7863_v30, %v208_v48  ;;  %v9237_v47 = vpack.i.b16 %v11792_v63, %v11792_v63 }
 0x19a   :  { %v8639_v52 = vpop.eup %8638  ;;  %437 = vmatmul.mubr.bf16.vlgmr.msra.gmra.mrb[0].mxu0 %v240_v49  ;;  %8245 = vmatprep.mubr.bf16.mxu1 %v240_v49  ;;  %v235_v53 = vadd.f32 %v7864_v38, %v221_v24  ;;  %v209_v17 = vmul.f32 %v8637_v50, %v9105_v33  ;;  %v655_v49 = vunpack.c.0.s8 %v654_v45  ;;  %v9240_v24 = vshrl.u32 %v11794_v46, 7 }
 0x19b   :  { %446 = vmatprep.mubr.bf16.mxu0 %v11792_v63  ;;  %v210_v55 = vmul.f32 %v8639_v52, %v9111_v40  ;;  %v236_v32 = vadd.f32 %v7864_v38, %v222_v54 }
 0x19c   :  { %v241_v56 = vpack.c.bf16 %v235_v53, %v234_v51  ;;  %v223_v57 = vmul.f32 %v7863_v30, %v209_v17  ;;  %11843 = vst [vmem:[#allocation18_spill] sm:$0xff] %v9240_v24  ;;  %v8953_v51 = vmov 1934713408  }
 0x19d   :  { %v8641_v25 = vpop.eup %8640  ;;  %v224_v60 = vmul.f32 %v7863_v30, %v210_v55  ;;  %v685_v52 = vunpack.c.l.s4 %v8953_v51 }
 0x19e   :  { %8246 = vmatmul.mubr.bf16.vlgmr.msra.gmra.mrb[0].mxu1 %v241_v56  ;;  %v237_v58 = vadd.f32 %v7864_v38, %v223_v57  ;;  %v211_v59 = vmul.f32 %v8641_v25, %v9113_v41 }
 0x19f   :  { %v238_v0 = vadd.f32 %v7864_v38, %v224_v60  ;;  %v686_v25 = vunpack.c.0.s8 %v685_v52 }
 0x1a0   :  { %v242_v61 = vpack.c.bf16 %v237_v58, %v236_v32  ;;  %v225_v62 = vmul.f32 %v7863_v30, %v211_v59 }
 0x1a2   :  { %447 = vmatmul.mubr.bf16.gmra.mrb[4].mxu0 %v241_v56  ;;  %8249 = vmatprep.mubr.bf16.mxu1 %v242_v61  ;;  %v239_v33 = vadd.f32 %v7864_v38, %v225_v62  ;;  %v9245_v56 = vsub.s32 %v655_v49, %v9240_v24 }
 0x1a3   :  { %456 = vmatprep.mubr.bf16.mxu0 %v11792_v63 }
 0x1a4   :  { %v243_v1 = vpack.c.bf16 %v239_v33, %v238_v0 }
 0x1a6   :  { %8250 = vmatmul.mubr.bf16.gmra.mrb[4].mxu1 %v243_v1 }
 0x1a7   :  { %8255 = vmatprep.mubr.msk.bf16.mxu1 %vm8951_vm0, %v11795_v43 }
 0x1aa   :  { %457 = vmatmul.mubr.bf16.gmra.mrb[8].mxu0 %v242_v61 }
 0x1ab   :  { %466 = vmatprep.mubr.bf16.mxu0 %v11792_v63 }
 0x1b2   :  { %467 = vmatmul.mubr.bf16.gmra.mrb[12].mxu0 %v243_v1 }
 0x1b3   :  { %8267 = vmatprep.mubr.msk.bf16.mxu0 %vm8951_vm0, %v11795_v43 }
 0x26d   :  { %v438_v40 = vpop.f32.mrb[0].mxu0 }
 0x26e   :  { %v440_v2 = vpop.f32.mrb[1].mxu0 }
 0x26f   :  { %v442_v3 = vpop.f32.mrb[2].mxu0 }
 0x270   :  { %v9137_v4 = vpack.c.bf16 %v442_v3, %v438_v40  ;;  %v444_v41 = vpop.f32.mrb[3].mxu0  ;;  %v9253_v40 = vsub.s32 %v686_v25, %v9240_v24 }
 0x271   :  { %v9139_v5 = vpack.c.bf16 %v444_v41, %v440_v2  ;;  %v8247_v6 = vpop.f32.mrb[0].mxu1 }
 0x272   :  { %566 = vrot.lane.b32.xlu0 %v9137_v4, %s8944_s0  ;;  %558 = vrot.lane.b32.xlu1 %v9137_v4, %s8948_s8  ;;  %v511_v7 = vpop.f32.mrb[1].mxu1  ;;  %v586_v54 = vshrl.u32 %v9137_v4, 16 }
 0x273   :  { %v8248_v8 = vpop.f32.mrb[2].mxu1 }
 0x274   :  { %v9145_v9 = vpack.c.bf16 %v8248_v8, %v8247_v6  ;;  %v514_v10 = vpop.f32.mrb[3].mxu1 }
 0x275   :  { %v9147_v11 = vpack.c.bf16 %v514_v10, %v511_v7  ;;  %v448_v12 = vpop.f32.mrb[4].mxu0 }
 0x276   :  { %11841 = vst [vmem:[#allocation16_spill] sm:$0xff] %v9145_v9  ;;  %574 = vrot.lane.b32.xlu1 %v9137_v4, %s8949_s9  ;;  %1632 = vrot.lane.b32.xlu0 %v9139_v5, %s8948_s8  ;;  %v450_v13 = vpop.f32.mrb[5].mxu0 }
 0x277   :  { %v452_v14 = vpop.f32.mrb[6].mxu0 }
 0x278   :  { %v9153_v15 = vpack.c.bf16 %v452_v14, %v448_v12  ;;  %v454_v18 = vpop.f32.mrb[7].mxu0 }
 0x279   :  { %v9155_v19 = vpack.c.bf16 %v454_v18, %v450_v13  ;;  %v8251_v20 = vpop.f32.mrb[4].mxu1 }
 0x27a   :  { %1640 = vrot.lane.b32.xlu1 %v9139_v5, %s8944_s0  ;;  %560 = vrot.lane.b32.xlu0 %v9153_v15, %s8948_s8  ;;  %v527_v21 = vpop.f32.mrb[5].mxu1  ;;  %v608_v51 = vshrl.u32 %v9153_v15, 16 }
 0x27b   :  { %v8252_v22 = vpop.f32.mrb[6].mxu1  ;;  %v1676_v52 = vshrl.u32 %v9155_v19, 16 }
 0x27c   :  { %v9161_v23 = vpack.c.bf16 %v8252_v22, %v8251_v20  ;;  %v530_v26 = vpop.f32.mrb[7].mxu1 }
 0x27d   :  { %v9163_v27 = vpack.c.bf16 %v530_v26, %v527_v21  ;;  %v458_v28 = vpop.f32.mrb[8].mxu0  ;;  %v1660_v26 = vshrl.u32 %v9139_v5, 16 }
 0x27e   :  { %11842 = vst [vmem:[#allocation17_spill] sm:$0xff] %v9161_v23  ;;  %1648 = vrot.lane.b32.xlu1 %v9139_v5, %s8949_s9  ;;  %576 = vrot.lane.b32.xlu0 %v9153_v15, %s8949_s9  ;;  %v460_v29 = vpop.f32.mrb[9].mxu0 }
 0x27f   :  { %v462_v30 = vpop.f32.mrb[10].mxu0 }
 0x280   :  { %v9169_v31 = vpack.c.bf16 %v462_v30, %v458_v28  ;;  %v464_v34 = vpop.f32.mrb[11].mxu0 }
 0x281   :  { %v9171_v35 = vpack.c.bf16 %v464_v34, %v460_v29 }
 0x282   :  { %568 = vrot.lane.b32.xlu1 %v9153_v15, %s8944_s0  ;;  %1634 = vrot.lane.b32.xlu0 %v9155_v19, %s8948_s8 }
 0x285   :  { %v468_v36 = vpop.f32.mrb[12].mxu0 }
 0x286   :  { %1642 = vrot.lane.b32.xlu1 %v9155_v19, %s8944_s0  ;;  %1650 = vrot.lane.b32.xlu0 %v9155_v19, %s8949_s9  ;;  %v470_v37 = vpop.f32.mrb[13].mxu0 }
 0x287   :  { %v472_v38 = vpop.f32.mrb[14].mxu0 }
 0x288   :  { %v9181_v16 = vpack.c.bf16 %v472_v38, %v468_v36  ;;  %v474_v39 = vpop.f32.mrb[15].mxu0 }
 0x289   :  { %v9183_v42 = vpack.c.bf16 %v474_v39, %v470_v37 }
 0x28a   :  { %570 = vrot.lane.b32.xlu1 %v9169_v31, %s8944_s0  ;;  %562 = vrot.lane.b32.xlu0 %v9169_v31, %s8948_s8 }
 0x28e   :  { %1644 = vrot.lane.b32.xlu0 %v9171_v35, %s8944_s0  ;;  %1636 = vrot.lane.b32.xlu1 %v9171_v35, %s8948_s8 }
 0x292   :  { %1652 = vrot.lane.b32.xlu1 %v9171_v35, %s8949_s9  ;;  %1646 = vrot.lane.b32.xlu0 %v9183_v42, %s8944_s0 }
 0x296   :  { %578 = vrot.lane.b32.xlu0 %v9169_v31, %s8949_s9  ;;  %1638 = vrot.lane.b32.xlu1 %v9183_v42, %s8948_s8 }
 0x29a   :  { %572 = vrot.lane.b32.xlu0 %v9181_v16, %s8944_s0  ;;  %1654 = vrot.lane.b32.xlu1 %v9183_v42, %s8949_s9 }
 0x29e   :  { %2700 = vrot.lane.b32.xlu0 %v9147_v11, %s8948_s8  ;;  %564 = vrot.lane.b32.xlu1 %v9181_v16, %s8948_s8 }
 0x2a2   :  { %2710 = vrot.lane.b32.xlu0 %v9145_v9, %s8944_s0  ;;  %580 = vrot.lane.b32.xlu1 %v9181_v16, %s8949_s9 }
 0x2a6   :  { %2704 = vrot.lane.b32.xlu0 %v9163_v27, %s8948_s8  ;;  %2708 = vrot.lane.b32.xlu1 %v9147_v11, %s8944_s0 }
 0x2aa   :  { %2716 = vrot.lane.b32.xlu1 %v9147_v11, %s8949_s9 }
 0x2ae   :  { %2702 = vrot.lane.b32.xlu1 %v9145_v9, %s8948_s8 }
 0x2b2   :  { %2718 = vrot.lane.b32.xlu1 %v9145_v9, %s8949_s9 }
 0x2b6   :  { %2712 = vrot.lane.b32.xlu1 %v9163_v27, %s8944_s0 }
 0x2ba   :  { %2720 = vrot.lane.b32.xlu1 %v9163_v27, %s8949_s9 }
 0x2be   :  { %2706 = vrot.lane.b32.xlu1 %v9161_v23, %s8948_s8 }
 0x2e4   :  { %v559_v48 = vpop.permute.xlu1 %558  ;;  %v567_v17 = vpop.permute.xlu0 %566 }
 0x2e5   :  { %v584_v50 = vpack.i.b16 %v559_v48, %v9137_v4  ;;  %v587_v53 = vshrl.u32 %v559_v48, 16  ;;  %v594_v59 = vshrl.u32 %v567_v17, 16 }
 0x2e7   :  { %v652_v57 = vcombine.high %v584_v50, %v9237_v47  ;;  %v588_v58 = vpack.i.b16 %v587_v53, %v586_v54  ;;  %v659_v33 = vrot.slane %v584_v50, %v9245_v56  ;;  %v624_v54 = vshrl.u32 %v9169_v31, 16 }
 0x2e8   :  { %v575_v55 = vpop.permute.xlu1 %574  ;;  %v1633_v8 = vpop.permute.xlu0 %1632 }
 0x2e9   :  { %v592_v32 = vpack.i.b16 %v575_v55, %v567_v17  ;;  %v595_v60 = vshrl.u32 %v575_v55, 16  ;;  %v666_v1 = vrot.slane %v652_v57, %v9245_v56  ;;  %v718_v4 = vcombine.high %v588_v58, %v9237_v47 }
 0x2ea   :  { %v725_v41 = vrot.slane %v588_v58, %v9245_v56  ;;  %v1661_v28 = vshrl.u32 %v1633_v8, 16  ;;  %v1658_v50 = vpack.i.b16 %v1633_v8, %v9139_v5  ;;  %v1692_v55 = vshrl.u32 %v9171_v35, 16 }
 0x2eb   :  { %v667_v61 = vcombine.high %v592_v32, %v9237_v47  ;;  %v674_v62 = vrot.slane %v592_v32, %v9245_v56  ;;  %v596_v0 = vpack.i.b16 %v595_v60, %v594_v59  ;;  %v732_v22 = vrot.slane %v718_v4, %v9245_v56 }
 0x2ec   :  { %v9256_v3 = vpop.permute.xlu1 %1640  ;;  %v561_v49 = vpop.permute.xlu0 %560  ;;  %v1662_v17 = vpack.i.b16 %v1661_v28, %v1660_v26 }
 0x2ed   :  { %v681_v2 = vrot.slane %v667_v61, %v9245_v56  ;;  %v733_v6 = vcombine.high %v596_v0, %v9237_v47  ;;  %v740_v7 = vrot.slane %v596_v0, %v9245_v56  ;;  %v682_v10 = vcombine.low %v659_v33, %v674_v62 }
 0x2ee   :  { %v683_v12 = vcombine.high %v659_v33, %v674_v62  ;;  %v1720_v33 = vcombine.high %v1658_v50, %v9237_v47 }
 0x2ef   :  { %v698_v13 = vcombine.low %v666_v1, %v681_v2  ;;  %v699_v14 = vcombine.high %v666_v1, %v681_v2  ;;  %v747_v18 = vrot.slane %v733_v6, %v9245_v56  ;;  %v748_v20 = vcombine.low %v725_v41, %v740_v7 }
 0x2f0   :  { %v749_v21 = vcombine.high %v725_v41, %v740_v7  ;;  %v690_v30 = vrot.slane %v682_v10, %v9253_v40  ;;  %v697_v34 = vrot.slane %v683_v12, %v9253_v40  ;;  %v1649_v38 = vpop.permute.xlu1 %1648  ;;  %v1727_v41 = vrot.slane %v1658_v50, %v9245_v56  ;;  %v577_v10 = vpop.permute.xlu0 %576 }
 0x2f1   :  { %v706_v36 = vrot.slane %v698_v13, %v9253_v40  ;;  %v713_v37 = vrot.slane %v699_v14, %v9253_v40  ;;  %v756_v39 = vrot.slane %v748_v20, %v9253_v40  ;;  %v764_v45 = vcombine.low %v732_v22, %v747_v18 }
 0x2f2   :  { %v763_v44 = vrot.slane %v749_v21, %v9253_v40  ;;  %v765_v48 = vcombine.high %v732_v22, %v747_v18  ;;  %v1180_v25 = vcombine.low %v690_v30, %v697_v34  ;;  %v7889_v32 = vcombine.high %v690_v30, %v697_v34 }
 0x2f3   :  { %v1196_v58 = vcombine.low %v706_v36, %v713_v37  ;;  %v7890_v59 = vcombine.high %v706_v36, %v713_v37  ;;  %v772_v60 = vrot.slane %v764_v45, %v9253_v40  ;;  %v1666_v62 = vpack.i.b16 %v1649_v38, %v9256_v3 }
 0x2f4   :  { %v779_v5 = vrot.slane %v765_v48, %v9253_v40  ;;  %v1230_v61 = vcombine.low %v756_v39, %v763_v44  ;;  %v7891_v0 = vcombine.high %v756_v39, %v763_v44  ;;  %v569_v1 = vpop.permute.xlu1 %568  ;;  %v1786_v6 = vcombine.high %v1662_v17, %v9237_v47 }
 0x2f5   :  { %v1668_v7 = vshrl.u32 %v9256_v3, 16  ;;  %v1669_v8 = vshrl.u32 %v1649_v38, 16  ;;  %v1187_v12 = vrot.slane %v1180_v25, %v9245_v56  ;;  %v1195_v13 = vrot.slane %v7889_v32, %v9245_v56 }
 0x2f6   :  { %v1203_v14 = vrot.slane %v1196_v58, %v9245_v56  ;;  %v1211_v18 = vrot.slane %v7890_v59, %v9245_v56  ;;  %v1237_v20 = vrot.slane %v1230_v61, %v9245_v56  ;;  %v1246_v21 = vcombine.low %v772_v60, %v779_v5 }
 0x2f7   :  { %v1735_v22 = vcombine.high %v1666_v62, %v9237_v47  ;;  %v614_v26 = vpack.i.b16 %v577_v10, %v569_v1  ;;  %v1245_v28 = vrot.slane %v7891_v0, %v9245_v56  ;;  %v7892_v30 = vcombine.high %v772_v60, %v779_v5  ;;  %v9305_v60 = vpop.permute.xlu0 %1634 }
 0x2f8   :  { %v609_v3 = vshrl.u32 %v561_v49, 16  ;;  %v616_v34 = vshrl.u32 %v569_v1, 16  ;;  %v1734_v36 = vrot.slane %v1720_v33, %v9245_v56  ;;  %v606_v37 = vpack.i.b16 %v561_v49, %v9153_v15 }
 0x2f9   :  { %v1670_v38 = vpack.i.b16 %v1669_v8, %v1668_v7  ;;  %v1742_v39 = vrot.slane %v1666_v62, %v9245_v56  ;;  %v1212_v44 = vcombine.low %v1187_v12, %v1195_v13  ;;  %v1220_v45 = vcombine.low %v1203_v14, %v1211_v18 }
 0x2fa   :  { %v1793_v48 = vrot.slane %v1662_v17, %v9245_v56  ;;  %v617_v50 = vshrl.u32 %v577_v10, 16  ;;  %v9300_v25 = vrot.slane %v1246_v21, %v9245_v56  ;;  %v1800_v32 = vrot.slane %v1786_v6, %v9245_v56 }
 0x2fb   :  { %v1749_v58 = vrot.slane %v1735_v22, %v9245_v56  ;;  %v799_v59 = vcombine.high %v614_v26, %v9237_v47  ;;  %v9308_v15 = vrot.slane %v7892_v30, %v9245_v56  ;;  %v1262_v49 = vcombine.low %v1237_v20, %v1245_v28  ;;  %v1643_v30 = vpop.permute.xlu1 %1642 }
 0x2fc   :  { %v610_v5 = vpack.i.b16 %v609_v3, %v608_v51  ;;  %v618_v61 = vpack.i.b16 %v617_v50, %v616_v34  ;;  %v784_v17 = vcombine.high %v606_v37, %v9237_v47  ;;  %v1750_v62 = vcombine.low %v1727_v41, %v1742_v39  ;;  %v1651_v3 = vpop.permute.xlu0 %1650 }
 0x2fd   :  { %v1751_v0 = vcombine.high %v1727_v41, %v1742_v39  ;;  %v1801_v33 = vcombine.high %v1670_v38, %v9237_v47  ;;  %v9313_v1 = vrot.slane %v1212_v44, %v9253_v40  ;;  %v9316_v6 = vrot.slane %v1220_v45, %v9253_v40 }
 0x2fe   :  { %v1808_v7 = vrot.slane %v1670_v38, %v9245_v56  ;;  %v806_v8 = vrot.slane %v614_v26, %v9245_v56  ;;  %v791_v10 = vrot.slane %v606_v37, %v9245_v56  ;;  %v1766_v51 = vcombine.low %v1734_v36, %v1749_v58 }
 0x2ff   :  { %11844 = vst [vmem:[#allocation19_spill] sm:$0xff] %v9313_v1  ;;  %11845 = vst [vmem:[#allocation20_spill] sm:$0xff] %v9316_v6  ;;  %v1767_v12 = vcombine.high %v1734_v36, %v1749_v58  ;;  %v813_v13 = vrot.slane %v799_v59, %v9245_v56  ;;  %v9323_v41 = vrot.slane %v1262_v49, %v9253_v40  ;;  %v1684_v63 = vshrl.u32 %v1643_v30, 16 }
 0x300   :  { %v850_v18 = vcombine.high %v610_v5, %v9237_v47  ;;  %v865_v20 = vcombine.high %v618_v61, %v9237_v47  ;;  %v798_v21 = vrot.slane %v784_v17, %v9245_v56  ;;  %v9331_v22 = vrot.slane %v1750_v62, %v9253_v40 }
 0x301   :  { %11846 = vst [vmem:[#allocation21_spill] sm:$0xff] %v9323_v41  ;;  %v9334_v26 = vrot.slane %v1751_v0, %v9253_v40  ;;  %v1815_v28 = vrot.slane %v1801_v33, %v9245_v56  ;;  %v1816_v34 = vcombine.low %v1793_v48, %v1808_v7  ;;  %v814_v36 = vcombine.low %v791_v10, %v806_v8 }
 0x302   :  { %v815_v37 = vcombine.high %v791_v10, %v806_v8  ;;  %v872_v38 = vrot.slane %v618_v61, %v9245_v56  ;;  %v9339_v39 = vrot.slane %v1766_v51, %v9253_v40  ;;  %v9342_v44 = vrot.slane %v1767_v12, %v9253_v40 }
 0x303   :  { %v830_v45 = vcombine.low %v798_v21, %v813_v13  ;;  %v831_v50 = vcombine.high %v798_v21, %v813_v13  ;;  %v857_v58 = vrot.slane %v610_v5, %v9245_v56  ;;  %v864_v59 = vrot.slane %v850_v18, %v9245_v56  ;;  %v9360_v13 = vpop.permute.xlu1 %570  ;;  %v563_v18 = vpop.permute.xlu0 %562 }
 0x304   :  { %v1817_v49 = vcombine.high %v1793_v48, %v1808_v7  ;;  %v879_v17 = vrot.slane %v865_v20, %v9245_v56  ;;  %v1832_v62 = vcombine.low %v1800_v32, %v1815_v28  ;;  %v1833_v0 = vcombine.high %v1800_v32, %v1815_v28 }
 0x305   :  { %v9352_v8 = vrot.slane %v1816_v34, %v9253_v40  ;;  %v822_v10 = vrot.slane %v814_v36, %v9253_v40  ;;  %v829_v5 = vrot.slane %v815_v37, %v9253_v40  ;;  %v880_v51 = vcombine.low %v857_v58, %v872_v38 }
 0x306   :  { %v838_v7 = vrot.slane %v830_v45, %v9253_v40  ;;  %v845_v32 = vrot.slane %v831_v50, %v9253_v40  ;;  %v881_v12 = vcombine.high %v857_v58, %v872_v38  ;;  %v9363_v20 = vrot.slane %v1817_v49, %v9253_v40 }
 0x307   :  { %v896_v28 = vcombine.low %v864_v59, %v879_v17  ;;  %v897_v34 = vcombine.high %v864_v59, %v879_v17  ;;  %v9368_v36 = vrot.slane %v1832_v62, %v9253_v40  ;;  %v9371_v37 = vrot.slane %v1833_v0, %v9253_v40  ;;  %v9386_v43 = vpop.permute.xlu0 %1644 }
 0x308   :  { %v1674_v38 = vpack.i.b16 %v9305_v60, %v9155_v19  ;;  %v1677_v45 = vshrl.u32 %v9305_v60, 16  ;;  %v888_v50 = vrot.slane %v880_v51, %v9253_v40  ;;  %v1280_v58 = vcombine.low %v822_v10, %v829_v5 }
 0x309   :  { %v7893_v49 = vcombine.high %v822_v10, %v829_v5  ;;  %v895_v46 = vrot.slane %v881_v12, %v9253_v40  ;;  %v1296_v29 = vcombine.low %v838_v7, %v845_v32  ;;  %v1682_v59 = vpack.i.b16 %v1651_v3, %v1643_v30  ;;  %v1637_v12 = vpop.permute.xlu1 %1636 }
 0x30a   :  { %v1685_v17 = vshrl.u32 %v1651_v3, 16  ;;  %v904_v0 = vrot.slane %v896_v28, %v9253_v40  ;;  %v911_v57 = vrot.slane %v897_v34, %v9253_v40  ;;  %v7894_v53 = vcombine.high %v838_v7, %v845_v32 }
 0x30b   :  { %v1852_v51 = vcombine.high %v1674_v38, %v9237_v47  ;;  %v1867_v10 = vcombine.high %v1682_v59, %v9237_v47  ;;  %v625_v5 = vshrl.u32 %v563_v18, 16  ;;  %v9389_v30 = vrot.slane %v1280_v58, %v9245_v56 }
 0x30c   :  { %v1678_v3 = vpack.i.b16 %v1677_v45, %v1676_v52  ;;  %v1686_v28 = vpack.i.b16 %v1685_v17, %v1684_v63  ;;  %v1874_v7 = vrot.slane %v1682_v59, %v9245_v56  ;;  %v9395_v32 = vrot.slane %v7893_v49, %v9245_v56 }
 0x30d   :  { %11847 = vst [vmem:[#allocation22_spill] sm:$0xff] %v9389_v30  ;;  %v9398_v34 = vrot.slane %v1296_v29, %v9245_v56  ;;  %v1330_v14 = vcombine.low %v888_v50, %v895_v46  ;;  %v7895_v4 = vcombine.high %v888_v50, %v895_v46  ;;  %v9401_v60 = vrot.slane %v7894_v53, %v9245_v56  ;;  %v1653_v17 = vpop.permute.xlu1 %1652 }
 0x30e   :  { %11848 = vst [vmem:[#allocation23_spill] sm:$0xff] %v9395_v32  ;;  %v1346_v62 = vcombine.low %v904_v0, %v911_v57  ;;  %v1859_v58 = vrot.slane %v1674_v38, %v9245_v56  ;;  %v1881_v19 = vrot.slane %v1867_v10, %v9245_v56  ;;  %v7896_v52 = vcombine.high %v904_v0, %v911_v57 }
 0x30f   :  { %v1866_v63 = vrot.slane %v1852_v51, %v9245_v56  ;;  %v622_v45 = vpack.i.b16 %v563_v18, %v9169_v31  ;;  %v626_v49 = vpack.i.b16 %v625_v5, %v624_v54  ;;  %v1933_v46 = vcombine.high %v1686_v28, %v9237_v47  ;;  %v9420_v31 = vpop.permute.xlu0 %1646 }
 0x310   :  { %v1882_v29 = vcombine.low %v1859_v58, %v1874_v7  ;;  %v1883_v59 = vcombine.high %v1859_v58, %v1874_v7  ;;  %v1940_v53 = vrot.slane %v1686_v28, %v9245_v56  ;;  %v9414_v38 = vrot.slane %v1330_v14, %v9245_v56 }
 0x311   :  { %v9417_v57 = vrot.slane %v7895_v4, %v9245_v56  ;;  %v1918_v18 = vcombine.high %v1678_v3, %v9237_v47  ;;  %v1925_v0 = vrot.slane %v1678_v3, %v9245_v56  ;;  %v1898_v51 = vcombine.low %v1866_v63, %v1881_v19 }
 0x312   :  { %11849 = vst [vmem:[#allocation24_spill] sm:$0xff] %v9414_v38  ;;  %v1899_v10 = vcombine.high %v1866_v63, %v1881_v19  ;;  %v9426_v5 = vrot.slane %v1346_v62, %v9245_v56  ;;  %v9429_v14 = vrot.slane %v7896_v52, %v9245_v56  ;;  %v916_v4 = vcombine.high %v622_v45, %v9237_v47 }
 0x313   :  { %11850 = vst [vmem:[#allocation25_spill] sm:$0xff] %v9417_v57  ;;  %v982_v28 = vcombine.high %v626_v49, %v9237_v47  ;;  %v9434_v7 = vrot.slane %v1882_v29, %v9253_v40  ;;  %v9437_v58 = vrot.slane %v1883_v59, %v9253_v40  ;;  %v1947_v3 = vrot.slane %v1933_v46, %v9245_v56 }
 0x314   :  { %11851 = vst [vmem:[#allocation26_spill] sm:$0xff] %v9426_v5  ;;  %v1948_v50 = vcombine.low %v1925_v0, %v1940_v53  ;;  %v1932_v19 = vrot.slane %v1918_v18, %v9245_v56  ;;  %v1949_v52 = vcombine.high %v1925_v0, %v1940_v53  ;;  %v1693_v63 = vshrl.u32 %v1637_v12, 16  ;;  %v1639_v0 = vpop.permute.xlu1 %1638 }
 0x315   :  { %v9444_v54 = vrot.slane %v1898_v51, %v9253_v40  ;;  %v9447_v33 = vrot.slane %v1899_v10, %v9253_v40  ;;  %v632_v29 = vshrl.u32 %v9360_v13, 16  ;;  %v1690_v59 = vpack.i.b16 %v1637_v12, %v9171_v35  ;;  %v579_v51 = vpop.permute.xlu0 %578 }
 0x316   :  { %v9452_v46 = vrot.slane %v622_v45, %v9245_v56  ;;  %v9455_v61 = vrot.slane %v916_v4, %v9245_v56  ;;  %v9458_v18 = vrot.slane %v626_v49, %v9245_v56  ;;  %v1698_v53 = vpack.i.b16 %v1653_v17, %v9386_v43 }
 0x317   :  { %v9462_v10 = vrot.slane %v1948_v50, %v9253_v40  ;;  %v1964_v62 = vcombine.low %v1932_v19, %v1947_v3  ;;  %v9467_v45 = vrot.slane %v982_v28, %v9245_v56  ;;  %v9470_v4 = vrot.slane %v1949_v52, %v9253_v40 }
 0x318   :  { %v1965_v21 = vcombine.high %v1932_v19, %v1947_v3  ;;  %v1694_v49 = vpack.i.b16 %v1693_v63, %v1692_v55  ;;  %v1701_v48 = vshrl.u32 %v1653_v17, 16  ;;  %v1706_v23 = vpack.i.b16 %v1639_v0, %v9183_v42 }
 0x319   :  { %v630_v12 = vpack.i.b16 %v579_v51, %v9360_v13  ;;  %v1984_v28 = vcombine.high %v1690_v59, %v9237_v47  ;;  %v1700_v52 = vshrl.u32 %v9386_v43, 16  ;;  %v1999_v3 = vcombine.high %v1698_v53, %v9237_v47 }
 0x31a   :  { %v1709_v19 = vshrl.u32 %v1639_v0, 16  ;;  %v9484_v35 = vrot.slane %v1964_v62, %v9253_v40  ;;  %v2006_v17 = vrot.slane %v1698_v53, %v9245_v56  ;;  %v633_v63 = vshrl.u32 %v579_v51, 16 }
 0x31b   :  { %v9490_v2 = vrot.slane %v1965_v21, %v9253_v40  ;;  %v2050_v43 = vcombine.high %v1694_v49, %v9237_v47  ;;  %v1702_v50 = vpack.i.b16 %v1701_v48, %v1700_v52  ;;  %v1991_v62 = vrot.slane %v1690_v59, %v9245_v56 }
 0x31c   :  { %v2116_v24 = vcombine.high %v1706_v23, %v9237_v47  ;;  %v931_v55 = vcombine.high %v630_v12, %v9237_v47  ;;  %v1998_v53 = vrot.slane %v1984_v28, %v9245_v56  ;;  %v2057_v21 = vrot.slane %v1694_v49, %v9245_v56 }
 0x31d   :  { %v2013_v51 = vrot.slane %v1999_v3, %v9245_v56  ;;  %v11852_v13 = vshrl.u32 %v9183_v42, 16  ;;  %v2014_v57 = vcombine.low %v1991_v62, %v2006_v17  ;;  %v2015_v48 = vcombine.high %v1991_v62, %v2006_v17 }
 0x31e   :  { %v634_v52 = vpack.i.b16 %v633_v63, %v632_v29  ;;  %v938_v0 = vrot.slane %v630_v12, %v9245_v56  ;;  %v9507_v59 = vrot.slane %v2050_v43, %v9245_v56  ;;  %v2072_v38 = vrot.slane %v1702_v50, %v9245_v56 }
 0x31f   :  { %v1710_v9 = vpack.i.b16 %v1709_v19, %v11852_v13  ;;  %v9512_v28 = vrot.slane %v1706_v23, %v9245_v56  ;;  %v2065_v49 = vcombine.high %v1702_v50, %v9237_v47  ;;  %v9516_v42 = vrot.slane %v2116_v24, %v9245_v56 }
 0x320   :  { %v945_v3 = vrot.slane %v931_v55, %v9245_v56  ;;  %v997_v29 = vcombine.high %v634_v52, %v9237_v47  ;;  %v2030_v12 = vcombine.low %v1998_v53, %v2013_v51  ;;  %v2031_v19 = vcombine.high %v1998_v53, %v2013_v51 }
 0x321   :  { %v2182_v17 = vcombine.high %v1710_v9, %v9237_v47  ;;  %v1004_v63 = vrot.slane %v634_v52, %v9245_v56  ;;  %v9523_v13 = vrot.slane %v2014_v57, %v9253_v40  ;;  %v9526_v23 = vrot.slane %v2015_v48, %v9253_v40 }
 0x322   :  { %v946_v50 = vcombine.low %v9452_v46, %v938_v0  ;;  %v947_v24 = vcombine.high %v9452_v46, %v938_v0  ;;  %v2080_v43 = vcombine.low %v2057_v21, %v2072_v38  ;;  %v962_v55 = vcombine.low %v9455_v61, %v945_v3 }
 0x323   :  { %11853 = vst [vmem:[#allocation27_spill] sm:$0xff] %v9523_v13  ;;  %11854 = vst [vmem:[#allocation28_spill] sm:$0xff] %v9526_v23  ;;  %v963_v62 = vcombine.high %v9455_v61, %v945_v3  ;;  %v1011_v53 = vrot.slane %v997_v29, %v9245_v56  ;;  %v2081_v51 = vcombine.high %v2057_v21, %v2072_v38 }
 0x324   :  { %v9534_v52 = vrot.slane %v1710_v9, %v9245_v56  ;;  %v1012_v57 = vcombine.low %v9458_v18, %v1004_v63  ;;  %v1013_v48 = vcombine.high %v9458_v18, %v1004_v63  ;;  %v9539_v32 = vrot.slane %v2030_v12, %v9253_v40 }
 0x325   :  { %v9542_v46 = vrot.slane %v2031_v19, %v9253_v40  ;;  %v2079_v0 = vrot.slane %v2065_v49, %v9245_v56  ;;  %v9546_v61 = vrot.slane %v2182_v17, %v9245_v56  ;;  %v954_v21 = vrot.slane %v946_v50, %v9253_v40 }
 0x326   :  { %v961_v18 = vrot.slane %v947_v24, %v9253_v40  ;;  %v9555_v3 = vrot.slane %v2080_v43, %v9253_v40  ;;  %v970_v29 = vrot.slane %v962_v55, %v9253_v40  ;;  %v977_v49 = vrot.slane %v963_v62, %v9253_v40 }
 0x327   :  { %v1028_v12 = vcombine.low %v9467_v45, %v1011_v53  ;;  %v9561_v19 = vrot.slane %v2081_v51, %v9253_v40  ;;  %v1020_v17 = vrot.slane %v1012_v57, %v9253_v40  ;;  %v1027_v63 = vrot.slane %v1013_v48, %v9253_v40 }
 0x328   :  { %v1029_v50 = vcombine.high %v9467_v45, %v1011_v53  ;;  %v2096_v24 = vcombine.low %v9507_v59, %v2079_v0  ;;  %v2097_v43 = vcombine.high %v9507_v59, %v2079_v0  ;;  %v11855_v55 = vcombine.low %v9339_v39, %v9342_v44 }
 0x329   :  { %v11856_v51 = vcombine.high %v9339_v39, %v9342_v44  ;;  %v1380_v38 = vcombine.low %v954_v21, %v961_v18  ;;  %v7897_v57 = vcombine.high %v954_v21, %v961_v18  ;;  %v11857_v45 = vcombine.low %v9331_v22, %v9334_v26  ;;  %v1655_v21 = vpop.permute.xlu1 %1654 }
 0x32a   :  { %v2271_v62 = vrot.slane %v11855_v55, %v9245_v56  ;;  %v11858_v59 = vcombine.high %v9331_v22, %v9334_v26  ;;  %v1036_v0 = vrot.slane %v1028_v12, %v9253_v40  ;;  %v1396_v55 = vcombine.low %v970_v29, %v977_v49 }
 0x32b   :  { %v2279_v9 = vrot.slane %v11856_v51, %v9245_v56  ;;  %v2255_v53 = vrot.slane %v11857_v45, %v9245_v56  ;;  %v7898_v23 = vcombine.high %v970_v29, %v977_v49  ;;  %v11859_v39 = vcombine.low %v9352_v8, %v9363_v20 }
 0x32c   :  { %v2263_v48 = vrot.slane %v11858_v59, %v9245_v56  ;;  %v1043_v18 = vrot.slane %v1029_v50, %v9253_v40  ;;  %v1430_v51 = vcombine.low %v1020_v17, %v1027_v63  ;;  %v11860_v45 = vcombine.high %v9352_v8, %v9363_v20 }
 0x32d   :  { %v2305_v44 = vrot.slane %v11859_v39, %v9245_v56  ;;  %v2314_v22 = vcombine.low %v9368_v36, %v9371_v37  ;;  %v7899_v29 = vcombine.high %v1020_v17, %v1027_v63  ;;  %v2288_v49 = vcombine.low %v2271_v62, %v2279_v9 }
 0x32e   :  { %v2313_v13 = vrot.slane %v11860_v45, %v9245_v56  ;;  %v7908_v12 = vcombine.high %v9368_v36, %v9371_v37  ;;  %v1387_v59 = vrot.slane %v1380_v38, %v9245_v56  ;;  %v1395_v50 = vrot.slane %v7897_v57, %v9245_v56 }
 0x32f   :  { %v2321_v39 = vrot.slane %v2314_v22, %v9245_v56  ;;  %v1714_v8 = vpack.i.b16 %v1655_v21, %v9420_v31  ;;  %v2280_v20 = vcombine.low %v2255_v53, %v2263_v48  ;;  %v1717_v5 = vshrl.u32 %v1655_v21, 16 }
 0x330   :  { %v2329_v45 = vrot.slane %v7908_v12, %v9245_v56  ;;  %v2330_v30 = vcombine.low %v2305_v44, %v2313_v13  ;;  %v1403_v17 = vrot.slane %v1396_v55, %v9245_v56  ;;  %v1411_v9 = vrot.slane %v7898_v23, %v9245_v56 }
 0x331   :  { %v1437_v36 = vrot.slane %v1430_v51, %v9245_v56  ;;  %v1446_v37 = vcombine.low %v1036_v0, %v1043_v18  ;;  %v1445_v38 = vrot.slane %v7899_v29, %v9245_v56  ;;  %v7900_v63 = vcombine.high %v1036_v0, %v1043_v18  ;;  %v565_v18 = vpop.permute.xlu1 %564 }
 0x332   :  { %v9610_v62 = vrot.slane %v2288_v49, %v9253_v40  ;;  %v2338_v57 = vcombine.low %v2321_v39, %v2329_v45  ;;  %v9613_v53 = vrot.slane %v2096_v24, %v9253_v40  ;;  %v2131_v48 = vcombine.high %v1714_v8, %v9237_v47 }
 0x333   :  { %v2138_v23 = vrot.slane %v1714_v8, %v9245_v56  ;;  %v9620_v55 = vrot.slane %v2280_v20, %v9253_v40  ;;  %v9623_v44 = vrot.slane %v2330_v30, %v9253_v40  ;;  %v11865_v21 = vshrl.u32 %v9420_v31, 16 }
 0x334   :  { %11861 = vst [vmem:[#allocation29_spill] sm:$0xff] %v9610_v62  ;;  %v9626_v0 = vrot.slane %v2338_v57, %v9253_v40  ;;  %v9631_v51 = vrot.slane %v2097_v43, %v9253_v40  ;;  %v1412_v22 = vcombine.low %v1387_v59, %v1395_v50  ;;  %v1420_v29 = vcombine.low %v1403_v17, %v1411_v9  ;;  %v573_v50 = vpop.permute.xlu0 %572 }
 0x335   :  { %11862 = vst [vmem:[#allocation30_spill] sm:$0xff] %v9620_v55  ;;  %11863 = vst [vmem:[#allocation31_spill] sm:$0xff] %v9623_v44  ;;  %v1718_v24 = vpack.i.b16 %v1717_v5, %v11865_v21  ;;  %v9634_v49 = vrot.slane %v1446_v37, %v9245_v56  ;;  %v9637_v12 = vrot.slane %v7900_v63, %v9245_v56  ;;  %v641_v8 = vshrl.u32 %v565_v18, 16 }
 0x336   :  { %11864 = vst [vmem:[#allocation32_spill] sm:$0xff] %v9626_v0  ;;  %v1462_v30 = vcombine.low %v1437_v36, %v1445_v38  ;;  %v9641_v39 = vcombine.low %v9620_v55, %v9610_v62  ;;  %v9645_v31 = vcombine.low %v9623_v44, %v9626_v0  ;;  %v2145_v5 = vrot.slane %v2131_v48, %v9245_v56  ;;  %v11887_v44 = vld [vmem:[#allocation23_spill] sm:$0xff] }
 0x337   :  { %v2146_v43 = vcombine.low %v9512_v28, %v2138_v23  ;;  %v2147_v59 = vcombine.high %v9512_v28, %v2138_v23  ;;  %v2197_v17 = vcombine.high %v1718_v24, %v9237_v47  ;;  %v638_v9 = vpack.i.b16 %v565_v18, %v9181_v16 }
 0x338   :  { %v2650_v45 = vpack.i.b16 %v9645_v31, %v9641_v39  ;;  %v9659_v37 = vrot.slane %v1412_v22, %v9253_v40  ;;  %v9662_v28 = vrot.slane %v1420_v29, %v9253_v40  ;;  %v2204_v38 = vrot.slane %v1718_v24, %v9245_v56 }
 0x339   :  { %v9666_v63 = vrot.slane %v1462_v30, %v9253_v40  ;;  %v648_v23 = vshrl.u32 %v573_v50, 16  ;;  %v9672_v21 = vrot.slane %v2146_v43, %v9253_v40  ;;  %v9675_v18 = vrot.slane %v2147_v59, %v9253_v40 }
 0x33a   :  { %v3792_v48 = vsel %vm3787_vm1, %v2650_v45, 0  ;;  %v2162_v22 = vcombine.low %v9516_v42, %v2145_v5  ;;  %v11866_v24 = vshrl.u32 %v9181_v16, 16  ;;  %v2163_v30 = vcombine.high %v9516_v42, %v2145_v5 }
 0x33b   :  { %8254 = vmatpush3.bf16.xpose.msra.mxu1 %v3792_v48  ;;  %v9684_v57 = vrot.slane %v2197_v17, %v9245_v56  ;;  %v1048_v45 = vcombine.high %v638_v9, %v9237_v47  ;;  %v11867_v43 = vcombine.low %v9300_v25, %v9308_v15  ;;  %v11869_v59 = vmov 0.0  }
 0x33c   :  { %v9680_v29 = vpack.i.b16 %v641_v8, %v11866_v24  ;;  %8259 = vmatprep.subr.bf16.mxu1 %v11869_v59  ;;  %v2212_v36 = vcombine.low %v9534_v52, %v2204_v38  ;;  %v2213_v16 = vcombine.high %v9534_v52, %v2204_v38  ;;  %v9698_v42 = vcombine.low %v9313_v1, %v9316_v6 }
 0x33d   :  { %v9691_v48 = vrot.slane %v11867_v43, %v9253_v40  ;;  %v11870_v5 = vcombine.low %v9444_v54, %v9447_v33  ;;  %v11871_v15 = vcombine.low %v9434_v7, %v9437_v58  ;;  %v11872_v52 = vcombine.high %v9434_v7, %v9437_v58 }
 0x33e   :  { %v11873_v24 = vcombine.high %v9444_v54, %v9447_v33  ;;  %v9721_v20 = vrot.slane %v2162_v22, %v9253_v40  ;;  %v11875_v7 = vcombine.high %v9462_v10, %v9470_v4  ;;  %v9734_v33 = vrot.slane %v2163_v30, %v9253_v40 }
 0x33f   :  { %11868 = vst [vmem:[#allocation33_spill] sm:$0xff] %v9691_v48  ;;  %v2371_v8 = vrot.slane %v11870_v5, %v9245_v56  ;;  %v9706_v25 = vcombine.low %v9323_v41, %v9691_v48  ;;  %v2355_v17 = vrot.slane %v11871_v15, %v9245_v56  ;;  %v2363_v38 = vrot.slane %v11872_v52, %v9245_v56  ;;  %v581_v5 = vpop.permute.xlu1 %580 }
 0x340   :  { %v2379_v43 = vrot.slane %v11873_v24, %v9245_v56  ;;  %v11874_v15 = vcombine.low %v9462_v10, %v9470_v4  ;;  %v2413_v58 = vrot.slane %v11875_v7, %v9245_v56  ;;  %v2414_v52 = vcombine.low %v9484_v35, %v9490_v2 }
 0x341   :  { %v1582_v22 = vpack.i.b16 %v9706_v25, %v9698_v42  ;;  %v9743_v24 = vrot.slane %v2212_v36, %v9253_v40  ;;  %v7912_v10 = vcombine.high %v9484_v35, %v9490_v2  ;;  %v646_v4 = vpack.i.b16 %v581_v5, %v573_v50 }
 0x342   :  { %v2405_v26 = vrot.slane %v11874_v15, %v9245_v56  ;;  %v2701_v15 = vpop.permute.xlu0 %2700  ;;  %v2388_v13 = vcombine.low %v2371_v8, %v2379_v43  ;;  %v1055_v30 = vrot.slane %v638_v9, %v9245_v56  ;;  %v2380_v7 = vcombine.low %v2355_v17, %v2363_v38 }
 0x343   :  { %8256 = vmatmul.mubr.msk.bf16.vlgmr.msra.gmra.mrb[8].mxu1 %vm3787_vm1, %v1582_v22  ;;  %v2421_v54 = vrot.slane %v2414_v52, %v9245_v56  ;;  %v649_v1 = vshrl.u32 %v581_v5, 16  ;;  %v2429_v6 = vrot.slane %v7912_v10, %v9245_v56  ;;  %v1063_v36 = vcombine.high %v646_v4, %v9237_v47 }
 0x344   :  { %v2430_v41 = vcombine.low %v2405_v26, %v2413_v58  ;;  %v1070_v48 = vrot.slane %v646_v4, %v9245_v56  ;;  %8261 = vmatprep.mubr.msk.bf16.mxu1 %vm8951_vm0, %v11869_v59  ;;  %v9756_v2 = vrot.slane %v2213_v16, %v9253_v40  ;;  %v2228_v35 = vcombine.low %v9546_v61, %v9684_v57 }
 0x345   :  { %v2729_v50 = vshrl.u32 %v2701_v15, 16  ;;  %v650_v9 = vpack.i.b16 %v649_v1, %v648_v23  ;;  %v9761_v8 = vrot.slane %v2388_v13, %v9253_v40  ;;  %v2438_v17 = vcombine.low %v2421_v54, %v2429_v6 }
 0x346   :  { %v1078_v26 = vcombine.low %v1055_v30, %v1070_v48  ;;  %v1079_v38 = vcombine.high %v1055_v30, %v1070_v48  ;;  %v2229_v43 = vcombine.high %v9546_v61, %v9684_v57  ;;  %v1062_v5 = vrot.slane %v1048_v45, %v9245_v56  ;;  %v9785_v54 = vpop.permute.xlu0 %2710 }
 0x347   :  { %11876 = vst [vmem:[#allocation34_spill] sm:$0xff] %v9761_v8  ;;  %v1077_v58 = vrot.slane %v1063_v36, %v9245_v56  ;;  %v1129_v16 = vcombine.high %v650_v9, %v9237_v47  ;;  %v9769_v22 = vrot.slane %v2380_v7, %v9253_v40  ;;  %v9772_v1 = vrot.slane %v2430_v41, %v9253_v40  ;;  %v2709_v7 = vpop.permute.xlu1 %2708 }
 0x348   :  { %v9775_v13 = vrot.slane %v2438_v17, %v9253_v40  ;;  %v1136_v6 = vrot.slane %v650_v9, %v9245_v56  ;;  %v1114_v61 = vcombine.high %v9680_v29, %v9237_v47  ;;  %v1121_v57 = vrot.slane %v9680_v29, %v9245_v56 }
 0x349   :  { %11877 = vst [vmem:[#allocation35_spill] sm:$0xff] %v9769_v22  ;;  %11878 = vst [vmem:[#allocation36_spill] sm:$0xff] %v9772_v1  ;;  %v2726_v23 = vpack.i.b16 %v2701_v15, %v9147_v11  ;;  %v11880_v45 = vshrl.u32 %v9147_v11, 16  ;;  %v9789_v41 = vcombine.low %v9769_v22, %v9761_v8  ;;  %v1086_v10 = vrot.slane %v1078_v26, %v9253_v40 }
 0x34a   :  { %11879 = vst [vmem:[#allocation37_spill] sm:$0xff] %v9775_v13  ;;  %v9793_v52 = vcombine.low %v9772_v1, %v9775_v13  ;;  %v1093_v4 = vrot.slane %v1079_v38, %v9253_v40  ;;  %v9798_v29 = vrot.slane %v2228_v35, %v9253_v40  ;;  %v1094_v15 = vcombine.low %v1062_v5, %v1077_v58  ;;  %v2705_v26 = vpop.permute.xlu0 %2704  ;;  %v11885_v13 = vld [vmem:[#allocation26_spill] sm:$0xff] }
 0x34b   :  { %v2730_v48 = vpack.i.b16 %v2729_v50, %v11880_v45  ;;  %11881 = vst [vmem:[#allocation38_spill] sm:$0xff] %v9789_v41  ;;  %v1143_v30 = vrot.slane %v1129_v16, %v9245_v56  ;;  %v1095_v50 = vcombine.high %v1062_v5, %v1077_v58  ;;  %v1144_v9 = vcombine.low %v1121_v57, %v1136_v6 }
 0x34c   :  { %11882 = vst [vmem:[#allocation39_spill] sm:$0xff] %v9793_v52  ;;  %v2662_v36 = vpack.i.b16 %v9793_v52, %v9789_v41  ;;  %v1145_v17 = vcombine.high %v1121_v57, %v1136_v6  ;;  %v1128_v38 = vrot.slane %v1114_v61, %v9245_v56  ;;  %v2788_v35 = vcombine.high %v2726_v23, %v9237_v47  ;;  %v11891_v52 = vld [vmem:[#allocation25_spill] sm:$0xff] }
 0x34d   :  { %v2854_v45 = vcombine.high %v2730_v48, %v9237_v47  ;;  %v9811_v11 = vrot.slane %v2229_v43, %v9253_v40  ;;  %v1480_v5 = vcombine.low %v1086_v10, %v1093_v4  ;;  %v9819_v6 = vrot.slane %v2726_v23, %v9245_v56 }
 0x34e   :  { %v3839_v22 = vsel %vm3787_vm1, %v2662_v36, 0  ;;  %v1160_v61 = vcombine.low %v1128_v38, %v1143_v30  ;;  %v7901_v57 = vcombine.high %v1086_v10, %v1093_v4  ;;  %v1102_v8 = vrot.slane %v1094_v15, %v9253_v40  ;;  %v2717_v4 = vpop.permute.xlu1 %2716 }
 0x34f   :  { %8260 = vmatpush3.bf16.xpose.msra.mxu1 %v3839_v22  ;;  %v1109_v43 = vrot.slane %v1095_v50, %v9253_v40  ;;  %v1152_v1 = vrot.slane %v1144_v9, %v9253_v40  ;;  %v1159_v16 = vrot.slane %v1145_v17, %v9253_v40  ;;  %v9827_v36 = vrot.slane %v2788_v35, %v9245_v56 }
 0x350   :  { %8271 = vmatprep.subr.bf16.mxu1 %v11869_v59  ;;  %v9830_v23 = vrot.slane %v2730_v48, %v9245_v56  ;;  %v9833_v22 = vrot.slane %v2854_v45, %v9245_v56  ;;  %v2736_v10 = vshrl.u32 %v2709_v7, 16  ;;  %v1161_v15 = vcombine.high %v1128_v38, %v1143_v30 }
 0x351   :  { %v9836_v50 = vrot.slane %v1480_v5, %v9245_v56  ;;  %v2758_v9 = vpack.i.b16 %v2705_v26, %v9163_v27  ;;  %v2761_v17 = vshrl.u32 %v2705_v26, 16  ;;  %v1168_v58 = vrot.slane %v1160_v61, %v9253_v40  ;;  %v11886_v26 = vld [vmem:[#allocation22_spill] sm:$0xff] }
 0x352   :  { %v9841_v35 = vrot.slane %v7901_v57, %v9245_v56  ;;  %v11883_v48 = vcombine.low %v9398_v34, %v9401_v60  ;;  %v1370_v30 = vcombine.low %v11885_v13, %v9429_v14  ;;  %v1496_v38 = vcombine.low %v1102_v8, %v1109_v43  ;;  %v11890_v57 = vld [vmem:[#allocation24_spill] sm:$0xff] }
 0x353   :  { %v7902_v5 = vcombine.high %v1102_v8, %v1109_v43  ;;  %v1530_v55 = vcombine.low %v1152_v1, %v1159_v16  ;;  %v2734_v62 = vpack.i.b16 %v2717_v4, %v2709_v7  ;;  %v11888_v61 = vcombine.low %v11886_v26, %v11887_v44  ;;  %v11895_v7 = vld [vmem:[#allocation27_spill] sm:$0xff]  ;;  %v11896_v43 = vld [vmem:[#allocation28_spill] sm:$0xff] }
 0x354   :  { %v9847_v45 = vrot.slane %v11883_v48, %v9253_v40  ;;  %v11892_v41 = vcombine.low %v11890_v57, %v11891_v52  ;;  %v9864_v34 = vrot.slane %v1370_v30, %v9253_v40  ;;  %v2737_v14 = vshrl.u32 %v2717_v4, 16 }
 0x355   :  { %v9855_v0 = vrot.slane %v11888_v61, %v9253_v40  ;;  %v1175_v8 = vrot.slane %v1161_v15, %v9253_v40  ;;  %v7903_v13 = vcombine.high %v1152_v1, %v1159_v16  ;;  %v11897_v48 = vcombine.low %v11895_v7, %v11896_v43 }
 0x356   :  { %11884 = vst [vmem:[#allocation40_spill] sm:$0xff] %v9847_v45  ;;  %v9861_v60 = vrot.slane %v11892_v41, %v9253_v40  ;;  %11894 = vst [vmem:[#allocation23_spill] sm:$0xff] %v9864_v34  ;;  %v11898_v26 = vcombine.high %v11895_v7, %v11896_v43  ;;  %v11900_v1 = vcombine.low %v9539_v32, %v9542_v46 }
 0x357   :  { %11889 = vst [vmem:[#allocation26_spill] sm:$0xff] %v9855_v0  ;;  %v2455_v44 = vrot.slane %v11897_v48, %v9245_v56  ;;  %v9877_v41 = vcombine.low %v9855_v0, %v9847_v45  ;;  %v11901_v4 = vcombine.high %v9539_v32, %v9542_v46  ;;  %v9892_v30 = vrot.slane %v1496_v38, %v9245_v56  ;;  %v2703_v48 = vpop.permute.xlu1 %2702 }
 0x358   :  { %11893 = vst [vmem:[#allocation22_spill] sm:$0xff] %v9861_v60  ;;  %v2463_v61 = vrot.slane %v11898_v26, %v9245_v56  ;;  %v9881_v52 = vcombine.low %v9861_v60, %v9864_v34  ;;  %v2471_v16 = vrot.slane %v11900_v1, %v9245_v56  ;;  %v9895_v57 = vrot.slane %v7902_v5, %v9245_v56 }
 0x359   :  { %11899 = vst [vmem:[#allocation24_spill] sm:$0xff] %v9877_v41  ;;  %v2479_v15 = vrot.slane %v11901_v4, %v9245_v56  ;;  %v2810_v43 = vrot.slane %v2734_v62, %v9245_v56  ;;  %v3052_v26 = vcombine.high %v2758_v9, %v9237_v47  ;;  %v2738_v60 = vpack.i.b16 %v2737_v14, %v2736_v10 }
 0x35a   :  { %v1594_v1 = vpack.i.b16 %v9881_v52, %v9877_v41  ;;  %v2803_v32 = vcombine.high %v2734_v62, %v9237_v47  ;;  %v9906_v38 = vrot.slane %v1530_v55, %v9245_v56  ;;  %v1546_v5 = vcombine.low %v1168_v58, %v1175_v8 }
 0x35b   :  { %v11902_v4 = vshrl.u32 %v9163_v27, 16  ;;  %v9911_v34 = vrot.slane %v7903_v13, %v9245_v56  ;;  %v7904_v0 = vcombine.high %v1168_v58, %v1175_v8  ;;  %v2480_v45 = vcombine.low %v2455_v44, %v2463_v61 }
 0x35c   :  { %8262 = vmatmul.mubr.msk.bf16.vlgmr.msra.gmra.mrb[12].mxu1 %vm3787_vm1, %v1594_v1  ;;  %v2488_v10 = vcombine.low %v2471_v16, %v2479_v15  ;;  %v9917_v14 = vrot.slane %v2758_v9, %v9245_v56  ;;  %v2818_v55 = vcombine.low %v9819_v6, %v2810_v43  ;;  %v2819_v46 = vcombine.high %v9819_v6, %v2810_v43  ;;  %v2719_v15 = vpop.permute.xlu1 %2718 }
 0x35d   :  { %v2762_v7 = vpack.i.b16 %v2761_v17, %v11902_v4  ;;  %8273 = vmatprep.mubr.msk.bf16.mxu1 %vm8951_vm0, %v11869_v59  ;;  %v2817_v27 = vrot.slane %v2803_v32, %v9245_v56  ;;  %v2869_v58 = vcombine.high %v2738_v60, %v9237_v47  ;;  %v11903_v17 = vcombine.low %v9555_v3, %v9561_v19 }
 0x35e   :  { %v11904_v9 = vcombine.high %v9555_v3, %v9561_v19  ;;  %v9934_v44 = vrot.slane %v1546_v5, %v9245_v56  ;;  %v9937_v6 = vrot.slane %v3052_v26, %v9245_v56  ;;  %v9944_v43 = vrot.slane %v7904_v0, %v9245_v56 }
 0x35f   :  { %v2505_v8 = vrot.slane %v11903_v17, %v9245_v56  ;;  %v3118_v61 = vcombine.high %v2762_v7, %v9237_v47  ;;  %v9941_v16 = vrot.slane %v2762_v7, %v9245_v56  ;;  %v2876_v1 = vrot.slane %v2738_v60, %v9245_v56 }
 0x360   :  { %v2513_v13 = vrot.slane %v11904_v9, %v9245_v56  ;;  %v9948_v3 = vrot.slane %v2480_v45, %v9253_v40  ;;  %v9951_v19 = vrot.slane %v2488_v10, %v9253_v40  ;;  %v2826_v26 = vrot.slane %v2818_v55, %v9253_v40  ;;  %v11907_v55 = vld [vmem:[#allocation16_spill] sm:$0xff] }
 0x361   :  { %v2833_v32 = vrot.slane %v2819_v46, %v9253_v40  ;;  %v2514_v7 = vcombine.low %v9613_v53, %v9631_v51  ;;  %v7916_v5 = vcombine.high %v9613_v53, %v9631_v51  ;;  %v2834_v0 = vcombine.low %v9827_v36, %v2817_v27 }
 0x362   :  { %11905 = vst [vmem:[#allocation25_spill] sm:$0xff] %v9948_v3  ;;  %11906 = vst [vmem:[#allocation27_spill] sm:$0xff] %v9951_v19  ;;  %v2883_v60 = vrot.slane %v2869_v58, %v9245_v56  ;;  %v2530_v4 = vcombine.low %v2505_v8, %v2513_v13  ;;  %v2750_v45 = vpack.i.b16 %v2719_v15, %v9785_v54  ;;  %v2745_v46 = vshrl.u32 %v2703_v48, 16 }
 0x363   :  { %v2521_v10 = vrot.slane %v2514_v7, %v9245_v56  ;;  %v2529_v17 = vrot.slane %v7916_v5, %v9245_v56  ;;  %v2742_v9 = vpack.i.b16 %v2703_v48, %v11907_v55  ;;  %v9968_v41 = vrot.slane %v3118_v61, %v9245_v56 }
 0x364   :  { %v2835_v53 = vcombine.high %v9827_v36, %v2817_v27  ;;  %v2884_v51 = vcombine.low %v9830_v23, %v2876_v1  ;;  %v2885_v58 = vcombine.high %v9830_v23, %v2876_v1  ;;  %v9975_v8 = vcombine.low %v9948_v3, %v9951_v19 }
 0x365   :  { %v2538_v13 = vcombine.low %v2521_v10, %v2529_v17  ;;  %v2935_v7 = vcombine.high %v2750_v45, %v9237_v47  ;;  %v9979_v48 = vrot.slane %v2834_v0, %v9253_v40  ;;  %v2900_v5 = vcombine.low %v9833_v22, %v2883_v60 }
 0x366   :  { %v2901_v61 = vcombine.high %v9833_v22, %v2883_v60  ;;  %v3316_v62 = vcombine.low %v2826_v26, %v2833_v32  ;;  %v9984_v36 = vrot.slane %v2530_v4, %v9253_v40  ;;  %v11909_v27 = vshrl.u32 %v11907_v55, 16 }
 0x367   :  { %11908 = vst [vmem:[#allocation28_spill] sm:$0xff] %v9979_v48  ;;  %v9987_v23 = vrot.slane %v2538_v13, %v9253_v40  ;;  %v2920_v10 = vcombine.high %v2742_v9, %v9237_v47  ;;  %v9993_v17 = vrot.slane %v2835_v53, %v9253_v40  ;;  %v7921_v0 = vcombine.high %v2826_v26, %v2833_v32 }
 0x368   :  { %v2746_v1 = vpack.i.b16 %v2745_v46, %v11909_v27  ;;  %v2753_v3 = vshrl.u32 %v2719_v15, 16  ;;  %v2942_v19 = vrot.slane %v2750_v45, %v9245_v56  ;;  %v9997_v22 = vrot.slane %v2884_v51, %v9253_v40 }
 0x369   :  { %11910 = vst [vmem:[#allocation16_spill] sm:$0xff] %v9993_v17  ;;  %v10000_v60 = vrot.slane %v2885_v58, %v9253_v40  ;;  %v10004_v4 = vcombine.low %v9984_v36, %v9987_v23  ;;  %v2949_v55 = vrot.slane %v2935_v7, %v9245_v56  ;;  %v10008_v46 = vrot.slane %v2900_v5, %v9253_v40 }
 0x36a   :  { %11911 = vst [vmem:[#allocation41_spill] sm:$0xff] %v9997_v22  ;;  %v10011_v26 = vrot.slane %v2901_v61, %v9253_v40  ;;  %v2927_v15 = vrot.slane %v2742_v9, %v9245_v56  ;;  %v11913_v32 = vcombine.low %v9634_v49, %v9637_v12  ;;  %v10021_v53 = vrot.slane %v3316_v62, %v9245_v56  ;;  %v10034_v61 = vpop.permute.xlu1 %2712 }
 0x36b   :  { %11912 = vst [vmem:[#allocation42_spill] sm:$0xff] %v10000_v60  ;;  %v2674_v51 = vpack.i.b16 %v10004_v4, %v9975_v8  ;;  %v2934_v58 = vrot.slane %v2920_v10, %v9245_v56  ;;  %v2986_v13 = vcombine.high %v2746_v1, %v9237_v47  ;;  %v10028_v7 = vrot.slane %v7921_v0, %v9245_v56 }
 0x36c   :  { %v10018_v45 = vrot.slane %v11913_v32, %v9253_v40  ;;  %11914 = vst [vmem:[#allocation43_spill] sm:$0xff] %v10021_v53  ;;  %v11916_v49 = vshrl.u32 %v9785_v54, 16  ;;  %v2950_v5 = vcombine.low %v2927_v15, %v2942_v19  ;;  %v2951_v10 = vcombine.high %v2927_v15, %v2942_v19 }
 0x36d   :  { %11915 = vst [vmem:[#allocation44_spill] sm:$0xff] %v10028_v7  ;;  %v3886_v27 = vsel %vm3787_vm1, %v2674_v51, 0  ;;  %v2966_v32 = vcombine.low %v2934_v58, %v2949_v55  ;;  %v10051_v51 = vrot.slane %v2986_v13, %v9245_v56  ;;  %v2967_v19 = vcombine.high %v2934_v58, %v2949_v55 }
 0x36e   :  { %v2754_v12 = vpack.i.b16 %v2753_v3, %v11916_v49  ;;  %8266 = vmatpush3.bf16.xpose.msra.mxu0 %v3886_v27  ;;  %v10047_v3 = vcombine.low %v9666_v63, %v10018_v45  ;;  %v2993_v49 = vrot.slane %v2746_v1, %v9245_v56  ;;  %v10055_v15 = vcombine.low %v9659_v37, %v9662_v28  ;;  %v2721_v60 = vpop.permute.xlu1 %2720 }
 0x36f   :  { %8277 = vmatprep.subr.bf16.mxu0 %v11869_v59  ;;  %v2958_v53 = vrot.slane %v2950_v5, %v9253_v40  ;;  %v11917_v54 = vcombine.low %v9672_v21, %v9675_v18  ;;  %v11918_v1 = vcombine.high %v9672_v21, %v9675_v18  ;;  %v2965_v58 = vrot.slane %v2951_v10, %v9253_v40 }
 0x370   :  { %v3001_v27 = vcombine.high %v2754_v12, %v9237_v47  ;;  %v10070_v13 = vrot.slane %v2966_v32, %v9253_v40  ;;  %v3008_v62 = vrot.slane %v2754_v12, %v9245_v56  ;;  %v11919_v5 = vcombine.low %v9721_v20, %v9734_v33 }
 0x371   :  { %v2555_v0 = vrot.slane %v11917_v54, %v9245_v56  ;;  %v2563_v55 = vrot.slane %v11918_v1, %v9245_v56  ;;  %v1606_v54 = vpack.i.b16 %v10047_v3, %v10055_v15  ;;  %v11920_v21 = vcombine.high %v9721_v20, %v9734_v33 }
 0x372   :  { %v2571_v9 = vrot.slane %v11919_v5, %v9245_v56  ;;  %v11921_v10 = vcombine.low %v9743_v24, %v9756_v2  ;;  %v11922_v12 = vcombine.high %v9743_v24, %v9756_v2  ;;  %v2614_v5 = vcombine.low %v9798_v29, %v9811_v11 }
 0x373   :  { %v2579_v18 = vrot.slane %v11920_v21, %v9245_v56  ;;  %v7920_v22 = vcombine.high %v9798_v29, %v9811_v11  ;;  %v2651_v20 = vshrl.u32 %v9641_v39, 16  ;;  %v2652_v33 = vshrl.u32 %v9645_v31, 16 }
 0x374   :  { %v2605_v32 = vrot.slane %v11921_v10, %v9245_v56  ;;  %v2613_v1 = vrot.slane %v11922_v12, %v9245_v56  ;;  %v3015_v21 = vrot.slane %v3001_v27, %v9245_v56  ;;  %v2580_v7 = vcombine.low %v2555_v0, %v2563_v55 }
 0x375   :  { %v2588_v10 = vcombine.low %v2571_v9, %v2579_v18  ;;  %8268 = vmatmul.mubr.msk.bf16.vlgmr.msra.gmra.mrb[16].mxu0 %vm3787_vm1, %v1606_v54  ;;  %v2621_v24 = vrot.slane %v2614_v5, %v9245_v56  ;;  %v2629_v2 = vrot.slane %v7920_v22, %v9245_v56  ;;  %v2653_v12 = vpack.i.b16 %v2652_v33, %v2651_v20 }
 0x376   :  { %v2630_v17 = vcombine.low %v2605_v32, %v2613_v1  ;;  %v2766_v48 = vpack.i.b16 %v2721_v60, %v10034_v61  ;;  %v10103_v29 = vrot.slane %v2967_v19, %v9253_v40  ;;  %v3016_v39 = vcombine.low %v2993_v49, %v3008_v62  ;;  %8279 = vmatprep.mubr.msk.bf16.mxu0 %vm8951_vm0, %v11869_v59 }
 0x377   :  { %v3017_v11 = vcombine.high %v2993_v49, %v3008_v62  ;;  %v2769_v31 = vshrl.u32 %v2721_v60, 16  ;;  %v10108_v9 = vrot.slane %v2588_v10, %v9253_v40  ;;  %v2638_v0 = vcombine.low %v2621_v24, %v2629_v2 }
 0x378   :  { %v3980_v27 = vsel %vm3787_vm1, %v2653_v12, 0  ;;  %v3067_v22 = vcombine.high %v2766_v48, %v9237_v47  ;;  %v3032_v55 = vcombine.low %v10051_v51, %v3015_v21  ;;  %v3416_v54 = vcombine.low %v2958_v53, %v2965_v58 }
 0x379   :  { %8278 = vmatpush3.bf16.xpose.msra.mxu0 %v3980_v27  ;;  %v2768_v19 = vshrl.u32 %v10034_v61, 16  ;;  %v3074_v62 = vrot.slane %v2766_v48, %v9245_v56  ;;  %v3033_v60 = vcombine.high %v10051_v51, %v3015_v21  ;;  %v10117_v49 = vrot.slane %v2580_v7, %v9253_v40 }
 0x37a   :  { %v10120_v18 = vrot.slane %v2630_v17, %v9253_v40  ;;  %v10123_v32 = vrot.slane %v2638_v0, %v9253_v40  ;;  %8289 = vmatprep.subr.bf16.mxu0 %v11869_v59  ;;  %v7924_v1 = vcombine.high %v10008_v46, %v10011_v26  ;;  %v7925_v5 = vcombine.high %v2958_v53, %v2965_v58 }
 0x37b   :  { %v3432_v48 = vcombine.low %v10070_v13, %v10103_v29  ;;  %v2770_v61 = vpack.i.b16 %v2769_v31, %v2768_v19  ;;  %v3024_v51 = vrot.slane %v3016_v39, %v9253_v40  ;;  %v10133_v7 = vcombine.low %v10117_v49, %v10108_v9 }
 0x37c   :  { %v10137_v17 = vcombine.low %v10120_v18, %v10123_v32  ;;  %v3081_v20 = vrot.slane %v3067_v22, %v9245_v56  ;;  %v3031_v33 = vrot.slane %v3017_v11, %v9253_v40  ;;  %v10142_v53 = vrot.slane %v3416_v54, %v9245_v56 }
 0x37d   :  { %v3082_v58 = vcombine.low %v9917_v14, %v3074_v62  ;;  %v3083_v21 = vcombine.high %v9917_v14, %v3074_v62  ;;  %v10147_v10 = vrot.slane %v3032_v55, %v9253_v40  ;;  %v10150_v24 = vrot.slane %v3033_v60, %v9253_v40 }
 0x37e   :  { %v2686_v2 = vpack.i.b16 %v10137_v17, %v10133_v7  ;;  %v1570_v12 = vcombine.low %v9934_v44, %v9944_v43  ;;  %v10157_v39 = vrot.slane %v7925_v5, %v9245_v56  ;;  %v10160_v11 = vrot.slane %v3432_v48, %v9245_v56 }
 0x37f   :  { %v3133_v14 = vcombine.high %v2770_v61, %v9237_v47  ;;  %v11923_v31 = vcombine.low %v9892_v30, %v9895_v57  ;;  %v7926_v27 = vcombine.high %v10070_v13, %v10103_v29  ;;  %v3098_v44 = vcombine.low %v9937_v6, %v3081_v20 }
 0x380   :  { %v3933_v22 = vsel %vm3787_vm1, %v2686_v2, 0  ;;  %v3140_v43 = vrot.slane %v2770_v61, %v9245_v56  ;;  %v3466_v55 = vcombine.low %v3024_v51, %v3031_v33  ;;  %v3090_v54 = vrot.slane %v3082_v58, %v9253_v40  ;;  %v11926_v58 = vld [vmem:[#allocation38_spill] sm:$0xff]  ;;  %v11927_v2 = vld [vmem:[#allocation39_spill] sm:$0xff] }
 0x381   :  { %v10167_v0 = vrot.slane %v11923_v31, %v9253_v40  ;;  %8272 = vmatpush3.bf16.xpose.msra.mxu1 %v3933_v22  ;;  %v3097_v19 = vrot.slane %v3083_v21, %v9253_v40  ;;  %v11924_v30 = vcombine.low %v9836_v50, %v9841_v35  ;;  %v7927_v62 = vcombine.high %v3024_v51, %v3031_v33 }
 0x382   :  { %v3099_v13 = vcombine.high %v9937_v6, %v3081_v20  ;;  %v11925_v29 = vcombine.low %v9906_v38, %v9911_v34  ;;  %v10190_v5 = vrot.slane %v1570_v12, %v9253_v40  ;;  %8283 = vmatprep.subr.bf16.mxu1 %v11869_v59  ;;  %v3147_v48 = vrot.slane %v3133_v14, %v9245_v56 }
 0x383   :  { %v10180_v57 = vrot.slane %v11924_v30, %v9253_v40  ;;  %v1583_v35 = vshrl.u32 %v9698_v42, 16  ;;  %v1584_v6 = vshrl.u32 %v9706_v25, 16  ;;  %v3106_v61 = vrot.slane %v3098_v44, %v9253_v40 }
 0x384   :  { %v10187_v60 = vrot.slane %v11925_v29, %v9253_v40  ;;  %v3148_v34 = vcombine.low %v9941_v16, %v3140_v43  ;;  %v3149_v38 = vcombine.high %v9941_v16, %v3140_v43  ;;  %v3516_v20 = vcombine.low %v3090_v54, %v3097_v19 }
 0x385   :  { %v10196_v50 = vcombine.low %v10180_v57, %v10167_v0  ;;  %v1585_v33 = vpack.i.b16 %v1584_v6, %v1583_v35  ;;  %v2663_v21 = vshrl.u32 %v11926_v58, 16  ;;  %v2664_v12 = vshrl.u32 %v11927_v2, 16  ;;  %v11928_v58 = vld [vmem:[#allocation32_spill] sm:$0xff] }
 0x386   :  { %v10205_v51 = vcombine.low %v10187_v60, %v10190_v5  ;;  %v3113_v42 = vrot.slane %v3099_v13, %v9253_v40  ;;  %v2675_v14 = vshrl.u32 %v9975_v8, 16  ;;  %v2676_v31 = vshrl.u32 %v10004_v4, 16 }
 0x387   :  { %v10215_v16 = vrot.slane %v7926_v27, %v9245_v56  ;;  %v3482_v22 = vcombine.low %v10147_v10, %v10150_v24  ;;  %v7928_v44 = vcombine.high %v10147_v10, %v10150_v24  ;;  %8280 = vmatmul.mubr.msk.bf16.vlgmr.msra.gmra.mrb[20].mxu0 %vm3787_vm1, %v1585_v33  ;;  %v2665_v43 = vpack.i.b16 %v2664_v12, %v2663_v21  ;;  %v11929_v21 = vld [vmem:[#allocation31_spill] sm:$0xff]  ;;  %v11930_v12 = vld [vmem:[#allocation29_spill] sm:$0xff] }
 0x388   :  { %v1618_v25 = vpack.i.b16 %v10205_v51, %v10196_v50  ;;  %v10223_v30 = vrot.slane %v3466_v55, %v9245_v56  ;;  %v10226_v13 = vrot.slane %v7927_v62, %v9245_v56  ;;  %v7929_v8 = vcombine.high %v3090_v54, %v3097_v19  ;;  %8291 = vmatprep.mubr.msk.bf16.mxu0 %vm8951_vm0, %v11869_v59 }
 0x389   :  { %v2677_v4 = vpack.i.b16 %v2676_v31, %v2675_v14  ;;  %v3156_v27 = vrot.slane %v3148_v34, %v9253_v40  ;;  %v3163_v29 = vrot.slane %v3149_v38, %v9253_v40  ;;  %v3164_v35 = vcombine.low %v9968_v41, %v3147_v48 }
 0x38a   :  { %8274 = vmatmul.mubr.msk.bf16.vlgmr.msra.gmra.mrb[16].mxu1 %vm3787_vm1, %v1618_v25  ;;  %v4027_v6 = vsel %vm3787_vm1, %v2665_v43, 0  ;;  %v3165_v55 = vcombine.high %v9968_v41, %v3147_v48  ;;  %v10239_v54 = vrot.slane %v3516_v20, %v9245_v56  ;;  %v3532_v19 = vcombine.low %v3106_v61, %v3113_v42 }
 0x38b   :  { %8285 = vmatprep.mubr.msk.bf16.mxu1 %vm8951_vm0, %v11869_v59  ;;  %8284 = vmatpush3.bf16.xpose.msra.mxu1 %v4027_v6  ;;  %v4074_v62 = vsel %vm3787_vm1, %v2677_v4, 0  ;;  %v1596_v34 = vshrl.u32 %v9881_v52, 16  ;;  %v2687_v38 = vshrl.u32 %v10133_v7, 16  ;;  %v2688_v33 = vshrl.u32 %v10137_v17, 16  ;;  %v11931_v52 = vld [vmem:[#allocation30_spill] sm:$0xff]  ;;  %v11932_v17 = vld [vmem:[#allocation24_spill] sm:$0xff] }
 0x38c   :  { %8290 = vmatpush3.bf16.xpose.msra.mxu0 %v4074_v62  ;;  %8295 = vmatprep.subr.bf16.mxu1 %v11869_v59  ;;  %v10248_v2 = vcombine.high %v11929_v21, %v11928_v58  ;;  %v10251_v41 = vrot.slane %v7929_v8, %v9245_v56  ;;  %v7930_v48 = vcombine.high %v3106_v61, %v3113_v42  ;;  %v1608_v20 = vshrl.u32 %v10047_v3, 16  ;;  %v11933_v62 = vld [vmem:[#allocation37_spill] sm:$0xff]  ;;  %v11934_v58 = vld [vmem:[#allocation36_spill] sm:$0xff] }
 0x38d   :  { %8301 = vmatprep.subr.bf16.mxu0 %v11869_v59  ;;  %v2297_v25 = vcombine.high %v11931_v52, %v11930_v12  ;;  %v10258_v14 = vrot.slane %v3164_v35, %v9253_v40  ;;  %v3566_v7 = vcombine.low %v3156_v27, %v3163_v29  ;;  %v1595_v31 = vshrl.u32 %v11932_v17, 16  ;;  %v11935_v21 = vld [vmem:[#allocation40_spill] sm:$0xff]  ;;  %v11936_v12 = vld [vmem:[#allocation26_spill] sm:$0xff] }
 0x38e   :  { %v2689_v43 = vpack.i.b16 %v2688_v33, %v2687_v38  ;;  %v10262_v4 = vrot.slane %v3165_v55, %v9253_v40  ;;  %v7931_v8 = vcombine.high %v3156_v27, %v3163_v29  ;;  %v1607_v61 = vshrl.u32 %v10055_v15, 16  ;;  %v11937_v29 = vld [vmem:[#allocation23_spill] sm:$0xff] }
 0x38f   :  { %v2656_v3 = vpack.i.b16 %v10248_v2, %v2297_v25  ;;  %v10267_v42 = vrot.slane %v3532_v19, %v9245_v56  ;;  %v1597_v6 = vpack.i.b16 %v1596_v34, %v1595_v31  ;;  %v10271_v35 = vcombine.high %v11934_v58, %v11933_v62  ;;  %v11938_v19 = vld [vmem:[#allocation22_spill] sm:$0xff]  ;;  %v11940_v31 = vld [vmem:[#allocation35_spill] sm:$0xff]  ;;  %v11944_v58 = vld [vmem:[#allocation25_spill] sm:$0xff] }
 0x390   :  { %v10275_v52 = vcombine.high %v11936_v12, %v11935_v21  ;;  %v10278_v55 = vrot.slane %v7930_v48, %v9245_v56  ;;  %v1609_v27 = vpack.i.b16 %v1608_v20, %v1607_v61  ;;  %v10282_v15 = vcombine.high %v9984_v36, %v9987_v23  ;;  %v11939_v48 = vld [vmem:[#allocation34_spill] sm:$0xff]  ;;  %v11941_v23 = vld [vmem:[#allocation33_spill] sm:$0xff] }
 0x391   :  { %v10286_v38 = vcombine.high %v11938_v19, %v11937_v29  ;;  %v10289_v34 = vrot.slane %v3566_v7, %v9245_v56  ;;  %v4121_v33 = vsel %vm3787_vm1, %v2689_v43, 0  ;;  %v1620_v17 = vshrl.u32 %v10205_v51, 16  ;;  %v11942_v61 = vld [vmem:[#allocation21_spill] sm:$0xff]  ;;  %v11943_v7 = vld [vmem:[#allocation27_spill] sm:$0xff] }
 0x392   :  { %8286 = vmatmul.mubr.msk.bf16.vlgmr.msra.gmra.mrb[20].mxu1 %vm3787_vm1, %v1597_v6  ;;  %v10296_v20 = vcombine.high %v11940_v31, %v11939_v48  ;;  %v4168_v36 = vsel %vm3787_vm1, %v2656_v3, 0  ;;  %v10302_v62 = vcombine.high %v11942_v61, %v11941_v23  ;;  %v10306_v6 = vcombine.high %v11944_v58, %v11943_v7  ;;  %v11946_v29 = vld [vmem:[#allocation19_spill] sm:$0xff] }
 0x393   :  { %8292 = vmatmul.mubr.msk.bf16.vlgmr.msra.gmra.mrb[24].mxu0 %vm3787_vm1, %v1609_v27  ;;  %8296 = vmatpush3.bf16.xpose.msra.mxu1 %v4121_v33  ;;  %v1600_v51 = vpack.i.b16 %v10286_v38, %v10275_v52  ;;  %v10311_v43 = vrot.slane %v7931_v8, %v9245_v56  ;;  %v10319_v21 = vcombine.high %v10120_v18, %v10123_v32  ;;  %v1619_v12 = vshrl.u32 %v10196_v50, 16  ;;  %v11945_v27 = vld [vmem:[#allocation20_spill] sm:$0xff] }
 0x394   :  { %8302 = vmatpush3.bf16.xpose.msra.mxu0 %v4168_v36  ;;  %8297 = vmatprep.mubr.msk.bf16.mxu1 %vm8951_vm0, %v11869_v59  ;;  %v2668_v3 = vpack.i.b16 %v10271_v35, %v10296_v20  ;;  %v10326_v8 = vcombine.high %v11946_v29, %v11945_v27  ;;  %v2680_v19 = vpack.i.b16 %v10282_v15, %v10306_v6  ;;  %v2658_v48 = vshrl.u32 %v10248_v2, 16 }
 0x395   :  { %8303 = vmatprep.mubr.msk.bf16.mxu0 %vm8951_vm0, %v11869_v59  ;;  %8307 = vmatprep.subr.bf16.mxu1 %v11869_v59  ;;  %v10333_v33 = vcombine.high %v9666_v63, %v10018_v45  ;;  %v3582_v18 = vcombine.low %v10258_v14, %v10262_v4  ;;  %v7932_v32 = vcombine.high %v10258_v14, %v10262_v4  ;;  %v2657_v45 = vshrl.u32 %v2297_v25, 16 }
 0x396   :  { %8313 = vmatprep.subr.bf16.mxu0 %v11869_v59  ;;  %v10342_v50 = vcombine.high %v10117_v49, %v10108_v9  ;;  %v1621_v31 = vpack.i.b16 %v1620_v17, %v1619_v12  ;;  %v1588_v36 = vpack.i.b16 %v10302_v62, %v10326_v8  ;;  %v10349_v63 = vcombine.high %v9659_v37, %v9662_v28  ;;  %v11947_v37 = vld [vmem:[#allocation28_spill] sm:$0xff] }
 0x397   :  { %v4215_v23 = vsel %vm3787_vm1, %v2668_v3, 0  ;;  %v1601_v7 = vshrl.u32 %v10275_v52, 16  ;;  %v1602_v9 = vshrl.u32 %v10286_v38, 16  ;;  %v4262_v49 = vsel %vm3787_vm1, %v2680_v19, 0  ;;  %v11948_v28 = vld [vmem:[#allocation16_spill] sm:$0xff] }
 0x398   :  { %v2692_v61 = vpack.i.b16 %v10319_v21, %v10342_v50  ;;  %v1612_v2 = vpack.i.b16 %v10333_v33, %v10349_v63  ;;  %v10361_v17 = vcombine.high %v10180_v57, %v10167_v0  ;;  %v11949_v25 = vcombine.low %v11947_v37, %v11948_v28 }
 0x399   :  { %v2659_v3 = vpack.i.b16 %v2658_v48, %v2657_v45  ;;  %v1589_v12 = vshrl.u32 %v10326_v8, 16  ;;  %v10369_v27 = vpack.i.b16 %v1602_v9, %v1601_v7  ;;  %v11950_v29 = vcombine.high %v11947_v37, %v11948_v28  ;;  %v11952_v8 = vld [vmem:[#allocation43_spill] sm:$0xff] }
 0x39a   :  { %v3339_v58 = vrot.slane %v11949_v25, %v9245_v56  ;;  %8298 = vmatmul.mubr.msk.bf16.vlgmr.msra.gmra.mrb[24].mxu1 %vm3787_vm1, %v1621_v31  ;;  %v10378_v0 = vcombine.high %v10187_v60, %v10190_v5  ;;  %v1590_v57 = vshrl.u32 %v10302_v62, 16  ;;  %v2669_v48 = vshrl.u32 %v10296_v20, 16  ;;  %v11951_v31 = vld [vmem:[#allocation44_spill] sm:$0xff] }
 0x39b   :  { %v3347_v19 = vrot.slane %v11950_v29, %v9245_v56  ;;  %8304 = vmatmul.mubr.msk.bf16.vlgmr.msra.gmra.mrb[28].mxu0 %vm3787_vm1, %v1588_v36  ;;  %8308 = vmatpush3.bf16.xpose.msra.mxu1 %v4215_v23  ;;  %v3348_v45 = vcombine.low %v11952_v8, %v11951_v31  ;;  %v4309_v7 = vsel %vm3787_vm1, %v2692_v61, 0  ;;  %v11953_v36 = vld [vmem:[#allocation41_spill] sm:$0xff]  ;;  %v11954_v23 = vld [vmem:[#allocation42_spill] sm:$0xff]  ;;  %v2670_v62 = vshrl.u32 %v10271_v35, 16 }
 0x39c   :  { %8314 = vmatpush3.bf16.xpose.msra.mxu0 %v4262_v49  ;;  %8309 = vmatprep.mubr.msk.bf16.mxu1 %vm8951_vm0, %v11869_v59  ;;  %v11955_v37 = vcombine.low %v11953_v36, %v11954_v23  ;;  %v11956_v5 = vcombine.high %v11953_v36, %v11954_v23  ;;  %v2681_v61 = vshrl.u32 %v10306_v6, 16  ;;  %v11957_v49 = vcombine.low %v10008_v46, %v10011_v26 }
 0x39d   :  { %v3356_v9 = vcombine.low %v3339_v58, %v3347_v19  ;;  %8315 = vmatprep.mubr.msk.bf16.mxu0 %vm8951_vm0, %v11869_v59  ;;  %8319 = vmatprep.subr.bf16.mxu1 %v11869_v59  ;;  %v3397_v25 = vrot.slane %v7924_v1, %v9245_v56  ;;  %v3355_v58 = vrot.slane %v3348_v45, %v9253_v40  ;;  %v2682_v1 = vshrl.u32 %v10282_v15, 16 }
 0x39e   :  { %v3373_v60 = vrot.slane %v11955_v37, %v9245_v56  ;;  %v3381_v20 = vrot.slane %v11956_v5, %v9245_v56  ;;  %v3389_v28 = vrot.slane %v11957_v49, %v9245_v56  ;;  %8325 = vmatprep.subr.bf16.mxu0 %v11869_v59  ;;  %v3448_v35 = vcombine.low %v10142_v53, %v10157_v39 }
 0x39f   :  { %v3363_v29 = vrot.slane %v3356_v9, %v9253_v40  ;;  %v3456_v31 = vcombine.low %v10160_v11, %v10215_v16  ;;  %v3489_v46 = vrot.slane %v3482_v22, %v9245_v56  ;;  %v3497_v26 = vrot.slane %v7928_v44, %v9245_v56 }
 0x3a0   :  { %v3398_v19 = vcombine.low %v3373_v60, %v3381_v20  ;;  %v3406_v6 = vcombine.low %v3389_v28, %v3397_v25  ;;  %v3498_v39 = vcombine.low %v10223_v30, %v10226_v13  ;;  %v3455_v16 = vrot.slane %v3448_v35, %v9253_v40 }
 0x3a1   :  { %v10424_v8 = vcombine.low %v3355_v58, %v3363_v29  ;;  %v3463_v22 = vrot.slane %v3456_v31, %v9253_v40  ;;  %v3506_v45 = vcombine.low %v3489_v46, %v3497_v26  ;;  %v1624_v10 = vpack.i.b16 %v10378_v0, %v10361_v17 }
 0x3a2   :  { %v3405_v53 = vrot.slane %v3398_v19, %v9253_v40  ;;  %v3413_v11 = vrot.slane %v3406_v6, %v9253_v40  ;;  %8310 = vmatmul.mubr.msk.bf16.vlgmr.msra.gmra.mrb[28].mxu1 %vm3787_vm1, %v1600_v51  ;;  %v1591_v24 = vpack.i.b16 %v1590_v57, %v1589_v12  ;;  %v2671_v44 = vpack.i.b16 %v2670_v62, %v2669_v48 }
 0x3a3   :  { %v3505_v15 = vrot.slane %v3498_v39, %v9253_v40  ;;  %8316 = vmatmul.mubr.msk.bf16.vlgmr.msra.gmra.mrb[32].mxu0 %vm3787_vm1, %v1612_v2  ;;  %8320 = vmatpush3.bf16.xpose.msra.mxu1 %v4309_v7  ;;  %v4356_v30 = vsel %vm3787_vm1, %v2659_v3, 0  ;;  %v10443_v9 = vcombine.low %v3455_v16, %v3463_v22  ;;  %v3513_v52 = vrot.slane %v3506_v45, %v9253_v40 }
 0x3a4   :  { %v10441_v13 = vcombine.low %v3405_v53, %v3413_v11  ;;  %8326 = vmatpush3.bf16.xpose.msra.mxu0 %v4356_v30  ;;  %8321 = vmatprep.mubr.msk.bf16.mxu1 %vm8951_vm0, %v11869_v59  ;;  %v2683_v38 = vpack.i.b16 %v2682_v1, %v2681_v61  ;;  %v2693_v51 = vshrl.u32 %v10342_v50, 16  ;;  %v2694_v12 = vshrl.u32 %v10319_v21, 16 }
 0x3a5   :  { %v3548_v2 = vcombine.low %v10239_v54, %v10251_v41  ;;  %8327 = vmatprep.mubr.msk.bf16.mxu0 %vm8951_vm0, %v11869_v59  ;;  %8331 = vmatprep.subr.bf16.mxu1 %v11869_v59  ;;  %v10455_v3 = vcombine.low %v3505_v15, %v3513_v52  ;;  %v3556_v57 = vcombine.low %v10267_v42, %v10278_v55  ;;  %v3720_v48 = vshrl.u32 %v10424_v8, 16 }
 0x3a6   :  { %v3721_v7 = vshrl.u32 %v10441_v13, 16  ;;  %8337 = vmatprep.subr.bf16.mxu0 %v11869_v59  ;;  %v4403_v21 = vsel %vm3787_vm1, %v2671_v44, 0  ;;  %v3589_v54 = vrot.slane %v3582_v18, %v9245_v56  ;;  %v3597_v41 = vrot.slane %v7932_v32, %v9245_v56 }
 0x3a7   :  { %v3598_v42 = vcombine.low %v10289_v34, %v10311_v43  ;;  %v3563_v55 = vrot.slane %v3556_v57, %v9253_v40  ;;  %v3736_v36 = vshrl.u32 %v10443_v9, 16  ;;  %v3737_v23 = vshrl.u32 %v10455_v3, 16 }
 0x3a8   :  { %v10474_v50 = vpack.i.b16 %v3721_v7, %v3720_v48  ;;  %v3555_v37 = vrot.slane %v3548_v2, %v9253_v40  ;;  %v3606_v60 = vcombine.low %v3589_v54, %v3597_v41  ;;  %v10479_v18 = vcombine.high %v3355_v58, %v3363_v29 }
 0x3a9   :  { %v10481_v5 = vcombine.high %v3405_v53, %v3413_v11  ;;  %v3605_v14 = vrot.slane %v3598_v42, %v9253_v40  ;;  %v10484_v4 = vpack.i.b16 %v3737_v23, %v3736_v36  ;;  %v10486_v34 = vcombine.high %v3455_v16, %v3463_v22 }
 0x3aa   :  { %v10488_v43 = vcombine.high %v3505_v15, %v3513_v52  ;;  %8322 = vmatmul.mubr.msk.bf16.vlgmr.msra.gmra.mrb[32].mxu1 %vm3787_vm1, %v1624_v10  ;;  %v10491_v32 = vcombine.low %v3555_v37, %v3563_v55  ;;  %v3613_v20 = vrot.slane %v3606_v60, %v9253_v40  ;;  %v10496_v61 = vcombine.high %v3555_v37, %v3563_v55  ;;  %v11962_v52 = vld [vmem:[#allocation18_spill] sm:$0xff] }
 0x3ab   :  { %8328 = vmatmul.mubr.msk.bf16.vlgmr.msra.gmra.mrb[36].mxu0 %vm3787_vm1, %v1591_v24  ;;  %8332 = vmatpush3.bf16.xpose.msra.mxu1 %v4403_v21  ;;  %v4450_v49 = vsel %vm3787_vm1, %v2683_v38, 0  ;;  %v3728_v25 = vshrl.u32 %v10479_v18, 16  ;;  %v3729_v58 = vshrl.u32 %v10481_v5, 16  ;;  %v3744_v35 = vshrl.u32 %v10486_v34, 16 }
 0x3ac   :  { %8338 = vmatpush3.bf16.xpose.msra.mxu0 %v4450_v49  ;;  %8333 = vmatprep.mubr.msk.bf16.mxu1 %vm8951_vm0, %v11869_v59  ;;  %v10506_v29 = vcombine.low %v3605_v14, %v3613_v20  ;;  %v10508_v19 = vcombine.high %v3605_v14, %v3613_v20  ;;  %v3745_v6 = vshrl.u32 %v10488_v43, 16  ;;  %v1614_v31 = vshrl.u32 %v10333_v33, 16 }
 0x3ad   :  { %8339 = vmatprep.mubr.msk.bf16.mxu0 %vm8951_vm0, %v11869_v59  ;;  %8343 = vmatprep.subr.bf16.mxu1 %v11869_v59  ;;  %v2695_v46 = vpack.i.b16 %v2694_v12, %v2693_v51  ;;  %v10516_v26 = vpack.i.b16 %v3729_v58, %v3728_v25  ;;  %v3752_v1 = vshrl.u32 %v10491_v32, 16  ;;  %v1613_v16 = vshrl.u32 %v10349_v63, 16 }
 0x3ae   :  { %8349 = vmatprep.subr.bf16.mxu0 %v11869_v59  ;;  %v3753_v53 = vshrl.u32 %v10506_v29, 16  ;;  %v10523_v11 = vpack.i.b16 %v3745_v6, %v3744_v35  ;;  %v3760_v33 = vshrl.u32 %v10496_v61, 16  ;;  %v3761_v22 = vshrl.u32 %v10508_v19, 16 }
 0x3af   :  { %11958 = vst [vmem:[#allocation38_spill] sm:$0xff] %v10516_v26  ;;  %v1615_v10 = vpack.i.b16 %v1614_v31, %v1613_v16  ;;  %v4497_v44 = vsel %vm3787_vm1, %v2695_v46, 0  ;;  %v3718_v15 = vpack.i.b16 %v10441_v13, %v10424_v8  ;;  %v1626_v63 = vshrl.u32 %v10378_v0, 16 }
 0x3b0   :  { %11959 = vst [vmem:[#allocation39_spill] sm:$0xff] %v10523_v11  ;;  %v10528_v45 = vpack.i.b16 %v3753_v53, %v3752_v1  ;;  %v10530_v24 = vpack.i.b16 %v3761_v22, %v3760_v33  ;;  %v3734_v8 = vpack.i.b16 %v10455_v3, %v10443_v9  ;;  %v11961_v0 = vlaneseq }
 0x3b1   :  { %v3782_v38 = vadd.s32 8, %v11962_v52 }
 0x3b2   :  { %11960 = vst [vmem:[#allocation32_spill] sm:$0xff] %v10530_v24  ;;  %8334 = vmatmul.mubr.msk.bf16.vlgmr.msra.gmra.mrb[36].mxu1 %vm3787_vm1, %v10369_v27  ;;  %v1625_v27 = vshrl.u32 %v10361_v17, 16  ;;  %v3784_v13 = vand.u32 127, %v11961_v0  ;;  %v11967_v17 = vld [vmem:[#allocation17_spill] sm:$0xff] }
 0x3b3   :  { %8340 = vmatmul.mubr.msk.bf16.vlgmr.msra.gmra.mrb[40].mxu0 %vm3787_vm1, %v1615_v10  ;;  %8344 = vmatpush3.bf16.xpose.msra.mxu1 %v4497_v44 }
 0x3b4   :  { %8350 = vmatpush3.bf16.msra.mxu0 %v3718_v15  ;;  %8345 = vmatprep.mubr.msk.bf16.mxu1 %vm8951_vm0, %v11869_v59  ;;  %v1627_v30 = vpack.i.b16 %v1626_v63, %v1625_v27  ;;  %vm10555_vm2 = vcmp.ge.s32.totalorder %v11962_v52, %v3784_v13  ;;  %vm10559_vm4 = vcmp.ge.s32.totalorder %v3782_v38, %v3784_v13 }
 0x3b5   :  { %8355 = vmatprep.subr.bf16.mxu1 %v11869_v59  ;;  %8351 = vmatprep.mubr.msk.bf16.mxu0 %vm8951_vm0, %v11869_v59 }
 0x3b6   :  { %8361 = vmatprep.subr.bf16.mxu0 %v11869_v59 }
 0x3ba   :  { %8346 = vmatmul.mubr.msk.bf16.vlgmr.msra.gmra.mrb[40].mxu1 %vm3787_vm1, %v1627_v30 }
 0x3bb   :  { %8356 = vmatpush3.bf16.msra.mxu1 %v3734_v8  ;;  %8357 = vmatprep.mubr.msk.bf16.mxu1 %vm8951_vm0, %v11869_v59 }
 0x3bc   :  { %8367 = vmatprep.subr.bf16.mxu1 %v11869_v59 }
 0x416   :  { %v3828_v51 = vpop.f32.mrb[8].mxu1 }
 0x417   :  { %v10565_v12 = vsel %vm10555_vm2, %v3828_v51, -1e+30  ;;  %v8257_v2 = vpop.f32.mrb[9].mxu1 }
 0x418   :  { %v3831_v3 = vpop.f32.mrb[10].mxu1  ;;  %v4577_v57 = vsel %vm4576_vm3, %v10565_v12, -inf }
 0x419   :  { %v10571_v48 = vsel %vm10559_vm4, %v3831_v3, -1e+30  ;;  %4578 = vmax.xlane.f32.xlu0 %v4577_v57  ;;  %v8258_v7 = vpop.f32.mrb[11].mxu1 }
 0x41a   :  { %v4580_v21 = vsel %vm4576_vm3, %v10571_v48, -inf }
 0x41b   :  { %4581 = vmax.xlane.f32.xlu1 %v4580_v21 }
 0x42f   :  { %v3875_v54 = vpop.f32.mrb[12].mxu1 }
 0x430   :  { %v10577_v41 = vsel %vm10555_vm2, %v3875_v54, -1e+30  ;;  %v8263_v42 = vpop.f32.mrb[13].mxu1 }
 0x431   :  { %v3878_v55 = vpop.f32.mrb[14].mxu1  ;;  %v4583_v36 = vsel %vm4576_vm3, %v10577_v41, -inf }
 0x432   :  { %v10583_v23 = vsel %vm10559_vm4, %v3878_v55, -1e+30  ;;  %4584 = vmax.xlane.f32.xlu0 %v4583_v36  ;;  %v8264_v37 = vpop.f32.mrb[15].mxu1 }
 0x433   :  { %v4586_v60 = vsel %vm4576_vm3, %v10583_v23, -inf }
 0x436   :  { %4587 = vmax.xlane.f32.xlu0 %v4586_v60 }
 0x448   :  { %v3922_v14 = vpop.f32.mrb[16].mxu0 }
 0x449   :  { %v10589_v20 = vsel %vm10555_vm2, %v3922_v14, -1e+30  ;;  %v8269_v49 = vpop.f32.mrb[17].mxu0 }
 0x44a   :  { %v3925_v25 = vpop.f32.mrb[18].mxu0  ;;  %v4589_v58 = vsel %vm4576_vm3, %v10589_v20, -inf }
 0x44b   :  { %v10595_v35 = vsel %vm10559_vm4, %v3925_v25, -1e+30  ;;  %4590 = vmax.xlane.f32.xlu0 %v4589_v58  ;;  %v8270_v6 = vpop.f32.mrb[19].mxu0 }
 0x44c   :  { %v4592_v31 = vsel %vm4576_vm3, %v10595_v35, -inf }
 0x44d   :  { %4593 = vmax.xlane.f32.xlu1 %v4592_v31 }
 0x45a   :  { %v4016_v46 = vpop.f32.mrb[20].mxu0 }
 0x45b   :  { %v8281_v53 = vpop.f32.mrb[21].mxu0  ;;  %v10607_v63 = vsel %vm10555_vm2, %v4016_v46, -1e+30 }
 0x45c   :  { %v4019_v22 = vpop.f32.mrb[22].mxu0  ;;  %v4601_v13 = vsel %vm4576_vm3, %v10607_v63, -inf }
 0x45d   :  { %v3969_v1 = vpop.f32.mrb[16].mxu1  ;;  %v8282_v44 = vpop.f32.mrb[23].mxu0  ;;  %v10617_v0 = vsel %vm10559_vm4, %v4019_v22, -1e+30 }
 0x45e   :  { %v10601_v16 = vsel %vm10555_vm2, %v3969_v1, -1e+30  ;;  %v8275_v33 = vpop.f32.mrb[17].mxu1  ;;  %v4604_v38 = vsel %vm4576_vm3, %v10617_v0, -inf }
 0x45f   :  { %v3972_v10 = vpop.f32.mrb[18].mxu1  ;;  %v4595_v15 = vsel %vm4576_vm3, %v10601_v16, -inf }
 0x460   :  { %v10611_v27 = vsel %vm10559_vm4, %v3972_v10, -1e+30  ;;  %4596 = vmax.xlane.f32.xlu0 %v4595_v15  ;;  %v8276_v30 = vpop.f32.mrb[19].mxu1 }
 0x461   :  { %v4598_v8 = vsel %vm4576_vm3, %v10611_v27, -inf }
 0x462   :  { %4599 = vmax.xlane.f32.xlu1 %v4598_v8 }
 0x464   :  { %4602 = vmax.xlane.f32.xlu0 %v4601_v13 }
 0x465   :  { %v4063_v51 = vpop.f32.mrb[20].mxu1 }
 0x466   :  { %4605 = vmax.xlane.f32.xlu1 %v4604_v38  ;;  %v10625_v2 = vsel %vm10555_vm2, %v4063_v51, -1e+30  ;;  %v4110_v3 = vpop.f32.mrb[24].mxu0  ;;  %v8287_v57 = vpop.f32.mrb[21].mxu1 }
 0x467   :  { %v8293_v7 = vpop.f32.mrb[25].mxu0  ;;  %v4066_v21 = vpop.f32.mrb[22].mxu1  ;;  %v4607_v54 = vsel %vm4576_vm3, %v10625_v2, -inf  ;;  %v10631_v42 = vsel %vm10555_vm2, %v4110_v3, -1e+30 }
 0x468   :  { %v10635_v55 = vsel %vm10559_vm4, %v4066_v21, -1e+30  ;;  %v4113_v36 = vpop.f32.mrb[26].mxu0  ;;  %4608 = vmax.xlane.f32.xlu0 %v4607_v54  ;;  %v8288_v37 = vpop.f32.mrb[23].mxu1  ;;  %v4613_v25 = vsel %vm4576_vm3, %v10631_v42, -inf }
 0x469   :  { %v8294_v60 = vpop.f32.mrb[27].mxu0  ;;  %v4610_v14 = vsel %vm4576_vm3, %v10635_v55, -inf  ;;  %v10641_v49 = vsel %vm10559_vm4, %v4113_v36, -1e+30 }
 0x46a   :  { %4611 = vmax.xlane.f32.xlu1 %v4610_v14  ;;  %v4616_v6 = vsel %vm4576_vm3, %v10641_v49, -inf }
 0x46c   :  { %4614 = vmax.xlane.f32.xlu0 %v4613_v25 }
 0x46d   :  { %v4157_v58 = vpop.f32.mrb[24].mxu1 }
 0x46e   :  { %v10649_v31 = vsel %vm10555_vm2, %v4157_v58, -1e+30  ;;  %v4204_v46 = vpop.f32.mrb[28].mxu0  ;;  %4617 = vmax.xlane.f32.xlu1 %v4616_v6  ;;  %v8299_v1 = vpop.f32.mrb[25].mxu1 }
 0x46f   :  { %v8305_v53 = vpop.f32.mrb[29].mxu0  ;;  %v4160_v33 = vpop.f32.mrb[26].mxu1  ;;  %v4619_v22 = vsel %vm4576_vm3, %v10649_v31, -inf  ;;  %v10655_v10 = vsel %vm10555_vm2, %v4204_v46, -1e+30 }
 0x470   :  { %v10659_v44 = vsel %vm10559_vm4, %v4160_v33, -1e+30  ;;  %v4207_v15 = vpop.f32.mrb[30].mxu0  ;;  %4620 = vmax.xlane.f32.xlu0 %v4619_v22  ;;  %v8300_v30 = vpop.f32.mrb[27].mxu1  ;;  %v4625_v51 = vsel %vm4576_vm3, %v10655_v10, -inf }
 0x471   :  { %v8306_v8 = vpop.f32.mrb[31].mxu0  ;;  %v4622_v13 = vsel %vm4576_vm3, %v10659_v44, -inf  ;;  %v10665_v38 = vsel %vm10559_vm4, %v4207_v15, -1e+30 }
 0x472   :  { %4623 = vmax.xlane.f32.xlu1 %v4622_v13  ;;  %v4628_v57 = vsel %vm4576_vm3, %v10665_v38, -inf }
 0x474   :  { %4626 = vmax.xlane.f32.xlu0 %v4625_v51 }
 0x475   :  { %v4251_v3 = vpop.f32.mrb[28].mxu1 }
 0x476   :  { %v10673_v7 = vsel %vm10555_vm2, %v4251_v3, -1e+30  ;;  %v4298_v21 = vpop.f32.mrb[32].mxu0  ;;  %4629 = vmax.xlane.f32.xlu1 %v4628_v57  ;;  %v8311_v54 = vpop.f32.mrb[29].mxu1 }
 0x477   :  { %v8317_v36 = vpop.f32.mrb[33].mxu0  ;;  %v4254_v37 = vpop.f32.mrb[30].mxu1  ;;  %v4631_v60 = vsel %vm4576_vm3, %v10673_v7, -inf  ;;  %v10679_v14 = vsel %vm10555_vm2, %v4298_v21, -1e+30 }
 0x478   :  { %v10683_v25 = vsel %vm10559_vm4, %v4254_v37, -1e+30  ;;  %v4301_v58 = vpop.f32.mrb[34].mxu0  ;;  %4632 = vmax.xlane.f32.xlu0 %v4631_v60  ;;  %v8312_v6 = vpop.f32.mrb[31].mxu1  ;;  %v4637_v33 = vsel %vm4576_vm3, %v10679_v14, -inf }
 0x479   :  { %v8318_v46 = vpop.f32.mrb[35].mxu0  ;;  %v4634_v1 = vsel %vm4576_vm3, %v10683_v25, -inf  ;;  %v10689_v53 = vsel %vm10559_vm4, %v4301_v58, -1e+30 }
 0x47a   :  { %4635 = vmax.xlane.f32.xlu1 %v4634_v1  ;;  %v4640_v15 = vsel %vm4576_vm3, %v10689_v53, -inf }
 0x47c   :  { %4638 = vmax.xlane.f32.xlu0 %v4637_v33 }
 0x47d   :  { %v4345_v22 = vpop.f32.mrb[32].mxu1 }
 0x47e   :  { %v10697_v30 = vsel %vm10555_vm2, %v4345_v22, -1e+30  ;;  %v4392_v8 = vpop.f32.mrb[36].mxu0  ;;  %4641 = vmax.xlane.f32.xlu1 %v4640_v15  ;;  %v8323_v13 = vpop.f32.mrb[33].mxu1 }
 0x47f   :  { %v8329_v51 = vpop.f32.mrb[37].mxu0  ;;  %v4348_v3 = vpop.f32.mrb[34].mxu1  ;;  %v4643_v57 = vsel %vm4576_vm3, %v10697_v30, -inf  ;;  %v10703_v21 = vsel %vm10555_vm2, %v4392_v8, -1e+30 }
 0x480   :  { %v10707_v54 = vsel %vm10559_vm4, %v4348_v3, -1e+30  ;;  %v4395_v36 = vpop.f32.mrb[38].mxu0  ;;  %4644 = vmax.xlane.f32.xlu0 %v4643_v57  ;;  %v8324_v37 = vpop.f32.mrb[35].mxu1  ;;  %v4649_v46 = vsel %vm4576_vm3, %v10703_v21, -inf }
 0x481   :  { %v8330_v60 = vpop.f32.mrb[39].mxu0  ;;  %v4646_v58 = vsel %vm4576_vm3, %v10707_v54, -inf  ;;  %v10713_v6 = vsel %vm10559_vm4, %v4395_v36, -1e+30 }
 0x482   :  { %4647 = vmax.xlane.f32.xlu1 %v4646_v58  ;;  %v4652_v33 = vsel %vm4576_vm3, %v10713_v6, -inf }
 0x484   :  { %4650 = vmax.xlane.f32.xlu0 %v4649_v46 }
 0x485   :  { %v4439_v1 = vpop.f32.mrb[36].mxu1 }
 0x486   :  { %v10721_v22 = vsel %vm10555_vm2, %v4439_v1, -1e+30  ;;  %v4486_v15 = vpop.f32.mrb[40].mxu0  ;;  %4653 = vmax.xlane.f32.xlu1 %v4652_v33  ;;  %v8335_v8 = vpop.f32.mrb[37].mxu1 }
 0x487   :  { %v8341_v13 = vpop.f32.mrb[41].mxu0  ;;  %v4442_v51 = vpop.f32.mrb[38].mxu1  ;;  %v4655_v3 = vsel %vm4576_vm3, %v10721_v22, -inf  ;;  %v10727_v57 = vsel %vm10555_vm2, %v4486_v15, -1e+30 }
 0x488   :  { %v10731_v36 = vsel %vm10559_vm4, %v4442_v51, -1e+30  ;;  %v4489_v37 = vpop.f32.mrb[42].mxu0  ;;  %4656 = vmax.xlane.f32.xlu0 %v4655_v3  ;;  %v8336_v60 = vpop.f32.mrb[39].mxu1  ;;  %v4661_v33 = vsel %vm4576_vm3, %v10727_v57, -inf }
 0x489   :  { %v8342_v58 = vpop.f32.mrb[43].mxu0  ;;  %v4658_v46 = vsel %vm4576_vm3, %v10731_v36, -inf  ;;  %v10737_v1 = vsel %vm10559_vm4, %v4489_v37, -1e+30 }
 0x48a   :  { %4659 = vmax.xlane.f32.xlu1 %v4658_v46  ;;  %v4664_v8 = vsel %vm4576_vm3, %v10737_v1, -inf }
 0x48c   :  { %4662 = vmax.xlane.f32.xlu0 %v4661_v33  ;;  %v10757_v33 = vpop.permute.xlu1 %2706 }
 0x48d   :  { %v4533_v15 = vpop.f32.mrb[40].mxu1 }
 0x48e   :  { %v10745_v13 = vsel %vm10555_vm2, %v4533_v15, -1e+30  ;;  %4665 = vmax.xlane.f32.xlu1 %v4664_v8  ;;  %v8347_v51 = vpop.f32.mrb[41].mxu1 }
 0x48f   :  { %v4536_v3 = vpop.f32.mrb[42].mxu1  ;;  %v4667_v37 = vsel %vm4576_vm3, %v10745_v13, -inf }
 0x490   :  { %v10751_v60 = vsel %vm10559_vm4, %v4536_v3, -1e+30  ;;  %4668 = vmax.xlane.f32.xlu0 %v4667_v37  ;;  %v8348_v58 = vpop.f32.mrb[43].mxu1 }
 0x491   :  { %v4670_v46 = vsel %vm4576_vm3, %v10751_v60, -inf }
 0x492   :  { %4671 = vmax.xlane.f32.xlu1 %v4670_v46 }
 0x4a6   :  { %2714 = vrot.lane.b32.xlu0 %v11967_v17, %s8944_s0  ;;  %v4579_v15 = vpop.xlane.xlu0 %4578 }
 0x4a7   :  { %v4673_v39 = vsub.f32 %v10565_v12, %v4579_v15 }
 0x4a8   :  { %v4582_v8 = vpop.xlane.xlu1 %4581 }
 0x4a9   :  { %v4674_v51 = vsub.f32 %v10571_v48, %v4582_v8  ;;  %v4705_v3 = vmul.f32 1.442695, %v4673_v39 }
 0x4ab   :  { %v4707_v9 = vmul.f32 1.442695, %v4674_v51 }
 0x4ad   :  { %8642 = vpow2.f32 %v4707_v9 }
 0x4ae   :  { %8644 = vpow2.f32 %v4705_v3 }
 0x4b7   :  { %v10761_v37 = vpop.eup %8642 }
 0x4b8   :  { %v4772_v58 = vsel %vm4576_vm3, %v10761_v37, 0.0  ;;  %v10765_v46 = vpop.eup %8644 }
 0x4b9   :  { %4773 = vadd.xlane.f32.xlu1 %v4772_v58  ;;  %v4769_v48 = vsel %vm4576_vm3, %v10765_v46, 0.0 }
 0x4bf   :  { %v4585_v28 = vpop.xlane.xlu0 %4584 }
 0x4c0   :  { %v4675_v62 = vsub.f32 %v10577_v41, %v4585_v28 }
 0x4c2   :  { %v4709_v8 = vmul.f32 1.442695, %v4675_v62 }
 0x4c3   :  { %v4588_v12 = vpop.xlane.xlu0 %4587 }
 0x4c4   :  { %8646 = vpow2.f32 %v4709_v8  ;;  %v4676_v39 = vsub.f32 %v10583_v23, %v4588_v12 }
 0x4c5   :  { %4770 = vadd.xlane.f32.xlu0 %v4769_v48 }
 0x4c6   :  { %v4711_v15 = vmul.f32 1.442695, %v4676_v39 }
 0x4c8   :  { %8648 = vpow2.f32 %v4711_v15 }
 0x4ce   :  { %v10771_v51 = vpop.eup %8646 }
 0x4cf   :  { %v4775_v9 = vsel %vm4576_vm3, %v10771_v51, 0.0 }
 0x4d0   :  { %4776 = vadd.xlane.f32.xlu0 %v4775_v9 }
 0x4d2   :  { %v10775_v3 = vpop.eup %8648 }
 0x4d3   :  { %v4778_v28 = vsel %vm4576_vm3, %v10775_v3, 0.0 }
 0x4d4   :  { %4779 = vadd.xlane.f32.xlu1 %v4778_v28 }
 0x4d8   :  { %v4591_v62 = vpop.xlane.xlu0 %4590 }
 0x4d9   :  { %v4677_v41 = vsub.f32 %v10589_v20, %v4591_v62 }
 0x4da   :  { %v4594_v58 = vpop.xlane.xlu1 %4593 }
 0x4db   :  { %v4713_v48 = vmul.f32 1.442695, %v4677_v41  ;;  %v4678_v23 = vsub.f32 %v10595_v35, %v4594_v58 }
 0x4dd   :  { %8650 = vpow2.f32 %v4713_v48  ;;  %v4715_v8 = vmul.f32 1.442695, %v4678_v23 }
 0x4df   :  { %8652 = vpow2.f32 %v4715_v8 }
 0x4e7   :  { %v10781_v12 = vpop.eup %8650 }
 0x4e8   :  { %v4781_v39 = vsel %vm4576_vm3, %v10781_v12, 0.0 }
 0x4e9   :  { %v10785_v15 = vpop.eup %8652  ;;  %4782 = vadd.xlane.f32.xlu0 %v4781_v39 }
 0x4ea   :  { %v4784_v28 = vsel %vm4576_vm3, %v10785_v15, 0.0 }
 0x4eb   :  { %4785 = vadd.xlane.f32.xlu1 %v4784_v28 }
 0x4ed   :  { %v4597_v9 = vpop.xlane.xlu0 %4596 }
 0x4ee   :  { %v4679_v20 = vsub.f32 %v10601_v16, %v4597_v9 }
 0x4ef   :  { %v4600_v62 = vpop.xlane.xlu1 %4599 }
 0x4f0   :  { %v4717_v35 = vmul.f32 1.442695, %v4679_v20  ;;  %v4680_v41 = vsub.f32 %v10611_v27, %v4600_v62 }
 0x4f1   :  { %v4603_v58 = vpop.xlane.xlu0 %4602 }
 0x4f2   :  { %8654 = vpow2.f32 %v4717_v35  ;;  %v4681_v48 = vsub.f32 %v10607_v63, %v4603_v58  ;;  %v4719_v8 = vmul.f32 1.442695, %v4680_v41 }
 0x4f3   :  { %v4606_v23 = vpop.xlane.xlu1 %4605 }
 0x4f4   :  { %v4721_v52 = vmul.f32 1.442695, %v4681_v48 }
 0x4f5   :  { %v4609_v39 = vpop.xlane.xlu0 %4608 }
 0x4f6   :  { %8656 = vpow2.f32 %v4721_v52  ;;  %v4683_v24 = vsub.f32 %v10625_v2, %v4609_v39 }
 0x4f7   :  { %8658 = vpow2.f32 %v4719_v8  ;;  %v4612_v11 = vpop.xlane.xlu1 %4611 }
 0x4f8   :  { %v4725_v26 = vmul.f32 1.442695, %v4683_v24  ;;  %v4684_v16 = vsub.f32 %v10635_v55, %v4612_v11 }
 0x4f9   :  { %v4615_v9 = vpop.xlane.xlu0 %4614 }
 0x4fa   :  { %8660 = vpow2.f32 %v4725_v26  ;;  %v4727_v27 = vmul.f32 1.442695, %v4684_v16  ;;  %v4685_v20 = vsub.f32 %v10631_v42, %v4615_v9 }
 0x4fb   :  { %v4618_v63 = vpop.xlane.xlu1 %4617 }
 0x4fc   :  { %v10794_v28 = vpop.eup %8654  ;;  %2722 = vrot.lane.b32.xlu1 %v11967_v17, %s8949_s9  ;;  %8662 = vpow2.f32 %v4727_v27  ;;  %v4729_v11 = vmul.f32 1.442695, %v4685_v20 }
 0x4fd   :  { %v4787_v62 = vsel %vm4576_vm3, %v10794_v28, 0.0  ;;  %v4621_v52 = vpop.xlane.xlu0 %4620 }
 0x4fe   :  { %4788 = vadd.xlane.f32.xlu0 %v4787_v62  ;;  %v4687_v24 = vsub.f32 %v10649_v31, %v4621_v52  ;;  %8664 = vpow2.f32 %v4729_v11  ;;  %v4682_v11 = vsub.f32 %v10617_v0, %v4606_v23 }
 0x4ff   :  { %v4624_v42 = vpop.xlane.xlu1 %4623 }
 0x500   :  { %v10801_v2 = vpop.eup %8656  ;;  %v4733_v41 = vmul.f32 1.442695, %v4687_v24 }
 0x501   :  { %v4793_v26 = vsel %vm4576_vm3, %v10801_v2, 0.0  ;;  %v10806_v55 = vpop.eup %8658  ;;  %v4627_v35 = vpop.xlane.xlu0 %4626 }
 0x502   :  { %4794 = vadd.xlane.f32.xlu0 %v4793_v26  ;;  %v4689_v58 = vsub.f32 %v10655_v10, %v4627_v35  ;;  %v4790_v48 = vsel %vm4576_vm3, %v10806_v55, 0.0  ;;  %8666 = vpow2.f32 %v4733_v41 }
 0x503   :  { %v4630_v16 = vpop.xlane.xlu1 %4629 }
 0x504   :  { %v10811_v8 = vpop.eup %8660  ;;  %v4737_v31 = vmul.f32 1.442695, %v4689_v58 }
 0x505   :  { %v4633_v39 = vpop.xlane.xlu0 %4632  ;;  %v4799_v27 = vsel %vm4576_vm3, %v10811_v8, 0.0 }
 0x506   :  { %4791 = vadd.xlane.f32.xlu0 %v4790_v48  ;;  %v4691_v9 = vsub.f32 %v10673_v7, %v4633_v39  ;;  %v10816_v20 = vpop.eup %8662  ;;  %8668 = vpow2.f32 %v4737_v31  ;;  %v4723_v48 = vmul.f32 1.442695, %v4682_v11  ;;  %v4686_v39 = vsub.f32 %v10641_v49, %v4618_v63 }
 0x507   :  { %v4802_v24 = vsel %vm4576_vm3, %v10816_v20, 0.0  ;;  %v4636_v35 = vpop.xlane.xlu1 %4635 }
 0x508   :  { %v4741_v10 = vmul.f32 1.442695, %v4691_v9  ;;  %v10822_v26 = vpop.eup %8664 }
 0x509   :  { %v4639_v62 = vpop.xlane.xlu0 %4638 }
 0x50a   :  { %4800 = vadd.xlane.f32.xlu0 %v4799_v27  ;;  %v4693_v52 = vsub.f32 %v10679_v14, %v4639_v62  ;;  %8670 = vpow2.f32 %v4741_v10  ;;  %v4805_v14 = vsel %vm4576_vm3, %v10822_v26, 0.0  ;;  %v4731_v62 = vmul.f32 1.442695, %v4686_v39 }
 0x50b   :  { %v4642_v23 = vpop.xlane.xlu1 %4641  ;;  %v4688_v10 = vsub.f32 %v10659_v44, %v4624_v42 }
 0x50c   :  { %v4745_v41 = vmul.f32 1.442695, %v4693_v52  ;;  %v10828_v31 = vpop.eup %8666 }
 0x50d   :  { %v4645_v7 = vpop.xlane.xlu0 %4644 }
 0x50e   :  { %4803 = vadd.xlane.f32.xlu0 %v4802_v24  ;;  %v4695_v58 = vsub.f32 %v10697_v30, %v4645_v7  ;;  %8672 = vpow2.f32 %v4745_v41  ;;  %v4811_v30 = vsel %vm4576_vm3, %v10828_v31, 0.0  ;;  %v4735_v24 = vmul.f32 1.442695, %v4688_v10 }
 0x50f   :  { %8674 = vpow2.f32 %v4723_v48  ;;  %v4690_v7 = vsub.f32 %v10665_v38, %v4630_v16  ;;  %v4648_v44 = vpop.xlane.xlu1 %4647  ;;  %v4694_v10 = vsub.f32 %v10689_v53, %v4642_v23 }
 0x510   :  { %v4749_v9 = vmul.f32 1.442695, %v4695_v58  ;;  %v10834_v49 = vpop.eup %8668 }
 0x511   :  { %v4651_v0 = vpop.xlane.xlu0 %4650  ;;  %v4739_v39 = vmul.f32 1.442695, %v4690_v7 }
 0x512   :  { %4806 = vadd.xlane.f32.xlu0 %v4805_v14  ;;  %v4697_v27 = vsub.f32 %v10703_v21, %v4651_v0  ;;  %8676 = vpow2.f32 %v4749_v9  ;;  %v4817_v21 = vsel %vm4576_vm3, %v10834_v49, 0.0 }
 0x513   :  { %8678 = vpow2.f32 %v4731_v62  ;;  %v4654_v9 = vpop.xlane.xlu1 %4653 }
 0x514   :  { %v4753_v52 = vmul.f32 1.442695, %v4697_v27  ;;  %v10840_v41 = vpop.eup %8670 }
 0x515   :  { %v4657_v63 = vpop.xlane.xlu0 %4656  ;;  %v4823_v14 = vsel %vm4576_vm3, %v10840_v41, 0.0 }
 0x516   :  { %4812 = vadd.xlane.f32.xlu0 %v4811_v30  ;;  %v4699_v11 = vsub.f32 %v10721_v22, %v4657_v63  ;;  %8680 = vpow2.f32 %v4753_v52  ;;  %v4692_v22 = vsub.f32 %v10683_v25, %v4636_v35 }
 0x517   :  { %8682 = vpow2.f32 %v4735_v24  ;;  %v4660_v24 = vpop.xlane.xlu1 %4659 }
 0x518   :  { %v4757_v58 = vmul.f32 1.442695, %v4699_v11  ;;  %v10846_v38 = vpop.eup %8672  ;;  %v4696_v11 = vsub.f32 %v10707_v54, %v4648_v44 }
 0x519   :  { %v4663_v42 = vpop.xlane.xlu0 %4662  ;;  %v10848_v0 = vpop.eup %8674  ;;  %v4829_v25 = vsel %vm4576_vm3, %v10846_v38, 0.0 }
 0x51a   :  { %4818 = vadd.xlane.f32.xlu0 %v4817_v21  ;;  %v4701_v48 = vsub.f32 %v10727_v57, %v4663_v42  ;;  %8684 = vpow2.f32 %v4757_v58  ;;  %v4743_v57 = vmul.f32 1.442695, %v4692_v22  ;;  %v4796_v30 = vsel %vm4576_vm3, %v10848_v0, 0.0 }
 0x51b   :  { %8686 = vpow2.f32 %v4739_v39  ;;  %v4751_v42 = vmul.f32 1.442695, %v4696_v11  ;;  %v4698_v58 = vsub.f32 %v10713_v6, %v4654_v9  ;;  %v4666_v22 = vpop.xlane.xlu1 %4665 }
 0x51c   :  { %v4761_v27 = vmul.f32 1.442695, %v4701_v48  ;;  %v10854_v35 = vpop.eup %8676 }
 0x51d   :  { %v4669_v16 = vpop.xlane.xlu0 %4668  ;;  %v10858_v63 = vpop.eup %8678  ;;  %v4835_v53 = vsel %vm4576_vm3, %v10854_v35, 0.0 }
 0x51e   :  { %4824 = vadd.xlane.f32.xlu0 %v4823_v14  ;;  %v4703_v62 = vsub.f32 %v10745_v13, %v4669_v16  ;;  %8688 = vpow2.f32 %v4761_v27  ;;  %v4747_v13 = vmul.f32 1.442695, %v4694_v10  ;;  %v4808_v7 = vsel %vm4576_vm3, %v10858_v63, 0.0 }
 0x51f   :  { %8690 = vpow2.f32 %v4743_v57  ;;  %v4755_v14 = vmul.f32 1.442695, %v4698_v58  ;;  %v4700_v16 = vsub.f32 %v10731_v36, %v4660_v24  ;;  %v4702_v10 = vsub.f32 %v10737_v1, %v4666_v22 }
 0x520   :  { %4797 = vadd.xlane.f32.xlu1 %v4796_v30  ;;  %v4765_v52 = vmul.f32 1.442695, %v4703_v62  ;;  %v10863_v23 = vpop.eup %8680  ;;  %v4672_v30 = vpop.xlane.xlu1 %4671 }
 0x521   :  { %v10867_v21 = vpop.eup %8682  ;;  %v4841_v54 = vsel %vm4576_vm3, %v10863_v23, 0.0  ;;  %v4759_v57 = vmul.f32 1.442695, %v4700_v16  ;;  %v4763_v11 = vmul.f32 1.442695, %v4702_v10  ;;  %v2715_v10 = vpop.permute.xlu0 %2714 }
 0x522   :  { %4830 = vadd.xlane.f32.xlu0 %v4829_v25  ;;  %8692 = vpow2.f32 %v4765_v52  ;;  %v4814_v48 = vsel %vm4576_vm3, %v10867_v21, 0.0 }
 0x523   :  { %8694 = vpow2.f32 %v4747_v13 }
 0x524   :  { %4809 = vadd.xlane.f32.xlu1 %v4808_v7  ;;  %v10872_v44 = vpop.eup %8684  ;;  %8696 = vpow2.f32 %v4751_v42 }
 0x525   :  { %v10876_v39 = vpop.eup %8686  ;;  %v4847_v6 = vsel %vm4576_vm3, %v10872_v44, 0.0  ;;  %8698 = vpow2.f32 %v4755_v14 }
 0x526   :  { %4836 = vadd.xlane.f32.xlu0 %v4835_v53  ;;  %v4820_v27 = vsel %vm4576_vm3, %v10876_v39, 0.0  ;;  %8700 = vpow2.f32 %v4759_v57  ;;  %v4704_v53 = vsub.f32 %v10751_v60, %v4672_v30 }
 0x527   :  { %8702 = vpow2.f32 %v4763_v11 }
 0x528   :  { %4815 = vadd.xlane.f32.xlu1 %v4814_v48  ;;  %v10881_v9 = vpop.eup %8688  ;;  %v4767_v42 = vmul.f32 1.442695, %v4704_v53 }
 0x529   :  { %v10885_v62 = vpop.eup %8690  ;;  %v4853_v25 = vsel %vm4576_vm3, %v10881_v9, 0.0 }
 0x52a   :  { %4842 = vadd.xlane.f32.xlu0 %v4841_v54  ;;  %v4826_v52 = vsel %vm4576_vm3, %v10885_v62, 0.0  ;;  %8704 = vpow2.f32 %v4767_v42  ;;  %v3750_v42 = vpack.i.b16 %v10506_v29, %v10491_v32  ;;  %v2777_v32 = vshrl.u32 %v10757_v33, 16 }
 0x52c   :  { %4821 = vadd.xlane.f32.xlu1 %v4820_v27  ;;  %v10890_v36 = vpop.eup %8692 }
 0x52d   :  { %v10894_v13 = vpop.eup %8694  ;;  %v4859_v1 = vsel %vm4576_vm3, %v10890_v36, 0.0 }
 0x52e   :  { %4848 = vadd.xlane.f32.xlu0 %v4847_v6  ;;  %v4832_v24 = vsel %vm4576_vm3, %v10894_v13, 0.0  ;;  %v10901_v7 = vpop.eup %8696 }
 0x52f   :  { %v4838_v58 = vsel %vm4576_vm3, %v10901_v7, 0.0  ;;  %v10905_v54 = vpop.eup %8698 }
 0x530   :  { %4827 = vadd.xlane.f32.xlu1 %v4826_v52  ;;  %v4844_v60 = vsel %vm4576_vm3, %v10905_v54, 0.0  ;;  %v10909_v48 = vpop.eup %8700 }
 0x531   :  { %v4850_v22 = vsel %vm4576_vm3, %v10909_v48, 0.0  ;;  %v10913_v14 = vpop.eup %8702 }
 0x532   :  { %4854 = vadd.xlane.f32.xlu0 %v4853_v25  ;;  %v4856_v16 = vsel %vm4576_vm3, %v10913_v14, 0.0 }
 0x534   :  { %4833 = vadd.xlane.f32.xlu1 %v4832_v24  ;;  %v10917_v6 = vpop.eup %8704 }
 0x535   :  { %v4862_v27 = vsel %vm4576_vm3, %v10917_v6, 0.0 }
 0x536   :  { %4860 = vadd.xlane.f32.xlu0 %v4859_v1 }
 0x538   :  { %4839 = vadd.xlane.f32.xlu1 %v4838_v58 }
 0x53c   :  { %4845 = vadd.xlane.f32.xlu1 %v4844_v60 }
 0x540   :  { %4851 = vadd.xlane.f32.xlu1 %v4850_v22 }
 0x544   :  { %4857 = vadd.xlane.f32.xlu1 %v4856_v16 }
 0x546   :  { %v4774_v57 = vpop.xlane.xlu1 %4773 }
 0x547   :  { %8706 = vrcp.f32 %v4774_v57  ;;  %v2774_v57 = vpack.i.b16 %v10757_v33, %v11967_v17 }
 0x548   :  { %4863 = vadd.xlane.f32.xlu1 %v4862_v27  ;;  %v2776_v27 = vshrl.u32 %v11967_v17, 16 }
 0x551   :  { %v8707_v30 = vpop.eup %8706 }
 0x552   :  { %v4771_v25 = vpop.xlane.xlu0 %4770  ;;  %v4898_v52 = vmul.f32 %v8707_v30, %v10761_v37 }
 0x553   :  { %8708 = vrcp.f32 %v4771_v25 }
 0x55d   :  { %v8709_v11 = vpop.eup %8708  ;;  %v4777_v1 = vpop.xlane.xlu0 %4776 }
 0x55e   :  { %v4897_v53 = vmul.f32 %v8709_v11, %v10765_v46  ;;  %8710 = vrcp.f32 %v4777_v1 }
 0x560   :  { %v4929_v24 = vpack.c.bf16 %v4898_v52, %v4897_v53  ;;  %v2784_v52 = vshrl.u32 %v2715_v10, 16 }
 0x561   :  { %v4780_v58 = vpop.xlane.xlu1 %4779 }
 0x562   :  { %8352 = vmatmul.mubr.msk.bf16.vlgmr.msra.gmra.mrb[44].mxu0 %vm4576_vm3, %v4929_v24  ;;  %8712 = vrcp.f32 %v4780_v58  ;;  %v3191_v24 = vrot.slane %v2774_v57, %v9245_v56 }
 0x563   :  { %8362 = vmatpush3.bf16.msra.mxu0 %v3750_v42  ;;  %8363 = vmatprep.mubr.msk.bf16.mxu0 %vm8951_vm0, %v11869_v59 }
 0x564   :  { %8373 = vmatprep.subr.bf16.mxu0 %v11869_v59 }
 0x568   :  { %v8711_v37 = vpop.eup %8710 }
 0x569   :  { %v4899_v46 = vmul.f32 %v8711_v37, %v10771_v51  ;;  %v2778_v51 = vpack.i.b16 %v2777_v32, %v2776_v27 }
 0x56b   :  { %v3250_v1 = vcombine.high %v2778_v51, %v9237_v47 }
 0x56c   :  { %v8713_v60 = vpop.eup %8712 }
 0x56d   :  { %v4900_v22 = vmul.f32 %v8713_v60, %v10775_v3  ;;  %v3184_v3 = vcombine.high %v2774_v57, %v9237_v47  ;;  %v3264_v32 = vrot.slane %v3250_v1, %v9245_v56 }
 0x56f   :  { %v4930_v16 = vpack.c.bf16 %v4900_v22, %v4899_v46  ;;  %v3198_v17 = vrot.slane %v3184_v3, %v9245_v56 }
 0x571   :  { %8358 = vmatmul.mubr.msk.bf16.vlgmr.msra.gmra.mrb[44].mxu1 %vm4576_vm3, %v4930_v16 }
 0x572   :  { %8369 = vmatprep.mubr.msk.bf16.mxu1 %vm8951_vm0, %v11869_v59 }
 0x576   :  { %v4783_v29 = vpop.xlane.xlu0 %4782 }
 0x577   :  { %8714 = vrcp.f32 %v4783_v29 }
 0x578   :  { %v4786_v25 = vpop.xlane.xlu1 %4785 }
 0x579   :  { %8716 = vrcp.f32 %v4786_v25 }
 0x57c   :  { %v2723_v30 = vpop.permute.xlu1 %2722 }
 0x57d   :  { %v2782_v11 = vpack.i.b16 %v2723_v30, %v2715_v10  ;;  %v2785_v53 = vshrl.u32 %v2723_v30, 16  ;;  %v3257_v10 = vrot.slane %v2778_v51, %v9245_v56 }
 0x57f   :  { %v2786_v42 = vpack.i.b16 %v2785_v53, %v2784_v52  ;;  %v3199_v58 = vcombine.high %v2782_v11, %v9237_v47  ;;  %v3206_v37 = vrot.slane %v2782_v11, %v9245_v56 }
 0x581   :  { %v8715_v33 = vpop.eup %8714  ;;  %v3213_v60 = vrot.slane %v3199_v58, %v9245_v56  ;;  %v3214_v46 = vcombine.low %v3191_v24, %v3206_v37  ;;  %v3215_v22 = vcombine.high %v3191_v24, %v3206_v37  ;;  %v3265_v16 = vcombine.high %v2786_v42, %v9237_v47 }
 0x582   :  { %v4901_v29 = vmul.f32 %v8715_v33, %v10781_v12  ;;  %v3272_v27 = vrot.slane %v2786_v42, %v9245_v56 }
 0x583   :  { %v8717_v57 = vpop.eup %8716  ;;  %v3222_v25 = vrot.slane %v3214_v46, %v9253_v40  ;;  %v3229_v3 = vrot.slane %v3215_v22, %v9253_v40  ;;  %v3230_v30 = vcombine.low %v3198_v17, %v3213_v60  ;;  %v3231_v52 = vcombine.high %v3198_v17, %v3213_v60 }
 0x584   :  { %v4902_v11 = vmul.f32 %v8717_v57, %v10785_v15  ;;  %v3279_v53 = vrot.slane %v3265_v16, %v9245_v56  ;;  %v3280_v24 = vcombine.low %v3257_v10, %v3272_v27  ;;  %v3281_v58 = vcombine.high %v3257_v10, %v3272_v27 }
 0x585   :  { %v3238_v51 = vrot.slane %v3230_v30, %v9253_v40  ;;  %v3245_v1 = vrot.slane %v3231_v52, %v9253_v40  ;;  %v3616_v12 = vcombine.low %v3222_v25, %v3229_v3  ;;  %v7933_v37 = vcombine.high %v3222_v25, %v3229_v3 }
 0x586   :  { %v3288_v42 = vrot.slane %v3280_v24, %v9253_v40  ;;  %v3295_v33 = vrot.slane %v3281_v58, %v9253_v40  ;;  %v3296_v46 = vcombine.low %v3264_v32, %v3279_v53  ;;  %v3297_v22 = vcombine.high %v3264_v32, %v3279_v53 }
 0x587   :  { %v3623_v17 = vrot.slane %v3616_v12, %v9245_v56  ;;  %v3631_v15 = vrot.slane %v7933_v37, %v9245_v56  ;;  %v3632_v60 = vcombine.low %v3238_v51, %v3245_v1  ;;  %v7934_v16 = vcombine.high %v3238_v51, %v3245_v1 }
 0x588   :  { %v3304_v10 = vrot.slane %v3296_v46, %v9253_v40  ;;  %v3311_v27 = vrot.slane %v3297_v22, %v9253_v40  ;;  %v3666_v57 = vcombine.low %v3288_v42, %v3295_v33  ;;  %v7935_v30 = vcombine.high %v3288_v42, %v3295_v33 }
 0x589   :  { %v3639_v25 = vrot.slane %v3632_v60, %v9245_v56  ;;  %v3647_v3 = vrot.slane %v7934_v16, %v9245_v56  ;;  %v4931_v24 = vpack.c.bf16 %v4902_v11, %v4901_v29  ;;  %v3648_v51 = vcombine.low %v3623_v17, %v3631_v15 }
 0x58a   :  { %v3673_v32 = vrot.slane %v3666_v57, %v9245_v56  ;;  %v3681_v53 = vrot.slane %v7935_v30, %v9245_v56  ;;  %v3682_v58 = vcombine.low %v3304_v10, %v3311_v27  ;;  %v7936_v12 = vcombine.high %v3304_v10, %v3311_v27 }
 0x58b   :  { %v4789_v52 = vpop.xlane.xlu0 %4788  ;;  %8364 = vmatmul.mubr.msk.bf16.vlgmr.msra.gmra.mrb[48].mxu0 %vm4576_vm3, %v4931_v24  ;;  %v3656_v1 = vcombine.low %v3639_v25, %v3647_v3  ;;  %v10977_v17 = vrot.slane %v3648_v51, %v9253_v40 }
 0x58c   :  { %8374 = vmatpush3.bf16.msra.mxu0 %v10474_v50  ;;  %v3689_v42 = vrot.slane %v3682_v58, %v9245_v56  ;;  %v3697_v33 = vrot.slane %v7936_v12, %v9245_v56  ;;  %v3698_v46 = vcombine.low %v3673_v32, %v3681_v53  ;;  %8375 = vmatprep.mubr.msk.bf16.mxu0 %vm8951_vm0, %v11869_v59  ;;  %8718 = vrcp.f32 %v4789_v52 }
 0x58d   :  { %8385 = vmatprep.subr.bf16.mxu0 %v11869_v59  ;;  %v10974_v29 = vrot.slane %v3656_v1, %v9253_v40 }
 0x58e   :  { %v3706_v11 = vcombine.low %v3689_v42, %v3697_v33  ;;  %v10980_v50 = vrot.slane %v3698_v46, %v9253_v40 }
 0x58f   :  { %v4795_v37 = vpop.xlane.xlu0 %4794  ;;  %v3664_v60 = vcombine.low %v10977_v17, %v10974_v29 }
 0x590   :  { %v10983_v15 = vrot.slane %v3706_v11, %v9253_v40 }
 0x592   :  { %v3714_v16 = vcombine.low %v10980_v50, %v10983_v15 }
 0x593   :  { %v4792_v22 = vpop.xlane.xlu0 %4791 }
 0x594   :  { %8720 = vrcp.f32 %v4792_v22  ;;  %v3766_v27 = vpack.i.b16 %v3714_v16, %v3664_v60  ;;  %v3769_v51 = vshrl.u32 %v3714_v16, 16 }
 0x596   :  { %8368 = vmatpush3.bf16.msra.mxu1 %v3766_v27  ;;  %v8719_v30 = vpop.eup %8718 }
 0x597   :  { %v4801_v10 = vpop.xlane.xlu0 %4800  ;;  %8379 = vmatprep.subr.bf16.mxu1 %v11869_v59  ;;  %v4903_v25 = vmul.f32 %v8719_v30, %v10794_v28 }
 0x598   :  { %8722 = vrcp.f32 %v4801_v10 }
 0x59b   :  { %v4804_v57 = vpop.xlane.xlu0 %4803 }
 0x59c   :  { %8724 = vrcp.f32 %v4804_v57 }
 0x59d   :  { %8726 = vrcp.f32 %v4795_v37 }
 0x59e   :  { %v8721_v52 = vpop.eup %8720 }
 0x59f   :  { %v4904_v3 = vmul.f32 %v8721_v52, %v10806_v55  ;;  %v4807_v24 = vpop.xlane.xlu0 %4806  ;;  %v3768_v55 = vshrl.u32 %v3664_v60, 16 }
 0x5a1   :  { %v4932_v32 = vpack.c.bf16 %v4904_v3, %v4903_v25  ;;  %v3770_v46 = vpack.i.b16 %v3769_v51, %v3768_v55 }
 0x5a2   :  { %v8723_v53 = vpop.eup %8722 }
 0x5a3   :  { %8370 = vmatmul.mubr.msk.bf16.vlgmr.msra.gmra.mrb[48].mxu1 %vm4576_vm3, %v4932_v32  ;;  %v4813_v58 = vpop.xlane.xlu0 %4812  ;;  %v4907_v1 = vmul.f32 %v8723_v53, %v10811_v8 }
 0x5a4   :  { %8380 = vmatpush3.bf16.msra.mxu1 %v10484_v4  ;;  %8381 = vmatprep.mubr.msk.bf16.mxu1 %vm8951_vm0, %v11869_v59 }
 0x5a5   :  { %8391 = vmatprep.subr.bf16.mxu1 %v11869_v59 }
 0x5a6   :  { %v8725_v12 = vpop.eup %8724 }
 0x5a7   :  { %v4908_v28 = vmul.f32 %v8725_v12, %v10816_v20  ;;  %v4819_v33 = vpop.xlane.xlu0 %4818  ;;  %v8727_v60 = vpop.eup %8726 }
 0x5a8   :  { %v4905_v10 = vmul.f32 %v8727_v60, %v10801_v2 }
 0x5a9   :  { %v4934_v42 = vpack.c.bf16 %v4908_v28, %v4907_v1 }
 0x5ab   :  { %8382 = vmatmul.mubr.msk.bf16.vlgmr.msra.gmra.mrb[52].mxu1 %vm4576_vm3, %v4934_v42  ;;  %v4825_v4 = vpop.xlane.xlu0 %4824 }
 0x5ac   :  { %8392 = vmatpush3.bf16.msra.mxu1 %v3770_v46  ;;  %8393 = vmatprep.mubr.msk.bf16.mxu1 %vm8951_vm0, %v11869_v59 }
 0x5ad   :  { %8403 = vmatprep.subr.bf16.mxu1 %v11869_v59  ;;  %v4798_v11 = vpop.xlane.xlu1 %4797 }
 0x5ae   :  { %8728 = vrcp.f32 %v4798_v11 }
 0x5af   :  { %v4831_v8 = vpop.xlane.xlu0 %4830 }
 0x5b1   :  { %v4810_v22 = vpop.xlane.xlu1 %4809 }
 0x5b2   :  { %8730 = vrcp.f32 %v4810_v22 }
 0x5b3   :  { %8732 = vrcp.f32 %v4807_v24  ;;  %v4837_v27 = vpop.xlane.xlu0 %4836 }
 0x5b4   :  { %8734 = vrcp.f32 %v4813_v58 }
 0x5b5   :  { %v4816_v20 = vpop.xlane.xlu1 %4815 }
 0x5b6   :  { %8736 = vrcp.f32 %v4816_v20 }
 0x5b7   :  { %v4843_v2 = vpop.xlane.xlu0 %4842 }
 0x5b8   :  { %v8729_v16 = vpop.eup %8728 }
 0x5b9   :  { %v4906_v57 = vmul.f32 %v8729_v16, %v10848_v0  ;;  %v4822_v30 = vpop.xlane.xlu1 %4821 }
 0x5ba   :  { %8738 = vrcp.f32 %v4822_v30 }
 0x5bb   :  { %8740 = vrcp.f32 %v4819_v33  ;;  %v4933_v37 = vpack.c.bf16 %v4906_v57, %v4905_v10  ;;  %v4849_v42 = vpop.xlane.xlu0 %4848 }
 0x5bc   :  { %v8731_v52 = vpop.eup %8730  ;;  %8742 = vrcp.f32 %v4825_v4  ;;  %v3665_v4 = vcombine.high %v10977_v17, %v10974_v29 }
 0x5bd   :  { %v8733_v25 = vpop.eup %8732  ;;  %v4828_v3 = vpop.xlane.xlu1 %4827  ;;  %8376 = vmatmul.mubr.msk.bf16.vlgmr.msra.gmra.mrb[52].mxu0 %vm4576_vm3, %v4933_v37  ;;  %v4910_v0 = vmul.f32 %v8731_v52, %v10858_v63 }
 0x5be   :  { %v8735_v24 = vpop.eup %8734  ;;  %8744 = vrcp.f32 %v4828_v3  ;;  %8386 = vmatpush3.bf16.msra.mxu0 %v10528_v45  ;;  %8387 = vmatprep.mubr.msk.bf16.mxu0 %vm8951_vm0, %v11869_v59  ;;  %v4909_v53 = vmul.f32 %v8733_v25, %v10822_v26  ;;  %v11968_v26 = vpack.i.b16 %v10481_v5, %v10479_v18  ;;  %v3715_v18 = vcombine.high %v10980_v50, %v10983_v15 }
 0x5bf   :  { %8397 = vmatprep.subr.bf16.mxu0 %v11869_v59  ;;  %v4911_v58 = vmul.f32 %v8735_v24, %v10828_v31  ;;  %v11969_v31 = vpack.i.b16 %v10488_v43, %v10486_v34  ;;  %v4855_v11 = vpop.xlane.xlu0 %4854 }
 0x5c0   :  { %v8737_v32 = vpop.eup %8736  ;;  %v4935_v1 = vpack.c.bf16 %v4910_v0, %v4909_v53  ;;  %v3774_v60 = vpack.i.b16 %v3715_v18, %v3665_v4  ;;  %v3777_v3 = vshrl.u32 %v3715_v18, 16 }
 0x5c1   :  { %v4912_v12 = vmul.f32 %v8737_v32, %v10867_v21  ;;  %v4834_v51 = vpop.xlane.xlu1 %4833  ;;  %v3776_v32 = vshrl.u32 %v3665_v4, 16 }
 0x5c2   :  { %8746 = vrcp.f32 %v4834_v51 }
 0x5c3   :  { %8748 = vrcp.f32 %v4831_v8  ;;  %v4936_v45 = vpack.c.bf16 %v4912_v12, %v4911_v58  ;;  %v3778_v12 = vpack.i.b16 %v3777_v3, %v3776_v32 }
 0x5c4   :  { %v8739_v28 = vpop.eup %8738  ;;  %8750 = vrcp.f32 %v4837_v27 }
 0x5c5   :  { %v8741_v55 = vpop.eup %8740  ;;  %v4840_v33 = vpop.xlane.xlu1 %4839  ;;  %8388 = vmatmul.mubr.msk.bf16.vlgmr.msra.gmra.mrb[56].mxu0 %vm4576_vm3, %v4935_v1  ;;  %8394 = vmatmul.mubr.msk.bf16.vlgmr.msra.gmra.mrb[56].mxu1 %vm4576_vm3, %v4936_v45  ;;  %v4914_v21 = vmul.f32 %v8739_v28, %v10876_v39  ;;  %v11973_v45 = vld [vmem:[#allocation32_spill] sm:$0xff] }
 0x5c6   :  { %v8743_v63 = vpop.eup %8742  ;;  %8752 = vrcp.f32 %v4840_v33  ;;  %8398 = vmatpush3.bf16.msra.mxu0 %v11968_v26  ;;  %8404 = vmatpush3.bf16.msra.mxu1 %v11969_v31  ;;  %v4913_v5 = vmul.f32 %v8741_v55, %v10834_v49 }
 0x5c7   :  { %8399 = vmatprep.mubr.msk.bf16.mxu0 %vm8951_vm0, %v11869_v59  ;;  %8405 = vmatprep.mubr.msk.bf16.mxu1 %vm8951_vm0, %v11869_v59  ;;  %v4915_v34 = vmul.f32 %v8743_v63, %v10840_v41  ;;  %v11970_v41 = vpack.i.b16 %v10508_v19, %v10496_v61  ;;  %v4861_v61 = vpop.xlane.xlu0 %4860 }
 0x5c8   :  { %v8745_v46 = vpop.eup %8744  ;;  %8409 = vmatprep.subr.bf16.mxu0 %v11869_v59  ;;  %8415 = vmatprep.subr.bf16.mxu1 %v11869_v59  ;;  %v4937_v22 = vpack.c.bf16 %v4914_v21, %v4913_v5 }
 0x5c9   :  { %v4916_v43 = vmul.f32 %v8745_v46, %v10885_v62  ;;  %v4846_v39 = vpop.xlane.xlu1 %4845 }
 0x5ca   :  { %8754 = vrcp.f32 %v4846_v39 }
 0x5cb   :  { %8756 = vrcp.f32 %v4843_v2  ;;  %v4938_v8 = vpack.c.bf16 %v4916_v43, %v4915_v34 }
 0x5cc   :  { %v8747_v20 = vpop.eup %8746  ;;  %8758 = vrcp.f32 %v4849_v42 }
 0x5cd   :  { %v8749_v16 = vpop.eup %8748  ;;  %v4852_v50 = vpop.xlane.xlu1 %4851  ;;  %8400 = vmatmul.mubr.msk.bf16.vlgmr.msra.gmra.mrb[60].mxu0 %vm4576_vm3, %v4937_v22  ;;  %8406 = vmatmul.mubr.msk.bf16.vlgmr.msra.gmra.mrb[60].mxu1 %vm4576_vm3, %v4938_v8  ;;  %v4918_v62 = vmul.f32 %v8747_v20, %v10894_v13 }
 0x5ce   :  { %v8751_v49 = vpop.eup %8750  ;;  %8760 = vrcp.f32 %v4852_v50  ;;  %8410 = vmatpush3.bf16.msra.mxu0 %v11970_v41  ;;  %8416 = vmatpush3.bf16.msra.mxu1 %v3774_v60  ;;  %v4917_v17 = vmul.f32 %v8749_v16, %v10846_v38  ;;  %v11971_v38 = vld [vmem:[#allocation38_spill] sm:$0xff] }
 0x5cf   :  { %8411 = vmatprep.mubr.msk.bf16.mxu0 %vm8951_vm0, %v11869_v59  ;;  %8417 = vmatprep.mubr.msk.bf16.mxu1 %vm8951_vm0, %v11869_v59  ;;  %v4919_v15 = vmul.f32 %v8751_v49, %v10854_v35  ;;  %v11972_v35 = vld [vmem:[#allocation39_spill] sm:$0xff] }
 0x5d0   :  { %v8753_v29 = vpop.eup %8752  ;;  %8421 = vmatprep.subr.bf16.mxu0 %v11869_v59  ;;  %8427 = vmatprep.subr.bf16.mxu1 %v11869_v59  ;;  %v4939_v13 = vpack.c.bf16 %v4918_v62, %v4917_v17  ;;  %v8539_v17 = vld [vmem:[#allocation7 + $0x8] sm:$0xff]  }
 0x5d1   :  { %v4920_v19 = vmul.f32 %v8753_v29, %v10901_v7  ;;  %v4858_v10 = vpop.xlane.xlu1 %4857  ;;  %v8538_v29 = vld [vmem:[#allocation7] sm:$0xff]  }
 0x5d2   :  { %8762 = vrcp.f32 %v4858_v10 }
 0x5d3   :  { %8764 = vrcp.f32 %v4855_v11  ;;  %v4940_v27 = vpack.c.bf16 %v4920_v19, %v4919_v15 }
 0x5d4   :  { %v8755_v57 = vpop.eup %8754  ;;  %8766 = vrcp.f32 %v4861_v61 }
 0x5d5   :  { %v8757_v30 = vpop.eup %8756  ;;  %v4864_v37 = vpop.xlane.xlu1 %4863  ;;  %8412 = vmatmul.mubr.msk.bf16.vlgmr.msra.gmra.mrb[64].mxu0 %vm4576_vm3, %v4939_v13  ;;  %8418 = vmatmul.mubr.msk.bf16.vlgmr.msra.gmra.mrb[64].mxu1 %vm4576_vm3, %v4940_v27  ;;  %v4922_v7 = vmul.f32 %v8755_v57, %v10905_v54  ;;  %v8540_v13 = vld [vmem:[#allocation7 + $0x10] sm:$0xff]   ;;  %v8541_v27 = vld [vmem:[#allocation7 + $0x18] sm:$0xff]   ;;  %v8542_v57 = vld [vmem:[#allocation7 + $0x20] sm:$0xff]  }
 0x5d6   :  { %v8759_v52 = vpop.eup %8758  ;;  %8768 = vrcp.f32 %v4864_v37  ;;  %8422 = vmatpush3.bf16.msra.mxu0 %v11971_v38  ;;  %8428 = vmatpush3.bf16.msra.mxu1 %v11972_v35  ;;  %v4921_v24 = vmul.f32 %v8757_v30, %v10863_v23 }
 0x5d7   :  { %8423 = vmatprep.mubr.msk.bf16.mxu0 %vm8951_vm0, %v11869_v59  ;;  %8429 = vmatprep.mubr.msk.bf16.mxu1 %vm8951_vm0, %v11869_v59  ;;  %v4923_v2 = vmul.f32 %v8759_v52, %v10872_v44 }
 0x5d8   :  { %v8761_v25 = vpop.eup %8760  ;;  %8433 = vmatprep.subr.bf16.mxu0 %v11869_v59  ;;  %8439 = vmatprep.subr.bf16.mxu1 %v11869_v59  ;;  %v4941_v54 = vpack.c.bf16 %v4922_v7, %v4921_v24 }
 0x5d9   :  { %v4924_v0 = vmul.f32 %v8761_v25, %v10909_v48 }
 0x5db   :  { %v4942_v53 = vpack.c.bf16 %v4924_v0, %v4923_v2 }
 0x5dc   :  { %v8763_v58 = vpop.eup %8762 }
 0x5dd   :  { %v8765_v51 = vpop.eup %8764  ;;  %8424 = vmatmul.mubr.msk.bf16.vlgmr.msra.gmra.mrb[68].mxu0 %vm4576_vm3, %v4941_v54  ;;  %8430 = vmatmul.mubr.msk.bf16.vlgmr.msra.gmra.mrb[68].mxu1 %vm4576_vm3, %v4942_v53  ;;  %v4926_v23 = vmul.f32 %v8763_v58, %v10913_v14  ;;  %v11974_v14 = vmov 0  }
 0x5de   :  { %v8767_v1 = vpop.eup %8766  ;;  %8434 = vmatpush3.bf16.msra.mxu0 %v11973_v45  ;;  %8440 = vmatpush3.bf16.msra.mxu1 %v3778_v12  ;;  %v4925_v48 = vmul.f32 %v8765_v51, %v10881_v9 }
 0x5df   :  { %8435 = vmatprep.mubr.msk.bf16.mxu0 %vm8951_vm0, %v11869_v59  ;;  %8441 = vmatprep.mubr.msk.bf16.mxu1 %vm8951_vm0, %v11869_v59  ;;  %v4927_v28 = vmul.f32 %v8767_v1, %v10890_v36 }
 0x5e0   :  { %v8769_v44 = vpop.eup %8768  ;;  %v4943_v42 = vpack.c.bf16 %v4926_v23, %v4925_v48  ;;  %8445 = vmatprep.subr.bf16.mxu0 %v8538_v29 }
 0x5e1   :  { %v4928_v55 = vmul.f32 %v8769_v44, %v10917_v6 }
 0x5e3   :  { %v4944_v33 = vpack.c.bf16 %v4928_v55, %v4927_v28 }
 0x5e5   :  { %8436 = vmatmul.mubr.msk.bf16.vlgmr.msra.gmra.mrb[72].mxu0 %vm4576_vm3, %v4943_v42  ;;  %8442 = vmatmul.mubr.msk.bf16.vlgmr.msra.gmra.mrb[72].mxu1 %vm4576_vm3, %v4944_v33 }
 0x5e6   :  { %7273 = vmatprep.mubr.bf16.mxu1 %v11974_v14  ;;  %8446 = vmatpush3.bf16.msra.mxu0 %v8538_v29 }
 0x5e7   :  { %8447 = vmatprep.subr.bf16.mxu0 %v8539_v17 }
 0x5ea   :  { %8448 = vmatpush3.bf16.msra.mxu0 %v8539_v17 }
 0x5eb   :  { %8449 = vmatprep.subr.bf16.mxu0 %v8540_v13 }
 0x5ee   :  { %8450 = vmatpush3.bf16.msra.mxu0 %v8540_v13 }
 0x5ef   :  { %8451 = vmatprep.subr.bf16.mxu0 %v8541_v27 }
 0x5f2   :  { %8452 = vmatpush3.bf16.msra.mxu0 %v8541_v27 }
 0x5f3   :  { %8453 = vmatprep.subr.bf16.mxu0 %v8542_v57 }
 0x5f6   :  { %8454 = vmatpush3.bf16.msra.mxu0 %v8542_v57 }
 0x635   :  { %v4982_v63 = vpop.f32.mrb[44].mxu0 }
 0x636   :  { %v8353_v26 = vpop.f32.mrb[45].mxu0 }
 0x637   :  { %v4985_v31 = vpop.f32.mrb[46].mxu0 }
 0x638   :  { %v5649_v21 = vpack.c.bf16 %v4985_v31, %v4982_v63  ;;  %v8354_v59 = vpop.f32.mrb[47].mxu0 }
 0x63a   :  { %v5669_v7 = vshrl.u32 %v5649_v21, 16 }
 0x644   :  { %v5026_v46 = vpop.f32.mrb[44].mxu1 }
 0x645   :  { %v8359_v18 = vpop.f32.mrb[45].mxu1 }
 0x646   :  { %v5029_v9 = vpop.f32.mrb[46].mxu1 }
 0x647   :  { %v5650_v5 = vpack.c.bf16 %v5029_v9, %v5026_v46  ;;  %v8360_v36 = vpop.f32.mrb[47].mxu1 }
 0x649   :  { %v5685_v15 = vshrl.u32 %v5650_v5, 16 }
 0x65e   :  { %v5070_v34 = vpop.f32.mrb[48].mxu0 }
 0x65f   :  { %v8365_v6 = vpop.f32.mrb[49].mxu0 }
 0x660   :  { %v5073_v43 = vpop.f32.mrb[50].mxu0 }
 0x661   :  { %v5651_v39 = vpack.c.bf16 %v5073_v43, %v5070_v34  ;;  %v8366_v4 = vpop.f32.mrb[51].mxu0 }
 0x663   :  { %v5701_v23 = vshrl.u32 %v5651_v39, 16 }
 0x676   :  { %v5114_v11 = vpop.f32.mrb[48].mxu1 }
 0x677   :  { %v8371_v22 = vpop.f32.mrb[49].mxu1 }
 0x678   :  { %v5117_v8 = vpop.f32.mrb[50].mxu1 }
 0x679   :  { %v5652_v20 = vpack.c.bf16 %v5117_v8, %v5114_v11  ;;  %v8372_v60 = vpop.f32.mrb[51].mxu1 }
 0x67b   :  { %v5717_v44 = vshrl.u32 %v5652_v20, 16 }
 0x67e   :  { %v5202_v16 = vpop.f32.mrb[52].mxu1 }
 0x67f   :  { %v8383_v50 = vpop.f32.mrb[53].mxu1 }
 0x680   :  { %v5205_v49 = vpop.f32.mrb[54].mxu1 }
 0x681   :  { %v5654_v41 = vpack.c.bf16 %v5205_v49, %v5202_v16  ;;  %v8384_v62 = vpop.f32.mrb[55].mxu1 }
 0x683   :  { %v11079_v61 = vpack.i.b16 %v5654_v41, %v5650_v5  ;;  %v5686_v19 = vshrl.u32 %v5654_v41, 16 }
 0x685   :  { %v11081_v10 = vpack.i.b16 %v5686_v19, %v5685_v15  ;;  %v5861_v50 = vcombine.high %v11079_v61, %v9237_v47  ;;  %v11095_v29 = vrot.slane %v11079_v61, %v9245_v56 }
 0x687   :  { %v5927_v49 = vcombine.high %v11081_v10, %v9237_v47  ;;  %v11098_v17 = vrot.slane %v5861_v50, %v9245_v56  ;;  %v11102_v15 = vrot.slane %v11081_v10, %v9245_v56 }
 0x689   :  { %v11106_v57 = vrot.slane %v5927_v49, %v9245_v56 }
 0x690   :  { %v5158_v30 = vpop.f32.mrb[52].mxu0 }
 0x691   :  { %v8377_v37 = vpop.f32.mrb[53].mxu0 }
 0x692   :  { %v5161_v52 = vpop.f32.mrb[54].mxu0 }
 0x693   :  { %v5653_v38 = vpack.c.bf16 %v5161_v52, %v5158_v30  ;;  %v8378_v35 = vpop.f32.mrb[55].mxu0 }
 0x695   :  { %v5667_v25 = vpack.i.b16 %v5653_v38, %v5649_v21  ;;  %v5670_v3 = vshrl.u32 %v5653_v38, 16 }
 0x697   :  { %v5671_v24 = vpack.i.b16 %v5670_v3, %v5669_v7  ;;  %v5729_v41 = vcombine.high %v5667_v25, %v9237_v47  ;;  %v5736_v30 = vrot.slane %v5667_v25, %v9245_v56 }
 0x698   :  { %v5246_v2 = vpop.f32.mrb[56].mxu0  ;;  %v5290_v0 = vpop.f32.mrb[56].mxu1 }
 0x699   :  { %v8389_v32 = vpop.f32.mrb[57].mxu0  ;;  %v8395_v54 = vpop.f32.mrb[57].mxu1  ;;  %v5795_v62 = vcombine.high %v5671_v24, %v9237_v47  ;;  %v5743_v37 = vrot.slane %v5729_v41, %v9245_v56  ;;  %v11111_v61 = vrot.slane %v5671_v24, %v9245_v56 }
 0x69a   :  { %v5249_v53 = vpop.f32.mrb[58].mxu0  ;;  %v5293_v58 = vpop.f32.mrb[58].mxu1 }
 0x69b   :  { %v5655_v12 = vpack.c.bf16 %v5249_v53, %v5246_v2  ;;  %v5656_v51 = vpack.c.bf16 %v5293_v58, %v5290_v0  ;;  %v8390_v1 = vpop.f32.mrb[59].mxu0  ;;  %v8396_v45 = vpop.f32.mrb[59].mxu1  ;;  %v11114_v35 = vrot.slane %v5795_v62, %v9245_v56 }
 0x69d   :  { %v5699_v48 = vpack.i.b16 %v5655_v12, %v5651_v39  ;;  %v5702_v28 = vshrl.u32 %v5655_v12, 16  ;;  %v5715_v55 = vpack.i.b16 %v5656_v51, %v5652_v20  ;;  %v5718_v42 = vshrl.u32 %v5656_v51, 16 }
 0x69f   :  { %v5703_v33 = vpack.i.b16 %v5702_v28, %v5701_v23  ;;  %v5719_v63 = vpack.i.b16 %v5718_v42, %v5717_v44  ;;  %v5993_v19 = vcombine.high %v5699_v48, %v9237_v47  ;;  %v6125_v7 = vcombine.high %v5715_v55, %v9237_v47 }
 0x6a0   :  { %v5334_v26 = vpop.f32.mrb[60].mxu0  ;;  %v5378_v31 = vpop.f32.mrb[60].mxu1  ;;  %v11120_v25 = vrot.slane %v5699_v48, %v9245_v56  ;;  %v11123_v32 = vrot.slane %v5715_v55, %v9245_v56 }
 0x6a1   :  { %v8401_v21 = vpop.f32.mrb[61].mxu0  ;;  %v8407_v59 = vpop.f32.mrb[61].mxu1  ;;  %v6059_v10 = vcombine.high %v5703_v33, %v9237_v47  ;;  %v6191_v3 = vcombine.high %v5719_v63, %v9237_v47  ;;  %v11126_v12 = vrot.slane %v5993_v19, %v9245_v56  ;;  %v11129_v51 = vrot.slane %v5703_v33, %v9245_v56 }
 0x6a2   :  { %v5337_v46 = vpop.f32.mrb[62].mxu0  ;;  %v5381_v18 = vpop.f32.mrb[62].mxu1  ;;  %v11135_v55 = vrot.slane %v6125_v7, %v9245_v56 }
 0x6a3   :  { %v5657_v9 = vpack.c.bf16 %v5337_v46, %v5334_v26  ;;  %v5658_v5 = vpack.c.bf16 %v5381_v18, %v5378_v31  ;;  %v8402_v36 = vpop.f32.mrb[63].mxu0  ;;  %v8408_v34 = vpop.f32.mrb[63].mxu1  ;;  %v11132_v42 = vrot.slane %v6059_v10, %v9245_v56  ;;  %v11138_v26 = vrot.slane %v5719_v63, %v9245_v56 }
 0x6a4   :  { %v11141_v31 = vrot.slane %v6191_v3, %v9245_v56 }
 0x6a5   :  { %v5677_v1 = vshrl.u32 %v5657_v9, 16  ;;  %v5693_v45 = vshrl.u32 %v5658_v5, 16 }
 0x6a8   :  { %v5422_v6 = vpop.f32.mrb[64].mxu0  ;;  %v5466_v43 = vpop.f32.mrb[64].mxu1 }
 0x6a9   :  { %v8413_v4 = vpop.f32.mrb[65].mxu0  ;;  %v8419_v11 = vpop.f32.mrb[65].mxu1 }
 0x6aa   :  { %v5425_v39 = vpop.f32.mrb[66].mxu0  ;;  %v5469_v22 = vpop.f32.mrb[66].mxu1 }
 0x6ab   :  { %v11083_v8 = vpack.c.bf16 %v5425_v39, %v5422_v6  ;;  %v11085_v20 = vpack.c.bf16 %v5469_v22, %v5466_v43  ;;  %v8414_v60 = vpop.f32.mrb[67].mxu0  ;;  %v8420_v16 = vpop.f32.mrb[67].mxu1 }
 0x6ad   :  { %v5709_v18 = vshrl.u32 %v11083_v8, 16 }
 0x6b0   :  { %v5510_v13 = vpop.f32.mrb[68].mxu0  ;;  %v5554_v27 = vpop.f32.mrb[68].mxu1 }
 0x6b1   :  { %v8425_v52 = vpop.f32.mrb[69].mxu0  ;;  %v8431_v38 = vpop.f32.mrb[69].mxu1 }
 0x6b2   :  { %v5513_v2 = vpop.f32.mrb[70].mxu0  ;;  %v5557_v0 = vpop.f32.mrb[70].mxu1 }
 0x6b3   :  { %v5661_v24 = vpack.c.bf16 %v5513_v2, %v5510_v13  ;;  %v5662_v54 = vpack.c.bf16 %v5557_v0, %v5554_v27  ;;  %v8426_v53 = vpop.f32.mrb[71].mxu0  ;;  %v8432_v58 = vpop.f32.mrb[71].mxu1 }
 0x6b5   :  { %v5675_v23 = vpack.i.b16 %v5661_v24, %v5657_v9  ;;  %v5678_v44 = vshrl.u32 %v5661_v24, 16  ;;  %v5691_v28 = vpack.i.b16 %v5662_v54, %v5658_v5  ;;  %v5694_v48 = vshrl.u32 %v5662_v54, 16 }
 0x6b6   :  { %v5725_v9 = vshrl.u32 %v11085_v20, 16 }
 0x6b7   :  { %v5679_v33 = vpack.i.b16 %v5678_v44, %v5677_v1  ;;  %v5744_v21 = vcombine.high %v5675_v23, %v9237_v47  ;;  %v5751_v59 = vrot.slane %v5675_v23, %v9245_v56  ;;  %v5695_v46 = vpack.i.b16 %v5694_v48, %v5693_v45 }
 0x6b8   :  { %v5876_v5 = vcombine.high %v5691_v28, %v9237_v47  ;;  %v5883_v36 = vrot.slane %v5691_v28, %v9245_v56  ;;  %v5598_v34 = vpop.f32.mrb[72].mxu0  ;;  %v5642_v63 = vpop.f32.mrb[72].mxu1 }
 0x6b9   :  { %v5758_v6 = vrot.slane %v5744_v21, %v9245_v56  ;;  %v5759_v43 = vcombine.low %v5736_v30, %v5751_v59  ;;  %v5760_v4 = vcombine.high %v5736_v30, %v5751_v59  ;;  %v5810_v11 = vcombine.high %v5679_v33, %v9237_v47  ;;  %v8437_v39 = vpop.f32.mrb[73].mxu0  ;;  %v8443_v22 = vpop.f32.mrb[73].mxu1 }
 0x6ba   :  { %v5817_v60 = vrot.slane %v5679_v33, %v9245_v56  ;;  %v5890_v16 = vrot.slane %v5876_v5, %v9245_v56  ;;  %v5891_v50 = vcombine.low %v11095_v29, %v5883_v36  ;;  %v5892_v49 = vcombine.high %v11095_v29, %v5883_v36  ;;  %v5601_v41 = vpop.f32.mrb[74].mxu0  ;;  %v5645_v62 = vpop.f32.mrb[74].mxu1 }
 0x6bb   :  { %v11156_v19 = vrot.slane %v5759_v43, %v9253_v40  ;;  %v11159_v13 = vrot.slane %v5760_v4, %v9253_v40  ;;  %v5775_v27 = vcombine.low %v5743_v37, %v5758_v6  ;;  %v5776_v30 = vcombine.high %v5743_v37, %v5758_v6  ;;  %v8438_v52 = vpop.f32.mrb[75].mxu0  ;;  %v8444_v38 = vpop.f32.mrb[75].mxu1 }
 0x6bc   :  { %v5824_v10 = vrot.slane %v5810_v11, %v9245_v56  ;;  %v5825_v7 = vcombine.low %v11111_v61, %v5817_v60  ;;  %v5826_v3 = vcombine.high %v11111_v61, %v5817_v60  ;;  %v11165_v29 = vrot.slane %v5891_v50, %v9253_v40 }
 0x6bd   :  { %v11168_v2 = vrot.slane %v5775_v27, %v9253_v40  ;;  %v11171_v0 = vrot.slane %v5776_v30, %v9253_v40  ;;  %v6257_v37 = vcombine.low %v11156_v19, %v11159_v13  ;;  %v7969_v24 = vcombine.high %v11156_v19, %v11159_v13 }
 0x6be   :  { %v11178_v54 = vrot.slane %v5825_v7, %v9253_v40  ;;  %v11181_v61 = vrot.slane %v5826_v3, %v9253_v40  ;;  %v5841_v53 = vcombine.low %v11114_v35, %v5824_v10  ;;  %v5842_v58 = vcombine.high %v11114_v35, %v5824_v10 }
 0x6bf   :  { %v6273_v1 = vcombine.low %v11168_v2, %v11171_v0  ;;  %v7970_v45 = vcombine.high %v11168_v2, %v11171_v0  ;;  %v11190_v23 = vrot.slane %v5892_v49, %v9253_v40  ;;  %v5907_v44 = vcombine.low %v11098_v17, %v5890_v16 }
 0x6c0   :  { %v11194_v28 = vrot.slane %v5841_v53, %v9253_v40  ;;  %v11197_v48 = vrot.slane %v5842_v58, %v9253_v40  ;;  %v6307_v35 = vcombine.low %v11178_v54, %v11181_v61  ;;  %v7971_v33 = vcombine.high %v11178_v54, %v11181_v61 }
 0x6c1   :  { %v5908_v21 = vcombine.high %v11098_v17, %v5890_v16  ;;  %v11205_v59 = vrot.slane %v5907_v44, %v9253_v40  ;;  %v5942_v5 = vcombine.high %v5695_v46, %v9237_v47  ;;  %v5949_v36 = vrot.slane %v5695_v46, %v9245_v56 }
 0x6c2   :  { %v6357_v6 = vcombine.low %v11165_v29, %v11190_v23  ;;  %v7973_v43 = vcombine.high %v11165_v29, %v11190_v23  ;;  %v5663_v4 = vpack.c.bf16 %v5601_v41, %v5598_v34  ;;  %v5664_v11 = vpack.c.bf16 %v5645_v62, %v5642_v63 }
 0x6c3   :  { %v11214_v39 = vrot.slane %v5908_v21, %v9253_v40  ;;  %v5956_v17 = vrot.slane %v5942_v5, %v9245_v56  ;;  %v5957_v22 = vcombine.low %v11102_v15, %v5949_v36  ;;  %v5958_v60 = vcombine.high %v11102_v15, %v5949_v36 }
 0x6c4   :  { %v5707_v16 = vpack.i.b16 %v5663_v4, %v11083_v8  ;;  %v5710_v46 = vshrl.u32 %v5663_v4, 16  ;;  %v5723_v50 = vpack.i.b16 %v5664_v11, %v11085_v20  ;;  %v5726_v49 = vshrl.u32 %v5664_v11, 16 }
 0x6c5   :  { %v11222_v27 = vrot.slane %v5957_v22, %v9253_v40  ;;  %v11225_v34 = vrot.slane %v5958_v60, %v9253_v40  ;;  %v5973_v63 = vcombine.low %v11106_v57, %v5956_v17  ;;  %v5974_v41 = vcombine.high %v11106_v57, %v5956_v17 }
 0x6c6   :  { %v6373_v62 = vcombine.low %v11205_v59, %v11214_v39  ;;  %v7974_v15 = vcombine.high %v11205_v59, %v11214_v39  ;;  %v5711_v30 = vpack.i.b16 %v5710_v46, %v5709_v18  ;;  %v6008_v52 = vcombine.high %v5707_v16, %v9237_v47 }
 0x6c7   :  { %v11237_v38 = vrot.slane %v5973_v63, %v9253_v40  ;;  %v11240_v10 = vrot.slane %v5974_v41, %v9253_v40  ;;  %v6407_v57 = vcombine.low %v11222_v27, %v11225_v34  ;;  %v7975_v7 = vcombine.high %v11222_v27, %v11225_v34 }
 0x6c8   :  { %v6015_v3 = vrot.slane %v5707_v16, %v9245_v56  ;;  %v6022_v53 = vrot.slane %v6008_v52, %v9245_v56  ;;  %v6074_v8 = vcombine.high %v5711_v30, %v9237_v47  ;;  %v6081_v18 = vrot.slane %v5711_v30, %v9245_v56 }
 0x6c9   :  { %v5727_v58 = vpack.i.b16 %v5726_v49, %v5725_v9  ;;  %v6140_v44 = vcombine.high %v5723_v50, %v9237_v47  ;;  %v6147_v21 = vrot.slane %v5723_v50, %v9245_v56  ;;  %v6264_v5 = vrot.slane %v6257_v37, %v9245_v56 }
 0x6ca   :  { %v6023_v36 = vcombine.low %v11120_v25, %v6015_v3  ;;  %v6024_v4 = vcombine.high %v11120_v25, %v6015_v3  ;;  %v6039_v11 = vcombine.low %v11126_v12, %v6022_v53  ;;  %v6040_v17 = vcombine.high %v11126_v12, %v6022_v53 }
 0x6cb   :  { %v6088_v22 = vrot.slane %v6074_v8, %v9245_v56  ;;  %v6089_v60 = vcombine.low %v11129_v51, %v6081_v18  ;;  %v6090_v20 = vcombine.high %v11129_v51, %v6081_v18  ;;  %v6154_v9 = vrot.slane %v6140_v44, %v9245_v56 }
 0x6cc   :  { %v11264_v16 = vrot.slane %v6023_v36, %v9253_v40  ;;  %v11267_v37 = vrot.slane %v6024_v4, %v9253_v40  ;;  %v11270_v25 = vrot.slane %v6039_v11, %v9253_v40  ;;  %v11273_v46 = vrot.slane %v6040_v17, %v9253_v40 }
 0x6cd   :  { %v11276_v12 = vrot.slane %v6089_v60, %v9253_v40  ;;  %v11279_v50 = vrot.slane %v6090_v20, %v9253_v40  ;;  %v6105_v51 = vcombine.low %v11132_v42, %v6088_v22  ;;  %v6106_v49 = vcombine.high %v11132_v42, %v6088_v22 }
 0x6ce   :  { %v6457_v63 = vcombine.low %v11264_v16, %v11267_v37  ;;  %v7977_v41 = vcombine.high %v11264_v16, %v11267_v37  ;;  %v6473_v30 = vcombine.low %v11270_v25, %v11273_v46  ;;  %v7978_v52 = vcombine.high %v11270_v25, %v11273_v46  ;;  %v8545_v37 = vld [vmem:[#allocation7 + $0x38] sm:$0xff]  }
 0x6cf   :  { %v11292_v3 = vrot.slane %v6105_v51, %v9253_v40  ;;  %v11295_v53 = vrot.slane %v6106_v49, %v9253_v40  ;;  %v6507_v42 = vcombine.low %v11276_v12, %v11279_v50  ;;  %v7979_v8 = vcombine.high %v11276_v12, %v11279_v50 }
 0x6d0   :  { %v6155_v18 = vcombine.low %v11123_v32, %v6147_v21  ;;  %v6156_v44 = vcombine.high %v11123_v32, %v6147_v21  ;;  %v6171_v36 = vcombine.low %v11135_v55, %v6154_v9  ;;  %v6172_v4 = vcombine.high %v11135_v55, %v6154_v9 }
 0x6d1   :  { %v6206_v11 = vcombine.high %v5727_v58, %v9237_v47  ;;  %v6213_v17 = vrot.slane %v5727_v58, %v9245_v56  ;;  %v6272_v22 = vrot.slane %v7969_v24, %v9245_v56  ;;  %v6280_v60 = vrot.slane %v6273_v1, %v9245_v56 }
 0x6d2   :  { %v11316_v32 = vrot.slane %v6155_v18, %v9253_v40  ;;  %v11319_v21 = vrot.slane %v6156_v44, %v9253_v40  ;;  %v11322_v47 = vrot.slane %v6171_v36, %v9253_v40  ;;  %v11325_v55 = vrot.slane %v6172_v4, %v9253_v40  ;;  %v8543_v4 = vld [vmem:[#allocation7 + $0x28] sm:$0xff]  }
 0x6d3   :  { %v6220_v19 = vrot.slane %v6206_v11, %v9245_v56  ;;  %v6221_v13 = vcombine.low %v11138_v26, %v6213_v17  ;;  %v6222_v24 = vcombine.high %v11138_v26, %v6213_v17  ;;  %v6288_v1 = vrot.slane %v7970_v45, %v9245_v56  ;;  %8455 = vmatprep.subr.bf16.mxu0 %v8543_v4 }
 0x6d4   :  { %v6557_v58 = vcombine.low %v11316_v32, %v11319_v21  ;;  %v7981_v20 = vcombine.high %v11316_v32, %v11319_v21  ;;  %v6573_v9 = vcombine.low %v11322_v47, %v11325_v55  ;;  %v7982_v51 = vcombine.high %v11322_v47, %v11325_v55  ;;  %8456 = vmatpush3.bf16.msra.mxu0 %v8543_v4 }
 0x6d5   :  { %v11343_v49 = vrot.slane %v6221_v13, %v9253_v40  ;;  %v11346_v26 = vrot.slane %v6222_v24, %v9253_v40  ;;  %v6237_v2 = vcombine.low %v11141_v31, %v6220_v19  ;;  %v6238_v0 = vcombine.high %v11141_v31, %v6220_v19 }
 0x6d6   :  { %v6289_v45 = vcombine.low %v6264_v5, %v6272_v22  ;;  %v6297_v18 = vcombine.low %v6280_v60, %v6288_v1  ;;  %v6314_v44 = vrot.slane %v6307_v35, %v9245_v56  ;;  %v6322_v36 = vrot.slane %v7971_v33, %v9245_v56 }
 0x6d7   :  { %v11359_v11 = vrot.slane %v6237_v2, %v9253_v40  ;;  %v11362_v17 = vrot.slane %v6238_v0, %v9253_v40  ;;  %v6607_v31 = vcombine.low %v11343_v49, %v11346_v26  ;;  %v7983_v5 = vcombine.high %v11343_v49, %v11346_v26 }
 0x6d8   :  { %v6296_v35 = vrot.slane %v6289_v45, %v9253_v40  ;;  %v6304_v22 = vrot.slane %v6297_v18, %v9253_v40  ;;  %v6323_v54 = vcombine.low %v11194_v28, %v11197_v48  ;;  %v7972_v61 = vcombine.high %v11194_v28, %v11197_v48 }
 0x6d9   :  { %v6339_v33 = vcombine.low %v6314_v44, %v6322_v36  ;;  %v6364_v60 = vrot.slane %v6357_v6, %v9245_v56  ;;  %v6372_v19 = vrot.slane %v7973_v43, %v9245_v56  ;;  %v6380_v13 = vrot.slane %v6373_v62, %v9245_v56  ;;  %v8544_v62 = vld [vmem:[#allocation7 + $0x30] sm:$0xff]  }
 0x6da   :  { %v6306_v24 = vcombine.high %v6296_v35, %v6304_v22  ;;  %v6330_v28 = vrot.slane %v6323_v54, %v9245_v56  ;;  %v6338_v48 = vrot.slane %v7972_v61, %v9245_v56  ;;  %v11388_v1 = vcombine.low %v6296_v35, %v6304_v22  ;;  %8457 = vmatprep.subr.bf16.mxu0 %v8544_v62 }
 0x6db   :  { %v6346_v6 = vrot.slane %v6339_v33, %v9253_v40  ;;  %v6388_v29 = vrot.slane %v7974_v15, %v9245_v56  ;;  %v6389_v23 = vcombine.low %v6364_v60, %v6372_v19  ;;  %v6414_v43 = vrot.slane %v6407_v57, %v9245_v56  ;;  %8458 = vmatpush3.bf16.msra.mxu0 %v8544_v62 }
 0x6dc   :  { %v6347_v2 = vcombine.low %v6330_v28, %v6338_v48  ;;  %v6666_v0 = vshrl.u32 %v6306_v24, 16  ;;  %v6660_v45 = vshrl.u32 %v11388_v1, 16  ;;  %v6422_v18 = vrot.slane %v7975_v7, %v9245_v56  ;;  %8459 = vmatprep.subr.bf16.mxu0 %v8545_v37 }
 0x6dd   :  { %v6396_v44 = vrot.slane %v6389_v23, %v9253_v40  ;;  %v6397_v59 = vcombine.low %v6380_v13, %v6388_v29  ;;  %v6423_v39 = vcombine.low %v11237_v38, %v11240_v10  ;;  %v7976_v15 = vcombine.high %v11237_v38, %v11240_v10 }
 0x6de   :  { %v6354_v57 = vrot.slane %v6347_v2, %v9253_v40  ;;  %v6439_v36 = vcombine.low %v6414_v43, %v6422_v18  ;;  %v6464_v4 = vrot.slane %v6457_v63, %v9245_v56  ;;  %v6472_v27 = vrot.slane %v7977_v41, %v9245_v56 }
 0x6df   :  { %v6404_v34 = vrot.slane %v6397_v59, %v9253_v40  ;;  %v6430_v7 = vrot.slane %v6423_v39, %v9245_v56  ;;  %v6438_v38 = vrot.slane %v7976_v15, %v9245_v56  ;;  %v6480_v10 = vrot.slane %v6473_v30, %v9245_v56  ;;  %8460 = vmatpush3.bf16.msra.mxu0 %v8545_v37 }
 0x6e0   :  { %v11425_v35 = vcombine.low %v6346_v6, %v6354_v57  ;;  %v6356_v63 = vcombine.high %v6346_v6, %v6354_v57  ;;  %v6446_v22 = vrot.slane %v6439_v36, %v9253_v40  ;;  %v6488_v16 = vrot.slane %v7978_v52, %v9245_v56 }
 0x6e1   :  { %v6406_v41 = vcombine.high %v6396_v44, %v6404_v34  ;;  %v6447_v54 = vcombine.low %v6430_v7, %v6438_v38  ;;  %v11432_v61 = vcombine.low %v6396_v44, %v6404_v34  ;;  %v6489_v33 = vcombine.low %v6464_v4, %v6472_v27 }
 0x6e2   :  { %v6665_v60 = vpack.i.b16 %v6356_v63, %v6306_v24  ;;  %v6667_v19 = vshrl.u32 %v6356_v63, 16  ;;  %v6661_v30 = vshrl.u32 %v11425_v35, 16  ;;  %v6497_v13 = vcombine.low %v6480_v10, %v6488_v16 }
 0x6e3   :  { %v6454_v28 = vrot.slane %v6447_v54, %v9253_v40  ;;  %v6678_v48 = vshrl.u32 %v6406_v41, 16  ;;  %v6672_v6 = vshrl.u32 %v11432_v61, 16  ;;  %v6496_v25 = vrot.slane %v6489_v33, %v9253_v40 }
 0x6e4   :  { %6713 = vrot.lane.b32.xlu1 %v6665_v60, %s8944_s0  ;;  %v6662_v46 = vpack.i.b16 %v6661_v30, %v6660_v45  ;;  %v6668_v52 = vpack.i.b16 %v6667_v19, %v6666_v0  ;;  %v6504_v29 = vrot.slane %v6497_v13, %v9253_v40  ;;  %v6514_v24 = vrot.slane %v6507_v42, %v9245_v56 }
 0x6e5   :  { %v11444_v23 = vcombine.low %v6446_v22, %v6454_v28  ;;  %v6456_v43 = vcombine.high %v6446_v22, %v6454_v28  ;;  %v6522_v62 = vrot.slane %v7979_v8, %v9245_v56  ;;  %v6523_v2 = vcombine.low %v11292_v3, %v11295_v53 }
 0x6e6   :  { %6705 = vrot.lane.b32.xlu0 %v6662_v46, %s8949_s9  ;;  %v6506_v0 = vcombine.high %v6496_v25, %v6504_v29  ;;  %v7980_v45 = vcombine.high %v11292_v3, %v11295_v53  ;;  %v11455_v18 = vcombine.low %v6496_v25, %v6504_v29  ;;  %v6564_v42 = vrot.slane %v6557_v58, %v9245_v56 }
 0x6e7   :  { %v6677_v44 = vpack.i.b16 %v6456_v43, %v6406_v41  ;;  %v6679_v59 = vshrl.u32 %v6456_v43, 16  ;;  %v6673_v12 = vshrl.u32 %v11444_v23, 16  ;;  %v6530_v50 = vrot.slane %v6523_v2, %v9245_v56 }
 0x6e8   :  { %v6538_v8 = vrot.slane %v7980_v45, %v9245_v56  ;;  %v6539_v39 = vcombine.low %v6514_v24, %v6522_v62  ;;  %v6572_v53 = vrot.slane %v7981_v20, %v9245_v56  ;;  %v6580_v58 = vrot.slane %v6573_v9, %v9245_v56 }
 0x6e9   :  { %6715 = vrot.lane.b32.xlu1 %v6677_v44, %s8944_s0  ;;  %v6674_v15 = vpack.i.b16 %v6673_v12, %v6672_v6  ;;  %v6680_v3 = vpack.i.b16 %v6679_v59, %v6678_v48  ;;  %v6588_v4 = vrot.slane %v7982_v51, %v9245_v56  ;;  %v6614_v32 = vrot.slane %v6607_v31, %v9245_v56 }
 0x6ea   :  { %6721 = vrot.lane.b32.xlu0 %v6668_v52, %s8948_s8  ;;  %v6546_v57 = vrot.slane %v6539_v39, %v9253_v40  ;;  %v6547_v36 = vcombine.low %v6530_v50, %v6538_v8  ;;  %v6589_v21 = vcombine.low %v6564_v42, %v6572_v53  ;;  %v6622_v20 = vrot.slane %v7983_v5, %v9245_v56 }
 0x6eb   :  { %v6623_v9 = vcombine.low %v11359_v11, %v11362_v17  ;;  %v7984_v27 = vcombine.high %v11359_v11, %v11362_v17  ;;  %v6597_v55 = vcombine.low %v6580_v58, %v6588_v4  ;;  %v6659_v51 = vpack.i.b16 %v11425_v35, %v11388_v1 }
 0x6ec   :  { %v6554_v47 = vrot.slane %v6547_v36, %v9253_v40  ;;  %v6671_v31 = vpack.i.b16 %v11444_v23, %v11432_v61  ;;  %v6639_v5 = vcombine.low %v6614_v32, %v6622_v20  ;;  %v6596_v11 = vrot.slane %v6589_v21, %v9253_v40  ;;  %v7985_v32 = vld [vmem:[%s11782_s3] ss:$0 sm:$0xff] }
 0x6ed   :  { %6707 = vrot.lane.b32.xlu1 %v6674_v15, %s8949_s9  ;;  %v6630_v49 = vrot.slane %v6623_v9, %v9245_v56  ;;  %v6638_v26 = vrot.slane %v7984_v27, %v9245_v56  ;;  %v6604_v17 = vrot.slane %v6597_v55, %v9253_v40  ;;  %v6690_v38 = vshrl.u32 %v6506_v0, 16 }
 0x6ee   :  { %v6555_v34 = vcombine.low %v6546_v57, %v6554_v47  ;;  %v6556_v7 = vcombine.high %v6546_v57, %v6554_v47  ;;  %v6684_v10 = vshrl.u32 %v11455_v18, 16  ;;  %v6646_v37 = vrot.slane %v6639_v5, %v9253_v40 }
 0x6ef   :  { %v6647_v1 = vcombine.low %v6630_v49, %v6638_v26  ;;  %v6606_v16 = vcombine.high %v6596_v11, %v6604_v17  ;;  %v6605_v41 = vcombine.low %v6596_v11, %v6604_v17  ;;  %v8787_v26 = vld [vmem:[#allocation2 + $0x8] sm:$0xff]  ;;  %v8789_v17 = vld [vmem:[#allocation2 + $0x18] sm:$0xff] }
 0x6f0   :  { %v6689_v35 = vpack.i.b16 %v6556_v7, %v6506_v0  ;;  %v6691_v63 = vshrl.u32 %v6556_v7, 16  ;;  %v6685_v22 = vshrl.u32 %v6555_v34, 16  ;;  %v6683_v54 = vpack.i.b16 %v6555_v34, %v11455_v18  ;;  %v8788_v34 = vld [vmem:[#allocation2 + $0x10] sm:$0xff] }
 0x6f1   :  { %6723 = vrot.lane.b32.xlu1 %v6680_v3, %s8948_s8  ;;  %v6654_v56 = vrot.slane %v6647_v1, %v9253_v40  ;;  %v6702_v30 = vshrl.u32 %v6606_v16, 16  ;;  %v6696_v13 = vshrl.u32 %v6605_v41, 16 }
 0x6f2   :  { %6717 = vrot.lane.b32.xlu0 %v6689_v35, %s8944_s0  ;;  %v6686_v61 = vpack.i.b16 %v6685_v22, %v6684_v10  ;;  %v6692_v33 = vpack.i.b16 %v6691_v63, %v6690_v38 }
 0x6f3   :  { %v6655_v60 = vcombine.low %v6646_v37, %v6654_v56  ;;  %v6656_v19 = vcombine.high %v6646_v37, %v6654_v56  ;;  %v8790_v37 = vld [vmem:[#allocation2 + $0x20] sm:$0xff] }
 0x6f5   :  { %v6701_v28 = vpack.i.b16 %v6656_v19, %v6606_v16  ;;  %v6703_v48 = vshrl.u32 %v6656_v19, 16  ;;  %v6697_v6 = vshrl.u32 %v6655_v60, 16  ;;  %v6695_v25 = vpack.i.b16 %v6655_v60, %v6605_v41  ;;  %v8792_v60 = vld [vmem:[#allocation2 + $0x30] sm:$0xff] }
 0x6f6   :  { %6709 = vrot.lane.b32.xlu0 %v6686_v61, %s8949_s9  ;;  %v8791_v61 = vld [vmem:[#allocation2 + $0x28] sm:$0xff] }
 0x6f7   :  { %6719 = vrot.lane.b32.xlu1 %v6701_v28, %s8944_s0  ;;  %v6698_v40 = vpack.i.b16 %v6697_v6, %v6696_v13  ;;  %v6704_v46 = vpack.i.b16 %v6703_v48, %v6702_v30  ;;  %v8793_v30 = vld [vmem:[#allocation2 + $0x38] sm:$0xff]  ;;  %v8546_v28 = vld [vmem:[#allocation8] ss:$16 sps:$4 sm:$0xff]   ;;  %v8548_v48 = vld [vmem:[#allocation8 + $0x4] ss:$16 sps:$4 sm:$0xff]  }
 0x6f8   :  { %v8549_v6 = vld [vmem:[#allocation8 + $0x8] ss:$16 sps:$4 sm:$0xff]   ;;  %7241 = vmatprep.subr.bf16.mxu1 %v8548_v48  ;;  %v8584_v48 = vld [vmem:[#allocation8 + $0xc4] ss:$16 sps:$4 sm:$0xff]  }
 0x6f9   :  { %7242 = vmatpush1.bf16.msra.mxu1 %v8546_v28  ;;  %v8579_v28 = vld [vmem:[#allocation8 + $0xa8] ss:$16 sps:$4 sm:$0xff]  }
 0x6fa   :  { %6725 = vrot.lane.b32.xlu0 %v6692_v33, %s8948_s8 }
 0x6fb   :  { %6711 = vrot.lane.b32.xlu1 %v6698_v40, %s8949_s9  ;;  %v8554_v40 = vld [vmem:[#allocation8 + $0x24] ss:$16 sps:$4 sm:$0xff]  }
 0x6fc   :  { %7243 = vmatprep.subr.bf16.mxu1 %v8554_v40  ;;  %v8585_v40 = vld [vmem:[#allocation8 + $0xc8] ss:$16 sps:$4 sm:$0xff]  }
 0x6ff   :  { %6727 = vrot.lane.b32.xlu1 %v6704_v46, %s8948_s8  ;;  %v8557_v46 = vld [vmem:[#allocation8 + $0x2c] ss:$16 sps:$4 sm:$0xff]  }
 0x756   :  { %v6714_v52 = vpop.permute.xlu1 %6713 }
 0x758   :  { %v6706_v29 = vpop.permute.xlu0 %6705 }
 0x759   :  { %v6731_v24 = vsel %vm3787_vm1, %v6659_v51, %v6706_v29  ;;  %v8786_v51 = vld [vmem:[#allocation2] sm:$0xff]  ;;  %v8555_v29 = vld [vmem:[#allocation8 + $0x28] ss:$16 sps:$4 sm:$0xff]  }
 0x75a   :  { %v6743_v62 = vsel %vm6741_vm5, %v6731_v24, %v6714_v52  ;;  %v8552_v52 = vld [vmem:[#allocation8 + $0x20] ss:$16 sps:$4 sm:$0xff]  }
 0x75b   :  { %v6716_v23 = vpop.permute.xlu1 %6715  ;;  %7244 = vmatpush1.bf16.msra.mxu1 %v8552_v52  ;;  %v8593_v52 = vld [vmem:[#allocation8 + $0xec] ss:$16 sps:$4 sm:$0xff]  }
 0x75c   :  { %v6722_v43 = vpop.permute.xlu0 %6721 }
 0x75d   :  { %v6752_v2 = vsel %vm6750_vm6, %v6743_v62, %v6722_v43 }
 0x75e   :  { %8461 = vmatprep.mubr.bf16.mxu0 %v6752_v2 }
 0x75f   :  { %v6708_v0 = vpop.permute.xlu1 %6707 }
 0x760   :  { %v6734_v45 = vsel %vm3787_vm1, %v6671_v31, %v6708_v0 }
 0x761   :  { %v6745_v42 = vsel %vm6741_vm5, %v6734_v45, %v6716_v23 }
 0x763   :  { %v6724_v18 = vpop.permute.xlu1 %6723 }
 0x764   :  { %v6718_v44 = vpop.permute.xlu0 %6717  ;;  %v6755_v59 = vsel %vm6750_vm6, %v6745_v42, %v6724_v18 }
 0x765   :  { %8462 = vmatmul.mubr.bf16.vlgmr.msra.gmra.mrb[76].mxu0 %v6755_v59 }
 0x768   :  { %v6710_v12 = vpop.permute.xlu0 %6709 }
 0x769   :  { %v6737_v50 = vsel %vm3787_vm1, %v6683_v54, %v6710_v12  ;;  %v6720_v8 = vpop.permute.xlu1 %6719 }
 0x76a   :  { %v6747_v15 = vsel %vm6741_vm5, %v6737_v50, %v6718_v44 }
 0x76c   :  { %v6726_v39 = vpop.permute.xlu0 %6725 }
 0x76d   :  { %v6712_v3 = vpop.permute.xlu1 %6711  ;;  %v6758_v53 = vsel %vm6750_vm6, %v6747_v15, %v6726_v39 }
 0x76e   :  { %v6740_v58 = vsel %vm3787_vm1, %v6695_v25, %v6712_v3  ;;  %8465 = vmatprep.mubr.bf16.mxu0 %v6758_v53  ;;  %v8551_v25 = vld [vmem:[#allocation8 + $0xc] ss:$16 sps:$4 sm:$0xff]  }
 0x76f   :  { %v6749_v36 = vsel %vm6741_vm5, %v6740_v58, %v6720_v8  ;;  %7314 = vmatprep.subr.bf16.mxu0 %v8551_v25  ;;  %v8582_v25 = vld [vmem:[#allocation8 + $0xc0] ss:$16 sps:$4 sm:$0xff]  }
 0x770   :  { %7315 = vmatpush1.bf16.msra.mxu0 %v8549_v6  ;;  %v8587_v6 = vld [vmem:[#allocation8 + $0xcc] ss:$16 sps:$4 sm:$0xff]  }
 0x771   :  { %v6728_v57 = vpop.permute.xlu1 %6727  ;;  %7316 = vmatprep.subr.bf16.mxu0 %v8557_v46  ;;  %v8590_v46 = vld [vmem:[#allocation8 + $0xe4] ss:$16 sps:$4 sm:$0xff]  }
 0x772   :  { %v6761_v4 = vsel %vm6750_vm6, %v6749_v36, %v6728_v57 }
 0x773   :  { %8466 = vmatmul.mubr.bf16.gmra.mrb[80].mxu0 %v6761_v4 }
 0x774   :  { %7346 = vmatprep.mubr.bf16.mxu0 %v11974_v14  ;;  %7317 = vmatpush1.bf16.msra.mxu0 %v8555_v29  ;;  %v8588_v29 = vld [vmem:[#allocation8 + $0xe0] ss:$16 sps:$4 sm:$0xff]  }
 0x838   :  { %v8463_v21 = vpop.f32.mrb[76].mxu0 }
 0x839   :  { %v6868_v20 = vpop.f32.mrb[77].mxu0  ;;  %v6877_v55 = vadd.f32 %v8463_v21, %v7985_v32 }
 0x83a   :  { %v6869_v9 = vadd.f32 %v7985_v32, %v6868_v20  ;;  %v8464_v27 = vpop.f32.mrb[78].mxu0 }
 0x83b   :  { %v6871_v47 = vpop.f32.mrb[79].mxu0  ;;  %v11533_v7 = vadd.f32 %v8788_v34, %v6877_v55  ;;  %v6880_v11 = vadd.f32 %v8464_v27, %v7985_v32  ;;  %v8558_v34 = vld [vmem:[#allocation8 + $0x40] ss:$16 sps:$4 sm:$0xff]  }
 0x83c   :  { %v11528_v31 = vadd.f32 %v8786_v51, %v6869_v9  ;;  %v6872_v49 = vadd.f32 %v7985_v32, %v6871_v47 }
 0x83d   :  { %v11537_v38 = vadd.f32 %v8789_v17, %v6880_v11  ;;  %v8560_v11 = vld [vmem:[#allocation8 + $0x44] ss:$16 sps:$4 sm:$0xff]   ;;  %v8561_v17 = vld [vmem:[#allocation8 + $0x48] ss:$16 sps:$4 sm:$0xff]  }
 0x83e   :  { %v11530_v5 = vadd.f32 %v8787_v26, %v6872_v49  ;;  %6907 = vadd.xlane.f32.xlu0 %v11528_v31  ;;  %7245 = vmatprep.subr.bf16.mxu1 %v8560_v11 }
 0x83f   :  { %7246 = vmatpush1.bf16.msra.mxu1 %v8558_v34 }
 0x840   :  { %6909 = vadd.xlane.f32.xlu1 %v11530_v5 }
 0x842   :  { %6911 = vadd.xlane.f32.xlu0 %v11533_v7 }
 0x846   :  { %v8467_v10 = vpop.f32.mrb[80].mxu0  ;;  %6913 = vadd.xlane.f32.xlu0 %v11537_v38 }
 0x847   :  { %v6884_v1 = vpop.f32.mrb[81].mxu0  ;;  %v6893_v16 = vadd.f32 %v8467_v10, %v7985_v32  ;;  %v8563_v10 = vld [vmem:[#allocation8 + $0x4c] ss:$16 sps:$4 sm:$0xff]  }
 0x848   :  { %v6885_v35 = vadd.f32 %v7985_v32, %v6884_v1  ;;  %v8468_v63 = vpop.f32.mrb[82].mxu0  ;;  %v8566_v1 = vld [vmem:[#allocation8 + $0x64] ss:$16 sps:$4 sm:$0xff]   ;;  %7318 = vmatprep.subr.bf16.mxu0 %v8563_v10 }
 0x849   :  { %v6887_v22 = vpop.f32.mrb[83].mxu0  ;;  %v6896_v54 = vadd.f32 %v8468_v63, %v7985_v32  ;;  %v11545_v19 = vadd.f32 %v8792_v60, %v6893_v16  ;;  %v8569_v63 = vld [vmem:[#allocation8 + $0x6c] ss:$16 sps:$4 sm:$0xff]   ;;  %7319 = vmatpush1.bf16.msra.mxu0 %v8561_v17  ;;  %7247 = vmatprep.subr.bf16.mxu1 %v8566_v1  ;;  %v8572_v16 = vld [vmem:[#allocation8 + $0x84] ss:$16 sps:$4 sm:$0xff]  }
 0x84a   :  { %v11540_v56 = vadd.f32 %v8790_v37, %v6885_v35  ;;  %v6888_v41 = vadd.f32 %v7985_v32, %v6887_v22  ;;  %v8564_v35 = vld [vmem:[#allocation8 + $0x60] ss:$16 sps:$4 sm:$0xff]   ;;  %v8567_v22 = vld [vmem:[#allocation8 + $0x68] ss:$16 sps:$4 sm:$0xff]   ;;  %7320 = vmatprep.subr.bf16.mxu0 %v8569_v63  ;;  %v8575_v37 = vld [vmem:[#allocation8 + $0x8c] ss:$16 sps:$4 sm:$0xff]  }
 0x84b   :  { %v11548_v13 = vadd.f32 %v8793_v30, %v6896_v54  ;;  %7248 = vmatpush1.bf16.msra.mxu1 %v8564_v35  ;;  %v8573_v54 = vld [vmem:[#allocation8 + $0x88] ss:$16 sps:$4 sm:$0xff]   ;;  %v8581_v60 = vld [vmem:[#allocation8 + $0xac] ss:$16 sps:$4 sm:$0xff]   ;;  %v8576_v30 = vld [vmem:[#allocation8 + $0xa0] ss:$16 sps:$4 sm:$0xff]  }
 0x84c   :  { %v11542_v33 = vadd.f32 %v8791_v61, %v6888_v41  ;;  %6915 = vadd.xlane.f32.xlu0 %v11540_v56  ;;  %v8570_v41 = vld [vmem:[#allocation8 + $0x80] ss:$16 sps:$4 sm:$0xff]   ;;  %7249 = vmatprep.subr.bf16.mxu1 %v8572_v16  ;;  %v8578_v61 = vld [vmem:[#allocation8 + $0xa4] ss:$16 sps:$4 sm:$0xff]  }
 0x84d   :  { %7321 = vmatpush1.bf16.msra.mxu0 %v8567_v22  ;;  %v11606_v63 = vld [vmem:[%s11790_s11] ss:$0 sm:$0xff] }
 0x84e   :  { %6917 = vadd.xlane.f32.xlu1 %v11542_v33  ;;  %7322 = vmatprep.subr.bf16.mxu0 %v8575_v37 }
 0x84f   :  { %7250 = vmatpush1.bf16.msra.mxu1 %v8570_v41 }
 0x850   :  { %6919 = vadd.xlane.f32.xlu0 %v11545_v19  ;;  %7251 = vmatprep.subr.bf16.mxu1 %v8578_v61 }
 0x851   :  { %7323 = vmatpush1.bf16.msra.mxu0 %v8573_v54 }
 0x852   :  { %6921 = vadd.xlane.f32.xlu1 %v11548_v13  ;;  %7324 = vmatprep.subr.bf16.mxu0 %v8581_v60 }
 0x853   :  { %7252 = vmatpush1.bf16.msra.mxu1 %v8576_v30 }
 0x854   :  { %7253 = vmatprep.subr.bf16.mxu1 %v8584_v48  ;;  %v8596_v48 = vld [vmem:[#allocation10] sm:$0xff]  }
 0x855   :  { %7325 = vmatpush1.bf16.msra.mxu0 %v8579_v28 }
 0x856   :  { %7326 = vmatprep.subr.bf16.mxu0 %v8587_v6  ;;  %v11613_v6 = vld [vmem:[#allocation10 + $0x80] sm:$0xff]  }
 0x857   :  { %7254 = vmatpush1.bf16.msra.mxu1 %v8582_v25  ;;  %v8598_v25 = vld [vmem:[#allocation10 + $0x48] sm:$0xff]  }
 0x858   :  { %7255 = vmatprep.subr.bf16.mxu1 %v8590_v46 }
 0x859   :  { %7327 = vmatpush1.bf16.msra.mxu0 %v8585_v40  ;;  %v11615_v40 = vld [vmem:[#allocation10 + $0xc8] sm:$0xff]  }
 0x85a   :  { %7328 = vmatprep.subr.bf16.mxu0 %v8593_v52 }
 0x85b   :  { %7256 = vmatpush1.bf16.msra.mxu1 %v8588_v29  ;;  %v11623_v29 = vld [vmem:[#allocation10 + $0x88] sm:$0xff]  }
 0x8cb   :  { %v6908_v24 = vpop.xlane.xlu0 %6907 }
 0x8cc   :  { %v6923_v23 = vmul.f32 0.0078125, %v6908_v24  ;;  %v8591_v24 = vld [vmem:[#allocation8 + $0xe8] ss:$16 sps:$4 sm:$0xff]  }
 0x8cd   :  { %v6910_v43 = vpop.xlane.xlu1 %6909  ;;  %7329 = vmatpush1.bf16.msra.mxu0 %v8591_v24 }
 0x8ce   :  { %v11553_v62 = vsub.f32 %v11528_v31, %v6923_v23  ;;  %v6924_v2 = vmul.f32 0.0078125, %v6910_v43  ;;  %v8594_v23 = vld [vmem:[#allocation10 + $0x40] sm:$0xff]  }
 0x8cf   :  { %v6912_v0 = vpop.xlane.xlu0 %6911  ;;  %v11592_v43 = vld [vmem:[#allocation10 + $0xc0] sm:$0xff]   ;;  %8149 = vmatprep.subr.bf16.mxu1 %v8594_v23  ;;  %v8602_v23 = vld [vmem:[#allocation10 + $0x50] sm:$0xff]  }
 0x8d0   :  { %v11556_v45 = vsub.f32 %v11530_v5, %v6924_v2  ;;  %v6925_v18 = vmul.f32 0.0078125, %v6912_v0  ;;  %v6939_v42 = vmul.f32 %v11553_v62, %v11553_v62  ;;  %8189 = vmatprep.subr.bf16.mxu0 %v11592_v43 }
 0x8d2   :  { %v11561_v44 = vsub.f32 %v11533_v7, %v6925_v18  ;;  %6947 = vadd.xlane.f32.xlu0 %v6939_v42  ;;  %v6940_v59 = vmul.f32 %v11556_v45, %v11556_v45 }
 0x8d3   :  { %v6914_v12 = vpop.xlane.xlu0 %6913 }
 0x8d4   :  { %v6926_v50 = vmul.f32 0.0078125, %v6914_v12  ;;  %6949 = vadd.xlane.f32.xlu1 %v6940_v59  ;;  %v6941_v8 = vmul.f32 %v11561_v44, %v11561_v44 }
 0x8d6   :  { %v11568_v39 = vsub.f32 %v11537_v38, %v6926_v50  ;;  %6951 = vadd.xlane.f32.xlu0 %v6941_v8 }
 0x8d8   :  { %v6942_v15 = vmul.f32 %v11568_v39, %v11568_v39 }
 0x8d9   :  { %v6916_v3 = vpop.xlane.xlu0 %6915 }
 0x8da   :  { %v6927_v53 = vmul.f32 0.0078125, %v6916_v3  ;;  %6953 = vadd.xlane.f32.xlu1 %v6942_v15 }
 0x8db   :  { %v6918_v58 = vpop.xlane.xlu1 %6917 }
 0x8dc   :  { %v11573_v57 = vsub.f32 %v11540_v56, %v6927_v53  ;;  %v6928_v36 = vmul.f32 0.0078125, %v6918_v58 }
 0x8dd   :  { %v6920_v4 = vpop.xlane.xlu0 %6919 }
 0x8de   :  { %v11576_v32 = vsub.f32 %v11542_v33, %v6928_v36  ;;  %v6929_v21 = vmul.f32 0.0078125, %v6920_v4  ;;  %v6943_v20 = vmul.f32 %v11573_v57, %v11573_v57 }
 0x8df   :  { %v6922_v9 = vpop.xlane.xlu1 %6921 }
 0x8e0   :  { %v11581_v27 = vsub.f32 %v11545_v19, %v6929_v21  ;;  %v6930_v47 = vmul.f32 0.0078125, %v6922_v9  ;;  %6955 = vadd.xlane.f32.xlu0 %v6943_v20  ;;  %v6944_v55 = vmul.f32 %v11576_v32, %v11576_v32  ;;  %v11598_v20 = vld [vmem:[%s11789_s10] ss:$0 sm:$0xff] }
 0x8e2   :  { %v11586_v51 = vsub.f32 %v11548_v13, %v6930_v47  ;;  %6957 = vadd.xlane.f32.xlu1 %v6944_v55  ;;  %v6945_v49 = vmul.f32 %v11581_v27, %v11581_v27 }
 0x8e4   :  { %6959 = vadd.xlane.f32.xlu0 %v6945_v49  ;;  %v6946_v26 = vmul.f32 %v11586_v51, %v11586_v51 }
 0x8e6   :  { %6961 = vadd.xlane.f32.xlu1 %v6946_v26 }
 0x95f   :  { %v6948_v2 = vpop.xlane.xlu0 %6947 }
 0x960   :  { %v6963_v0 = vmul.f32 0.0078125, %v6948_v2  ;;  %v11626_v2 = vld [vmem:[#allocation10 + $0xd0] sm:$0xff]  }
 0x961   :  { %v6950_v18 = vpop.xlane.xlu1 %6949 }
 0x962   :  { %v6971_v42 = vadd.f32 1e-05, %v6963_v0  ;;  %v6964_v59 = vmul.f32 0.0078125, %v6950_v18 }
 0x963   :  { %v6952_v12 = vpop.xlane.xlu0 %6951 }
 0x964   :  { %8770 = vrsqrt.f32 %v6971_v42  ;;  %v6972_v50 = vadd.f32 1e-05, %v6964_v59  ;;  %v6965_v8 = vmul.f32 0.0078125, %v6952_v12 }
 0x966   :  { %8772 = vrsqrt.f32 %v6972_v50  ;;  %v6973_v15 = vadd.f32 1e-05, %v6965_v8  ;;  %v8604_v50 = vld [vmem:[#allocation10 + $0x10] sm:$0xff]  }
 0x967   :  { %v6954_v3 = vpop.xlane.xlu1 %6953  ;;  %v11632_v8 = vld [vmem:[#allocation10 + $0x90] sm:$0xff]  }
 0x968   :  { %8774 = vrsqrt.f32 %v6973_v15  ;;  %v6966_v53 = vmul.f32 0.0078125, %v6954_v3  ;;  %v8606_v15 = vld [vmem:[#allocation10 + $0x58] sm:$0xff]  }
 0x969   :  { %v11635_v3 = vld [vmem:[#allocation10 + $0xd8] sm:$0xff]  }
 0x96a   :  { %v6974_v58 = vadd.f32 1e-05, %v6966_v53 }
 0x96c   :  { %8776 = vrsqrt.f32 %v6974_v58 }
 0x96d   :  { %v6956_v36 = vpop.xlane.xlu0 %6955 }
 0x96e   :  { %v8771_v4 = vpop.eup %8770  ;;  %v6967_v21 = vmul.f32 0.0078125, %v6956_v36 }
 0x96f   :  { %v6987_v9 = vmul.f32 %v8771_v4, %v11553_v62  ;;  %v6958_v47 = vpop.xlane.xlu1 %6957 }
 0x970   :  { %v8773_v55 = vpop.eup %8772  ;;  %v6975_v49 = vadd.f32 1e-05, %v6967_v21  ;;  %v6968_v26 = vmul.f32 0.0078125, %v6958_v47  ;;  %v8608_v21 = vld [vmem:[#allocation10 + $0x18] sm:$0xff]   ;;  %v8610_v47 = vld [vmem:[#allocation10 + $0x60] sm:$0xff]  }
 0x971   :  { %v6988_v34 = vmul.f32 %v8773_v55, %v11556_v45  ;;  %v6960_v11 = vpop.xlane.xlu0 %6959  ;;  %v7001_v17 = vmul.f32 %v11598_v20, %v6987_v9  ;;  %v11644_v9 = vld [vmem:[#allocation10 + $0x98] sm:$0xff]   ;;  %v11647_v55 = vld [vmem:[#allocation10 + $0xe0] sm:$0xff]  }
 0x972   :  { %v8775_v10 = vpop.eup %8774  ;;  %8778 = vrsqrt.f32 %v6975_v49  ;;  %v6976_v1 = vadd.f32 1e-05, %v6968_v26  ;;  %v6969_v35 = vmul.f32 0.0078125, %v6960_v11 }
 0x973   :  { %v6962_v22 = vpop.xlane.xlu1 %6961  ;;  %v7002_v62 = vmul.f32 %v11598_v20, %v6988_v34  ;;  %v7015_v45 = vadd.f32 %v11606_v63, %v7001_v17  ;;  %v6989_v54 = vmul.f32 %v8775_v10, %v11561_v44  ;;  %v11653_v17 = vld [vmem:[#allocation10 + $0xa0] sm:$0xff]   ;;  %v8614_v10 = vld [vmem:[#allocation10 + $0x68] sm:$0xff]  }
 0x974   :  { %8780 = vrsqrt.f32 %v6976_v1  ;;  %v6977_v16 = vadd.f32 1e-05, %v6969_v35  ;;  %v6970_v37 = vmul.f32 0.0078125, %v6962_v22  ;;  %v11656_v1 = vld [vmem:[#allocation10 + $0xe8] sm:$0xff]  }
 0x975   :  { %v7016_v41 = vadd.f32 %v11606_v63, %v7002_v62  ;;  %v7003_v46 = vmul.f32 %v11598_v20, %v6989_v54  ;;  %v8622_v54 = vld [vmem:[#allocation10 + $0x78] sm:$0xff]  }
 0x976   :  { %v8777_v61 = vpop.eup %8776  ;;  %v6978_v60 = vadd.f32 1e-05, %v6970_v37  ;;  %8782 = vrsqrt.f32 %v6977_v16  ;;  %v8616_v16 = vld [vmem:[#allocation10 + $0x28] sm:$0xff]  }
 0x977   :  { %v7023_v30 = vpack.c.bf16 %v7016_v41, %v7015_v45  ;;  %v6990_v28 = vmul.f32 %v8777_v61, %v11568_v39  ;;  %v8600_v39 = vld [vmem:[#allocation10 + $0x8] sm:$0xff]   ;;  %v7017_v0 = vadd.f32 %v11606_v63, %v7003_v46  ;;  %v8620_v45 = vld [vmem:[#allocation10 + $0x30] sm:$0xff]   ;;  %v11672_v61 = vld [vmem:[#allocation10 + $0xf8] sm:$0xff]  }
 0x978   :  { %8784 = vrsqrt.f32 %v6978_v60  ;;  %v11665_v37 = vld [vmem:[#allocation10 + $0xa8] sm:$0xff]   ;;  %v11670_v41 = vld [vmem:[#allocation10 + $0xb0] sm:$0xff]   ;;  %v11676_v60 = vld [vmem:[#allocation10 + $0xb8] sm:$0xff]  }
 0x979   :  { %7274 = vmatmul.mubr.bf16.vlgmr.msra.gmra.mrb[76].mxu1 %v7023_v30  ;;  %7347 = vmatmul.mubr.bf16.vlgmr.msra.gmra.mrb[84].mxu0 %v7023_v30  ;;  %v7004_v52 = vmul.f32 %v11598_v20, %v6990_v28  ;;  %v11975_v30 = vld [vmem:[#allocation18_spill] sm:$0xff] }
 0x97a   :  { %7283 = vmatprep.mubr.bf16.mxu1 %v11974_v14  ;;  %7356 = vmatprep.mubr.bf16.mxu0 %v11974_v14  ;;  %v7063_v28 = vsub.s32 0, %v11975_v30  ;;  %v7067_v46 = vsub.s32 1, %v11975_v30 }
 0x97b   :  { %v7018_v44 = vadd.f32 %v11606_v63, %v7004_v52  ;;  %8150 = vmatpush3.bf16.msra.mxu1 %v8596_v48  ;;  %8190 = vmatpush3.bf16.msra.mxu0 %v11613_v6  ;;  %v7071_v48 = vsub.s32 2, %v11975_v30  ;;  %v7075_v52 = vsub.s32 3, %v11975_v30 }
 0x97c   :  { %v8779_v24 = vpop.eup %8778  ;;  %8151 = vmatprep.subr.bf16.mxu1 %v8598_v25  ;;  %8191 = vmatprep.subr.bf16.mxu0 %v11615_v40  ;;  %v7059_v25 = vld [vmem:[%s11784_s5] sm:$0xf] }
 0x97d   :  { %v6991_v18 = vmul.f32 %v8779_v24, %v11573_v57  ;;  %v7024_v59 = vpack.c.bf16 %v7018_v44, %v7017_v0  ;;  %v11688_v44 = vrot.slane %v7059_v25, %v7063_v28  ;;  %v11692_v24 = vrot.slane %v7059_v25, %v7067_v46 }
 0x97e   :  { %v8781_v42 = vpop.eup %8780 }
 0x97f   :  { %v6992_v12 = vmul.f32 %v8781_v42, %v11576_v32  ;;  %8152 = vmatpush3.bf16.msra.mxu1 %v8600_v39  ;;  %8192 = vmatpush3.bf16.msra.mxu0 %v11623_v29  ;;  %v7005_v57 = vmul.f32 %v11598_v20, %v6991_v18  ;;  %v11690_v39 = vrot.slane %v7059_v25, %v7071_v48 }
 0x980   :  { %8153 = vmatprep.subr.bf16.mxu1 %v8602_v23  ;;  %8193 = vmatprep.subr.bf16.mxu0 %v11626_v2  ;;  %v8783_v53 = vpop.eup %8782  ;;  %v11694_v23 = vrot.slane %v7059_v25, %v7075_v52 }
 0x981   :  { %7284 = vmatmul.mubr.bf16.gmra.mrb[80].mxu1 %v7024_v59  ;;  %7357 = vmatmul.mubr.bf16.gmra.mrb[88].mxu0 %v7024_v59  ;;  %v7006_v58 = vmul.f32 %v11598_v20, %v6992_v12  ;;  %v7019_v49 = vadd.f32 %v11606_v63, %v7005_v57  ;;  %v6993_v26 = vmul.f32 %v8783_v53, %v11581_v27 }
 0x982   :  { %v8785_v32 = vpop.eup %8784  ;;  %7293 = vmatprep.mubr.bf16.mxu1 %v11974_v14  ;;  %7366 = vmatprep.mubr.bf16.mxu0 %v11974_v14 }
 0x983   :  { %v7020_v36 = vadd.f32 %v11606_v63, %v7006_v58  ;;  %v6994_v4 = vmul.f32 %v8785_v32, %v11586_v51  ;;  %8154 = vmatpush3.bf16.msra.mxu1 %v8604_v50  ;;  %8194 = vmatpush3.bf16.msra.mxu0 %v11632_v8  ;;  %v8612_v51 = vld [vmem:[#allocation10 + $0x20] sm:$0xff]   ;;  %v7007_v35 = vmul.f32 %v11598_v20, %v6993_v26 }
 0x984   :  { %8155 = vmatprep.subr.bf16.mxu1 %v8606_v15  ;;  %8195 = vmatprep.subr.bf16.mxu0 %v11635_v3 }
 0x985   :  { %v7025_v34 = vpack.c.bf16 %v7020_v36, %v7019_v49  ;;  %v7008_v11 = vmul.f32 %v11598_v20, %v6994_v4  ;;  %v7021_v22 = vadd.f32 %v11606_v63, %v7007_v35  ;;  %v11668_v20 = vld [vmem:[#allocation10 + $0xf0] sm:$0xff]  }
 0x987   :  { %8156 = vmatpush3.bf16.msra.mxu1 %v8608_v21  ;;  %8196 = vmatpush3.bf16.msra.mxu0 %v11644_v9  ;;  %v7022_v27 = vadd.f32 %v11606_v63, %v7008_v11  ;;  %v8624_v63 = vld [vmem:[#allocation10 + $0x38] sm:$0xff]  }
 0x988   :  { %8157 = vmatprep.subr.bf16.mxu1 %v8610_v47  ;;  %8197 = vmatprep.subr.bf16.mxu0 %v11647_v55 }
 0x989   :  { %7294 = vmatmul.mubr.bf16.gmra.mrb[84].mxu1 %v7025_v34  ;;  %7367 = vmatmul.mubr.bf16.gmra.mrb[92].mxu0 %v7025_v34  ;;  %v7026_v62 = vpack.c.bf16 %v7022_v27, %v7021_v22 }
 0x98a   :  { %7303 = vmatprep.mubr.bf16.mxu1 %v11974_v14  ;;  %7376 = vmatprep.mubr.bf16.mxu0 %v11974_v14  ;;  %v8618_v14 = vld [vmem:[#allocation10 + $0x70] sm:$0xff]  }
 0x98b   :  { %8158 = vmatpush3.bf16.msra.mxu1 %v8612_v51  ;;  %8198 = vmatpush3.bf16.msra.mxu0 %v11653_v17 }
 0x98c   :  { %8159 = vmatprep.subr.bf16.mxu1 %v8614_v10  ;;  %8199 = vmatprep.subr.bf16.mxu0 %v11656_v1 }
 0x98f   :  { %8160 = vmatpush3.bf16.msra.mxu1 %v8616_v16  ;;  %8200 = vmatpush3.bf16.msra.mxu0 %v11665_v37 }
 0x990   :  { %8161 = vmatprep.subr.bf16.mxu1 %v8618_v14  ;;  %8201 = vmatprep.subr.bf16.mxu0 %v11668_v20 }
 0x991   :  { %7304 = vmatmul.mubr.bf16.gmra.mrb[88].mxu1 %v7026_v62  ;;  %7377 = vmatmul.mubr.bf16.gmra.mrb[96].mxu0 %v7026_v62 }
 0x993   :  { %8162 = vmatpush3.bf16.msra.mxu1 %v8620_v45  ;;  %8202 = vmatpush3.bf16.msra.mxu0 %v11670_v41 }
 0x994   :  { %8163 = vmatprep.subr.bf16.mxu1 %v8622_v54  ;;  %8203 = vmatprep.subr.bf16.mxu0 %v11672_v61 }
 0x997   :  { %8164 = vmatpush3.bf16.msra.mxu1 %v8624_v63  ;;  %8204 = vmatpush3.bf16.msra.mxu0 %v11676_v60 }
 0x998   :  { %8469 = vmatprep.subr.bf16.mxu1 %v11592_v43 }
 0xa4c   :  { %v7275_v43 = vpop.f32.mrb[76].mxu1  ;;  %v7348_v0 = vpop.f32.mrb[84].mxu0 }
 0xa4d   :  { %v7276_v18 = vadd.f32 %v7275_v43, %v11688_v44  ;;  %v7349_v42 = vadd.f32 %v7348_v0, %v11690_v39  ;;  %v7277_v59 = vpop.f32.mrb[77].mxu1  ;;  %v7350_v12 = vpop.f32.mrb[85].mxu0 }
 0xa4e   :  { %v7278_v50 = vadd.f32 %v7277_v59, %v11692_v24  ;;  %v7351_v15 = vadd.f32 %v7350_v12, %v11694_v23  ;;  %v7279_v53 = vpop.f32.mrb[78].mxu1  ;;  %v7352_v57 = vpop.f32.mrb[86].mxu0 }
 0xa4f   :  { %v7280_v58 = vadd.f32 %v7279_v53, %v11688_v44  ;;  %v7353_v32 = vadd.f32 %v7352_v57, %v11690_v39  ;;  %v7281_v36 = vpop.f32.mrb[79].mxu1  ;;  %v7354_v4 = vpop.f32.mrb[87].mxu0  ;;  %v7387_v49 = vmax.f32 %v7276_v18, 0.0  ;;  %v7389_v26 = vmax.f32 %v7349_v42, 0.0 }
 0xa50   :  { %v7282_v21 = vadd.f32 %v7281_v36, %v11692_v24  ;;  %v7355_v47 = vadd.f32 %v7354_v4, %v11694_v23  ;;  %v7388_v51 = vmax.f32 %v7278_v50, 0.0  ;;  %v7390_v10 = vmax.f32 %v7351_v15, 0.0 }
 0xa51   :  { %v7391_v34 = vmax.f32 %v7280_v58, 0.0  ;;  %v7393_v11 = vmax.f32 %v7353_v32, 0.0 }
 0xa52   :  { %v7392_v35 = vmax.f32 %v7282_v21, 0.0  ;;  %v7394_v27 = vmax.f32 %v7355_v47, 0.0 }
 0xa53   :  { %v7419_v22 = vpack.c.bf16 %v7391_v34, %v7387_v49  ;;  %v7421_v62 = vpack.c.bf16 %v7393_v11, %v7389_v26 }
 0xa54   :  { %v7420_v16 = vpack.c.bf16 %v7392_v35, %v7388_v51  ;;  %v7422_v14 = vpack.c.bf16 %v7394_v27, %v7390_v10  ;;  %v7285_v45 = vpop.f32.mrb[80].mxu1  ;;  %v7358_v54 = vpop.f32.mrb[88].mxu0 }
 0xa55   :  { %v7286_v63 = vadd.f32 %v7285_v45, %v11688_v44  ;;  %v7359_v30 = vadd.f32 %v7358_v54, %v11690_v39  ;;  %v7287_v28 = vpop.f32.mrb[81].mxu1  ;;  %v7360_v48 = vpop.f32.mrb[89].mxu0 }
 0xa56   :  { %v7288_v25 = vadd.f32 %v7287_v28, %v11692_v24  ;;  %v7361_v46 = vadd.f32 %v7360_v48, %v11694_v23  ;;  %v7289_v52 = vpop.f32.mrb[82].mxu1  ;;  %v7362_v43 = vpop.f32.mrb[90].mxu0  ;;  %7730 = vmatprep.mubr.bf16.mxu1 %v7420_v16  ;;  %7795 = vmatprep.mubr.bf16.mxu0 %v7422_v14 }
 0xa57   :  { %v7290_v0 = vadd.f32 %v7289_v52, %v11688_v44  ;;  %v7363_v18 = vadd.f32 %v7362_v43, %v11690_v39  ;;  %v7291_v42 = vpop.f32.mrb[83].mxu1  ;;  %v7364_v59 = vpop.f32.mrb[91].mxu0  ;;  %7731 = vmatmul.mubr.bf16.vlgmr.msra.gmra.mrb[92].mxu1 %v7419_v22  ;;  %7796 = vmatmul.mubr.bf16.vlgmr.msra.gmra.mrb[100].mxu0 %v7421_v62  ;;  %v7395_v15 = vmax.f32 %v7286_v63, 0.0  ;;  %v7397_v53 = vmax.f32 %v7359_v30, 0.0 }
 0xa58   :  { %v7292_v12 = vadd.f32 %v7291_v42, %v11692_v24  ;;  %v7365_v50 = vadd.f32 %v7364_v59, %v11694_v23  ;;  %8477 = vmatpush3.bf16.msra.mxu1 %v11613_v6  ;;  %v7396_v32 = vmax.f32 %v7288_v25, 0.0  ;;  %v7398_v36 = vmax.f32 %v7361_v46, 0.0 }
 0xa59   :  { %v7399_v57 = vmax.f32 %v7290_v0, 0.0  ;;  %v7401_v58 = vmax.f32 %v7363_v18, 0.0  ;;  %8470 = vmatprep.subr.bf16.mxu1 %v11615_v40 }
 0xa5a   :  { %v7400_v4 = vmax.f32 %v7292_v12, 0.0  ;;  %v7402_v21 = vmax.f32 %v7365_v50, 0.0 }
 0xa5b   :  { %v7423_v47 = vpack.c.bf16 %v7399_v57, %v7395_v15  ;;  %v7425_v49 = vpack.c.bf16 %v7401_v58, %v7397_v53 }
 0xa5c   :  { %v7424_v26 = vpack.c.bf16 %v7400_v4, %v7396_v32  ;;  %v7426_v34 = vpack.c.bf16 %v7402_v21, %v7398_v36  ;;  %v7295_v11 = vpop.f32.mrb[84].mxu1  ;;  %v7368_v51 = vpop.f32.mrb[92].mxu0  ;;  %8478 = vmatpush3.bf16.msra.mxu1 %v11623_v29 }
 0xa5d   :  { %v7296_v6 = vadd.f32 %v7295_v11, %v11688_v44  ;;  %v7369_v10 = vadd.f32 %v7368_v51, %v11690_v39  ;;  %v7297_v35 = vpop.f32.mrb[85].mxu1  ;;  %v7370_v27 = vpop.f32.mrb[93].mxu0  ;;  %8471 = vmatprep.subr.bf16.mxu1 %v11626_v2 }
 0xa5e   :  { %v7298_v40 = vadd.f32 %v7297_v35, %v11692_v24  ;;  %v7371_v22 = vadd.f32 %v7370_v27, %v11694_v23  ;;  %v7299_v62 = vpop.f32.mrb[86].mxu1  ;;  %v7372_v16 = vpop.f32.mrb[94].mxu0  ;;  %7738 = vmatprep.mubr.bf16.mxu1 %v7424_v26  ;;  %7803 = vmatprep.mubr.bf16.mxu0 %v7426_v34 }
 0xa5f   :  { %v7300_v14 = vadd.f32 %v7299_v62, %v11688_v44  ;;  %v7373_v29 = vadd.f32 %v7372_v16, %v11690_v39  ;;  %v7301_v45 = vpop.f32.mrb[87].mxu1  ;;  %v7374_v54 = vpop.f32.mrb[95].mxu0  ;;  %7739 = vmatmul.mubr.bf16.gmra.mrb[96].mxu1 %v7423_v47  ;;  %7804 = vmatmul.mubr.bf16.gmra.mrb[104].mxu0 %v7425_v49  ;;  %v7403_v30 = vmax.f32 %v7296_v6, 0.0  ;;  %v7405_v28 = vmax.f32 %v7369_v10, 0.0 }
 0xa60   :  { %v7302_v63 = vadd.f32 %v7301_v45, %v11692_v24  ;;  %v7375_v2 = vadd.f32 %v7374_v54, %v11694_v23  ;;  %8479 = vmatpush3.bf16.msra.mxu1 %v11632_v8  ;;  %v7404_v46 = vmax.f32 %v7298_v40, 0.0  ;;  %v7406_v52 = vmax.f32 %v7371_v22, 0.0 }
 0xa61   :  { %v7407_v48 = vmax.f32 %v7300_v14, 0.0  ;;  %v7409_v25 = vmax.f32 %v7373_v29, 0.0  ;;  %8472 = vmatprep.subr.bf16.mxu1 %v11635_v3 }
 0xa62   :  { %v7408_v43 = vmax.f32 %v7302_v63, 0.0  ;;  %v7410_v0 = vmax.f32 %v7375_v2, 0.0 }
 0xa63   :  { %v7427_v18 = vpack.c.bf16 %v7407_v48, %v7403_v30  ;;  %v7429_v42 = vpack.c.bf16 %v7409_v25, %v7405_v28 }
 0xa64   :  { %v7428_v59 = vpack.c.bf16 %v7408_v43, %v7404_v46  ;;  %v7430_v12 = vpack.c.bf16 %v7410_v0, %v7406_v52  ;;  %v7305_v50 = vpop.f32.mrb[88].mxu1  ;;  %v7378_v15 = vpop.f32.mrb[96].mxu0  ;;  %8480 = vmatpush3.bf16.msra.mxu1 %v11644_v9 }
 0xa65   :  { %v7306_v8 = vadd.f32 %v7305_v50, %v11688_v44  ;;  %v7379_v53 = vadd.f32 %v7378_v15, %v11690_v39  ;;  %v7307_v57 = vpop.f32.mrb[89].mxu1  ;;  %v7380_v58 = vpop.f32.mrb[97].mxu0  ;;  %8473 = vmatprep.subr.bf16.mxu1 %v11647_v55 }
 0xa66   :  { %v7308_v3 = vadd.f32 %v7307_v57, %v11692_v24  ;;  %v7381_v32 = vadd.f32 %v7380_v58, %v11694_v23  ;;  %v7309_v36 = vpop.f32.mrb[90].mxu1  ;;  %v7382_v4 = vpop.f32.mrb[98].mxu0  ;;  %7746 = vmatprep.mubr.bf16.mxu1 %v7428_v59 }
 0xa67   :  { %v7310_v21 = vadd.f32 %v7309_v36, %v11688_v44  ;;  %v7383_v47 = vadd.f32 %v7382_v4, %v11690_v39  ;;  %v7311_v9 = vpop.f32.mrb[91].mxu1  ;;  %v7384_v49 = vpop.f32.mrb[99].mxu0  ;;  %7747 = vmatmul.mubr.bf16.gmra.mrb[100].mxu1 %v7427_v18  ;;  %v7411_v55 = vmax.f32 %v7306_v8, 0.0  ;;  %v7413_v11 = vmax.f32 %v7379_v53, 0.0 }
 0xa68   :  { %v7312_v26 = vadd.f32 %v7311_v9, %v11692_v24  ;;  %v7385_v34 = vadd.f32 %v7384_v49, %v11694_v23  ;;  %8481 = vmatpush3.bf16.msra.mxu1 %v11653_v17  ;;  %v7412_v10 = vmax.f32 %v7308_v3, 0.0  ;;  %v7414_v35 = vmax.f32 %v7381_v32, 0.0 }
 0xa69   :  { %v7415_v51 = vmax.f32 %v7310_v21, 0.0  ;;  %v7417_v6 = vmax.f32 %v7383_v47, 0.0  ;;  %8474 = vmatprep.subr.bf16.mxu1 %v11656_v1 }
 0xa6a   :  { %v7416_v44 = vmax.f32 %v7312_v26, 0.0  ;;  %v7418_v27 = vmax.f32 %v7385_v34, 0.0 }
 0xa6b   :  { %v7431_v39 = vpack.c.bf16 %v7415_v51, %v7411_v55  ;;  %v7433_v40 = vpack.c.bf16 %v7417_v6, %v7413_v11 }
 0xa6c   :  { %v7432_v22 = vpack.c.bf16 %v7416_v44, %v7412_v10  ;;  %v7434_v62 = vpack.c.bf16 %v7418_v27, %v7414_v35  ;;  %8482 = vmatpush3.bf16.msra.mxu1 %v11665_v37  ;;  %v11746_v37 = vld [vmem:[%s11786_s7] ss:$0 sm:$0xff]  ;;  %s8954_s7 = smov [#allocation11]  }
 0xa6d   :  { %8475 = vmatprep.subr.bf16.mxu1 %v11668_v20  ;;  %s7849_s21 = sshll.u32 %s8954_s7, 4  ;;  %s7850_s21 = int_to_ptr.vmem [resolvable:$true] %s7849_s21 }
 0xa6e   :  { %7754 = vmatprep.mubr.bf16.mxu1 %v7432_v22  ;;  %s8904_s23 = scalar_lea.vmem %s7850_s21, 1024  ;;  %p8909_p13 = scmp.lt.s32.totalorder %s7850_s21, %s7850_s21 }
 0xa6f   :  { %7755 = vmatmul.mubr.bf16.gmra.mrb[104].mxu1 %v7431_v39  ;;  %p8905_p12 = scmp.ne.s32.totalorder %s7850_s21, %s8904_s23  ;;  %p8910_p0 = scmp.lt.s32.totalorder %s8904_s23, %s8904_s23 }
 0xa70   :  { %8483 = vmatpush3.bf16.msra.mxu1 %v11670_v41  ;;  %7811 = vmatprep.mubr.bf16.mxu1 %v7430_v12 }
 0xa71   :  { %8476 = vmatprep.subr.bf16.mxu1 %v11672_v61  ;;  %p8911_p1 = por %p8910_p0, %p8909_p13 }
 0xa73   :  { %p8912_p2 = pnand %p8911_p1, %p8905_p12 }
 0xa74   :  { %8484 = vmatpush3.bf16.msra.mxu1 %v11676_v60 }
 0xa77   :  { %7812 = vmatmul.mubr.bf16.vlgmr.msra.gmra.mrb[108].mxu1 %v7429_v42 }
 0xa78   :  { %7819 = vmatprep.mubr.bf16.mxu1 %v7434_v62 }
 0xa7f   :  { %7820 = vmatmul.mubr.bf16.gmra.mrb[112].mxu1 %v7433_v40 }
 0xb2a   :  { %v8165_v17 = vpop.f32.mrb[92].mxu1  ;;  %v8205_v1 = vpop.f32.mrb[100].mxu0 }
 0xb2b   :  { %v8166_v20 = vpop.f32.mrb[93].mxu1  ;;  %v8206_v24 = vpop.f32.mrb[101].mxu0 }
 0xb2c   :  { %v8167_v23 = vadd.f32 %v8166_v20, %v8165_v17  ;;  %v8207_v16 = vadd.f32 %v8206_v24, %v8205_v1  ;;  %v8168_v41 = vpop.f32.mrb[94].mxu1  ;;  %v8208_v14 = vpop.f32.mrb[102].mxu0 }
 0xb2d   :  { %v8169_v29 = vpop.f32.mrb[95].mxu1  ;;  %v8209_v61 = vpop.f32.mrb[103].mxu0 }
 0xb2e   :  { %v7733_v60 = vadd.f32 %v8167_v23, %v11746_v37  ;;  %v8170_v45 = vadd.f32 %v8169_v29, %v8168_v41  ;;  %v8210_v54 = vadd.f32 %v8209_v61, %v8208_v14 }
 0xb30   :  { %v7798_v63 = vadd.f32 %v8207_v16, %v7733_v60  ;;  %v7736_v2 = vadd.f32 %v8170_v45, %v11746_v37 }
 0xb32   :  { %v7828_v30 = vadd.f32 %v7798_v63, %v11528_v31  ;;  %v7801_v28 = vadd.f32 %v8210_v54, %v7736_v2  ;;  %v8171_v48 = vpop.f32.mrb[96].mxu1  ;;  %v8211_v25 = vpop.f32.mrb[104].mxu0 }
 0xb33   :  { %v8172_v46 = vpop.f32.mrb[97].mxu1  ;;  %v8212_v52 = vpop.f32.mrb[105].mxu0 }
 0xb34   :  { %7836 = vst [vmem:[#allocation11] sm:$0xff] %v7828_v30  ;;  %v7829_v43 = vadd.f32 %v7801_v28, %v11530_v5  ;;  %v8173_v0 = vadd.f32 %v8172_v46, %v8171_v48  ;;  %v8213_v18 = vadd.f32 %v8212_v52, %v8211_v25  ;;  %v8174_v42 = vpop.f32.mrb[98].mxu1  ;;  %v8214_v59 = vpop.f32.mrb[106].mxu0 }
 0xb35   :  { %v8175_v12 = vpop.f32.mrb[99].mxu1  ;;  %v8215_v50 = vpop.f32.mrb[107].mxu0 }
 0xb36   :  { %7837 = vst [vmem:[#allocation11 + $0x8] sm:$0xff] %v7829_v43  ;;  %v7741_v15 = vadd.f32 %v8173_v0, %v11746_v37  ;;  %v8176_v8 = vadd.f32 %v8175_v12, %v8174_v42  ;;  %v8216_v53 = vadd.f32 %v8215_v50, %v8214_v59 }
 0xb38   :  { %v7806_v31 = vadd.f32 %v8213_v18, %v7741_v15  ;;  %v7744_v57 = vadd.f32 %v8176_v8, %v11746_v37 }
 0xb3a   :  { %v7830_v58 = vadd.f32 %v7806_v31, %v11533_v7  ;;  %v7809_v3 = vadd.f32 %v8216_v53, %v7744_v57  ;;  %v8177_v32 = vpop.f32.mrb[100].mxu1 }
 0xb3b   :  { %v8178_v36 = vpop.f32.mrb[101].mxu1 }
 0xb3c   :  { %7838 = vst [vmem:[#allocation11 + $0x10] sm:$0xff] %v7830_v58  ;;  %v7831_v5 = vadd.f32 %v7809_v3, %v11537_v38  ;;  %v8179_v4 = vadd.f32 %v8178_v36, %v8177_v32  ;;  %v8180_v21 = vpop.f32.mrb[102].mxu1 }
 0xb3d   :  { %v8181_v47 = vpop.f32.mrb[103].mxu1 }
 0xb3e   :  { %7839 = vst [vmem:[#allocation11 + $0x18] sm:$0xff] %v7831_v5  ;;  %v8182_v9 = vadd.f32 %v8181_v47, %v8180_v21  ;;  %v7749_v7 = vadd.f32 %v8179_v4, %v11746_v37 }
 0xb40   :  { %v7752_v38 = vadd.f32 %v8182_v9, %v11746_v37 }
 0xb42   :  { %v8183_v49 = vpop.f32.mrb[104].mxu1 }
 0xb43   :  { %v8184_v26 = vpop.f32.mrb[105].mxu1 }
 0xb44   :  { %v8185_v34 = vadd.f32 %v8184_v26, %v8183_v49  ;;  %v8186_v55 = vpop.f32.mrb[106].mxu1 }
 0xb45   :  { %v8187_v11 = vpop.f32.mrb[107].mxu1 }
 0xb46   :  { %v8188_v51 = vadd.f32 %v8187_v11, %v8186_v55  ;;  %v7757_v24 = vadd.f32 %v8185_v34, %v11746_v37 }
 0xb48   :  { %v7760_v14 = vadd.f32 %v8188_v51, %v11746_v37 }
 0xb4a   :  { %v8217_v6 = vpop.f32.mrb[108].mxu1 }
 0xb4b   :  { %v8218_v10 = vpop.f32.mrb[109].mxu1 }
 0xb4c   :  { %v8219_v35 = vadd.f32 %v8218_v10, %v8217_v6  ;;  %v8220_v44 = vpop.f32.mrb[110].mxu1 }
 0xb4d   :  { %v8221_v27 = vpop.f32.mrb[111].mxu1 }
 0xb4e   :  { %v7814_v39 = vadd.f32 %v8219_v35, %v7749_v7  ;;  %v8222_v40 = vadd.f32 %v8221_v27, %v8220_v44 }
 0xb50   :  { %v7832_v22 = vadd.f32 %v7814_v39, %v11540_v56  ;;  %v7817_v62 = vadd.f32 %v8222_v40, %v7752_v38 }
 0xb52   :  { %7840 = vst [vmem:[#allocation11 + $0x20] sm:$0xff] %v7832_v22  ;;  %v7833_v17 = vadd.f32 %v7817_v62, %v11542_v33  ;;  %v8223_v1 = vpop.f32.mrb[112].mxu1 }
 0xb53   :  { %v8224_v20 = vpop.f32.mrb[113].mxu1 }
 0xb54   :  { %7841 = vst [vmem:[#allocation11 + $0x28] sm:$0xff] %v7833_v17  ;;  %v8225_v23 = vadd.f32 %v8224_v20, %v8223_v1  ;;  %v8226_v16 = vpop.f32.mrb[114].mxu1 }
 0xb55   :  { %v8227_v41 = vpop.f32.mrb[115].mxu1 }
 0xb56   :  { %v7822_v29 = vadd.f32 %v8225_v23, %v7757_v24  ;;  %v8228_v61 = vadd.f32 %v8227_v41, %v8226_v16 }
 0xb58   :  { %v7834_v56 = vadd.f32 %v7822_v29, %v11545_v19  ;;  %v7825_v60 = vadd.f32 %v8228_v61, %v7760_v14 }
 0xb5a   :  { %7842 = vst [vmem:[#allocation11 + $0x30] sm:$0xff] %v7834_v56  ;;  %v7835_v33 = vadd.f32 %v7825_v60, %v11548_v13 }
 0xb5c   :  { %7843 = vst [vmem:[#allocation11 + $0x38] sm:$0xff] %v7835_v33 }
 0xb5d   :  { %8915 = shalt.err (!%p8912_p2)
}
 0xb5e   :  { %s8916_s26 = scalar_lea.hbm %s11791_s12, 1024 }
 0xb5f   :  { %p8917_p3 = scmp.ne.s32.totalorder %s11791_s12, %s8916_s26  ;;  %p8920_p4 = scmp.lt.u32.totalorder %s8916_s26, %s11791_s12 }
 0xb61   :  { %p8922_p5 = pnand %p8920_p4, %p8917_p3 }
 0xb63   :  { %8925 = shalt.err (!%p8922_p5)
}
 0xb64   :  { %7855 = dma.vmem_to_hbm [thread:$0]  %s7850_s21, 1024, %s11791_s12, [#allocation4], %s8941_s4, %s8941_s4, %s8942_s18  }
 0xb65   :  { %8932 = dma.done.wait [#allocation4], 1024  }
 0xb66   :  { %8933 = vsyncadd [#allocation4], 4294966272 }
 0xb67   :  { %7859 = vsyncpa [#allocation3], 1 }
 0xb68   :  { %7860 = vsyncpa [#allocation6], 1 }
 0xb69   :  { %7861 = vsyncpa [#allocation9], 1 }
 0xb6a   :  { %7862 = vsyncpa [#allocation4], 1 }

</bundles_post_ra>
